<compile_context>
chip_gen: v7x
topology: tpu7x:2x2x1
jax: 0.10.0
libtpu: 0.0.40
codegen_flags: <defaults>
</compile_context>

<pallas_src>
import functools

import jax
import jax.numpy as jnp
from jax.experimental import pallas as pl
from jax.experimental.pallas import tpu as pltpu


# ------------------------------ Fused forward kernel ------------------------------

def _fused_forward_kernel(*refs, n_layers, K, L, lpad, cins, couts, btile):
    # refs layout:
    #   x_ref                            (Btile, L)               VMEM
    #   [w_ref_i, b_ref_i] * n_layers    (Cout*Cin*K,), (Cout,)   SMEM scalars
    #   fw_ref                           (C*L, O)                 VMEM
    #   fb_ref                           (1, O)                   VMEM
    #   o_ref                            (Btile, O)               VMEM (output)
    x_ref = refs[0]
    layer_refs = refs[1:1 + 2 * n_layers]
    fw_ref = refs[1 + 2 * n_layers]
    fb_ref = refs[2 + 2 * n_layers]
    o_ref = refs[3 + 2 * n_layers]

    B = btile

    def zeros_cols(n):
        return jnp.zeros((B, n), jnp.float32)

    def shifted_tap(h, k):
        # Tap k of the 'same'-padded row ([zeros(lpad), h, zeros(K-1-lpad)])[:, k:k+L],
        # built purely on values (registers): shift right by s = lpad - k, zero fill.
        s = lpad - k
        if s == 0:
            return h
        if s > 0:
            return jnp.concatenate([zeros_cols(s), h[:, :L - s]], axis=1)
        s = -s
        return jnp.concatenate([h[:, s:], zeros_cols(s)], axis=1)

    # Register-resident activations: list of (Btile, L) f32 values, one per channel.
    # x.unsqueeze(1): the single input channel is channel 0.
    h_chans = [x_ref[...].astype(jnp.float32)]

    for i in range(n_layers):
        w_ref = layer_refs[2 * i]       # flat (Cout*Cin*K,) f32 scalars in SMEM
        b_ref = layer_refs[2 * i + 1]   # (Cout,) f32 scalars in SMEM
        cin = cins[i]
        cout = couts[i]

        # Build the K shifted taps of every input channel once (values only).
        taps = [[shifted_tap(h_chans[ci], k) for k in range(K)] for ci in range(cin)]

        # VPU conv: Cout*Cin*K scalar-broadcast mul-adds; each SMEM scalar is read
        # exactly once (fully unrolled). ReLU fused.
        new_chans = []
        for co in range(cout):
            acc = jnp.full((B, L), b_ref[co], jnp.float32)
            for ci in range(cin):
                wbase = (co * cin + ci) * K
                for k in range(K):
                    acc = acc + w_ref[wbase + k] * taps[ci][k]
            new_chans.append(jnp.maximum(acc, 0.0))
        h_chans = new_chans

    # FC: the row-major (C, L) flatten is a lane-axis concat; single MXU matmul
    # (Btile, C*L) @ (C*L, O) instead of C small per-channel dots.
    h_flat = jnp.concatenate(h_chans, axis=1)                      # (Btile, C*L)
    out = jnp.dot(h_flat, fw_ref[...], preferred_element_type=jnp.float32)
    o_ref[...] = (out + fb_ref[...]).astype(o_ref.dtype)


# ------------------------------ Param pre-packing ---------------------------------
# One-time re-layout so the forward pass has no extra XLA transpose/reshape ops in
# the hot path.

def prepack_params(params, n_layers):
    assert n_layers >= 1, "kernel requires at least one conv layer"
    layers = []
    K0 = None
    for i in range(n_layers):
        w, b = params[f"conv{i}"]                     # w: (Cout, Cin, K), b: (Cout,)
        cout, cin, K = w.shape
        if K0 is None:
            K0 = K
        assert K == K0, "all conv layers must share kernel_size (module uses one)"
        layers.append((
            jnp.asarray(w, jnp.float32).reshape(-1),  # flat, index (co*cin+ci)*K + k
            jnp.asarray(b, jnp.float32),
            cin, cout, K,
        ))
    fw, fb = params["fc"]                             # fw: (O, F), F = hidden * L
    O, F = fw.shape
    hidden = layers[-1][3]
    assert F % hidden == 0
    fw_packed = jnp.asarray(fw, jnp.float32).T        # (F, O); F is row-major (c, l)
    fb2 = jnp.asarray(fb, jnp.float32).reshape(1, O)
    return {"layers": layers, "fw": fw_packed, "fb": fb2}


# -------------------------------- Model forward -----------------------------------

def conv1d_model_forward(x, packed, n_layers, *, batch_tile=None):
    # x: (B, input_dim) -- the PyTorch input before unsqueeze(1)
    B, L = x.shape
    layers = packed["layers"]
    K = layers[0][4]
    lpad = (K - 1) // 2          # PyTorch padding='same' split (stride=1, dilation=1)
    cins = tuple(l[2] for l in layers)
    couts = tuple(l[3] for l in layers)
    fw, fb = packed["fw"], packed["fb"]
    F, O = fw.shape
    assert couts[-1] * L == F, "fc in_features must equal hidden_channels * input_dim"

    if batch_tile is None:
        batch_tile = min(B, 128)
    # Keep tiles sublane-dense (multiple of 8) and evenly dividing the batch.
    assert batch_tile % 8 == 0 and B % batch_tile == 0, \
        "batch must be a multiple of batch_tile, batch_tile a multiple of 8"
    n_tiles = B // batch_tile

    kernel = functools.partial(
        _fused_forward_kernel,
        n_layers=n_layers, K=K, L=L, lpad=lpad,
        cins=cins, couts=couts, btile=batch_tile)

    smem_full = pl.BlockSpec(memory_space=pltpu.MemorySpace.SMEM)
    vmem_full = pl.BlockSpec(memory_space=pltpu.MemorySpace.VMEM)

    inputs = [x]
    in_specs = [pl.BlockSpec((batch_tile, L), lambda b: (b, 0))]
    for (wf, bvec, _cin, _cout, _k) in layers:
        inputs += [wf, bvec]
        in_specs += [smem_full, smem_full]
    inputs += [fw, fb]
    in_specs += [vmem_full, vmem_full]

    return pl.pallas_call(
        kernel,
        out_shape=jax.ShapeDtypeStruct((B, O), jnp.float32),
        grid=(n_tiles,),
        in_specs=in_specs,
        out_specs=pl.BlockSpec((batch_tile, O), lambda b: (b, 0)),
        compiler_params=pltpu.CompilerParams(
            # Batch tiles are independent -> shard across v7x's 2 TensorCores.
            dimension_semantics=("parallel",)),
    )(*inputs)


# --------------------------- Pure-JAX reference (check) ---------------------------

def reference_forward(x, params, n_layers):
    h = x[:, None, :]
    for i in range(n_layers):
        w, b = params[f"conv{i}"]
        K = w.shape[2]
        total = K - 1
        lpad = total // 2
        hp = jnp.pad(h, ((0, 0), (0, 0), (lpad, total - lpad)))
        out = jax.lax.conv_general_dilated(
            hp, w, window_strides=(1,), padding="VALID",
            dimension_numbers=("NCH", "OIH", "NCH"),
        ) + b[None, :, None]
        h = jnp.maximum(out, 0.0)
    h = h.reshape(h.shape[0], -1)
    fw, fb = params["fc"]
    return h @ fw.T + fb[None, :]


# ------------------------------------ Main -----------------------------------------

if __name__ == "__main__":
    # Module hyperparameters (small, consistent with the forward pass).
    input_dim = 16
    output_dim = 8
    kernel_size = 3
    hidden_channels = 4
    n_layers = 2
    batch = 128          # multiple of 8 (sublane-dense stores); tiled over the grid
    batch_tile = 64      # 2 grid steps -> BlockSpec pipelining + parallel semantics

    key = jax.random.PRNGKey(0)
    keys = jax.random.split(key, 2 * n_layers + 3)

    params = {}
    for i in range(n_layers):
        cin = 1 if i == 0 else hidden_channels
        w = 0.1 * jax.random.normal(
            keys[2 * i], (hidden_channels, cin, kernel_size), jnp.float32
        )
        b = 0.1 * jax.random.normal(keys[2 * i + 1], (hidden_channels,), jnp.float32)
        params[f"conv{i}"] = (w, b)
    fc_w = 0.1 * jax.random.normal(
        keys[2 * n_layers], (output_dim, hidden_channels * input_dim), jnp.float32
    )
    fc_b = 0.1 * jax.random.normal(keys[2 * n_layers + 1], (output_dim,), jnp.float32)
    params["fc"] = (fc_w, fc_b)

    x = jax.random.normal(keys[-1], (batch, input_dim), jnp.float32)

    packed = prepack_params(params, n_layers)   # one-time, outside the hot path
    out = conv1d_model_forward(x, packed, n_layers, batch_tile=batch_tile)
    out = jax.block_until_ready(out)

    ref = jax.block_until_ready(reference_forward(x, params, n_layers))
    assert out.shape == (batch, output_dim)
    assert jnp.allclose(out, ref, atol=1e-4, rtol=1e-4), "mismatch vs reference"

    print("KERNEL_OK")
</pallas_src>

<mosaic_0001>
module attributes {stable_mosaic.version = 11 : i64} {
  func.func @_fused_forward_kernel(%arg0: i32, %arg1: memref<64x16xf32, #tpu.memory_space<vmem>>, %arg2: memref<12xf32, #tpu.memory_space<smem>>, %arg3: memref<4xf32, #tpu.memory_space<smem>>, %arg4: memref<48xf32, #tpu.memory_space<smem>>, %arg5: memref<4xf32, #tpu.memory_space<smem>>, %arg6: memref<64x8xf32, #tpu.memory_space<vmem>>, %arg7: memref<1x8xf32, #tpu.memory_space<vmem>>, %arg8: memref<64x8xf32, #tpu.memory_space<vmem>>) attributes {dimension_semantics = [#tpu.dimension_semantics<parallel>], iteration_bounds = array<i64: 2>, scalar_prefetch = 0 : i64, scratch_operands = 0 : i64, tpu.core_type = #tpu.core_type<tc>, window_params = [{transform_indices = @transform_0, window_bounds = array<i64: 64, 16>}, {transform_indices = @transform_1, window_bounds = array<i64: 12>}, {transform_indices = @transform_2, window_bounds = array<i64: 4>}, {transform_indices = @transform_3, window_bounds = array<i64: 48>}, {transform_indices = @transform_4, window_bounds = array<i64: 4>}, {pipeline_mode = #tpu.pipeline_mode<synchronous>, transform_indices = @transform_5, window_bounds = array<i64: 64, 8>}, {pipeline_mode = #tpu.pipeline_mode<synchronous>, transform_indices = @transform_6, window_bounds = array<i64: 1, 8>}, {transform_indices = @transform_7, window_bounds = array<i64: 64, 8>}]} {
    %c0 = arith.constant 0 : index
    %c0_0 = arith.constant 0 : index
    %0 = vector.load %arg1[%c0, %c0_0] : memref<64x16xf32, #tpu.memory_space<vmem>>, vector<64x16xf32>
    %cst = arith.constant 0.000000e+00 : f32
    %1 = vector.broadcast %cst : f32 to vector<64x1xf32>
    %2 = vector.extract_strided_slice %0 {offsets = [0, 0], sizes = [64, 15], strides = [1, 1]} : vector<64x16xf32> to vector<64x15xf32>
    %3 = tpu.concatenate %1, %2 in 1 : vector<64x1xf32>, vector<64x15xf32> -> vector<64x16xf32>
    %4 = vector.extract_strided_slice %0 {offsets = [0, 1], sizes = [64, 15], strides = [1, 1]} : vector<64x16xf32> to vector<64x15xf32>
    %cst_1 = arith.constant 0.000000e+00 : f32
    %5 = vector.broadcast %cst_1 : f32 to vector<64x1xf32>
    %6 = tpu.concatenate %4, %5 in 1 : vector<64x15xf32>, vector<64x1xf32> -> vector<64x16xf32>
    %c0_2 = arith.constant 0 : index
    %7 = memref.load %arg3[%c0_2] : memref<4xf32, #tpu.memory_space<smem>>
    %8 = vector.broadcast %7 : f32 to vector<64x16xf32>
    %c0_3 = arith.constant 0 : index
    %9 = memref.load %arg2[%c0_3] : memref<12xf32, #tpu.memory_space<smem>>
    %10 = vector.broadcast %9 : f32 to vector<64x16xf32>
    %11 = arith.mulf %10, %3 : vector<64x16xf32>
    %12 = arith.addf %8, %11 : vector<64x16xf32>
    %c1 = arith.constant 1 : index
    %13 = memref.load %arg2[%c1] : memref<12xf32, #tpu.memory_space<smem>>
    %14 = vector.broadcast %13 : f32 to vector<64x16xf32>
    %15 = arith.mulf %14, %0 : vector<64x16xf32>
    %16 = arith.addf %12, %15 : vector<64x16xf32>
    %c2 = arith.constant 2 : index
    %17 = memref.load %arg2[%c2] : memref<12xf32, #tpu.memory_space<smem>>
    %18 = vector.broadcast %17 : f32 to vector<64x16xf32>
    %19 = arith.mulf %18, %6 : vector<64x16xf32>
    %20 = arith.addf %16, %19 : vector<64x16xf32>
    %cst_4 = arith.constant 0.000000e+00 : f32
    %21 = vector.broadcast %cst_4 : f32 to vector<64x16xf32>
    %22 = arith.maximumf %20, %21 : vector<64x16xf32>
    %c1_5 = arith.constant 1 : index
    %23 = memref.load %arg3[%c1_5] : memref<4xf32, #tpu.memory_space<smem>>
    %24 = vector.broadcast %23 : f32 to vector<64x16xf32>
    %c3 = arith.constant 3 : index
    %25 = memref.load %arg2[%c3] : memref<12xf32, #tpu.memory_space<smem>>
    %26 = vector.broadcast %25 : f32 to vector<64x16xf32>
    %27 = arith.mulf %26, %3 : vector<64x16xf32>
    %28 = arith.addf %24, %27 : vector<64x16xf32>
    %c4 = arith.constant 4 : index
    %29 = memref.load %arg2[%c4] : memref<12xf32, #tpu.memory_space<smem>>
    %30 = vector.broadcast %29 : f32 to vector<64x16xf32>
    %31 = arith.mulf %30, %0 : vector<64x16xf32>
    %32 = arith.addf %28, %31 : vector<64x16xf32>
    %c5 = arith.constant 5 : index
    %33 = memref.load %arg2[%c5] : memref<12xf32, #tpu.memory_space<smem>>
    %34 = vector.broadcast %33 : f32 to vector<64x16xf32>
    %35 = arith.mulf %34, %6 : vector<64x16xf32>
    %36 = arith.addf %32, %35 : vector<64x16xf32>
    %cst_6 = arith.constant 0.000000e+00 : f32
    %37 = vector.broadcast %cst_6 : f32 to vector<64x16xf32>
    %38 = arith.maximumf %36, %37 : vector<64x16xf32>
    %c2_7 = arith.constant 2 : index
    %39 = memref.load %arg3[%c2_7] : memref<4xf32, #tpu.memory_space<smem>>
    %40 = vector.broadcast %39 : f32 to vector<64x16xf32>
    %c6 = arith.constant 6 : index
    %41 = memref.load %arg2[%c6] : memref<12xf32, #tpu.memory_space<smem>>
    %42 = vector.broadcast %41 : f32 to vector<64x16xf32>
    %43 = arith.mulf %42, %3 : vector<64x16xf32>
    %44 = arith.addf %40, %43 : vector<64x16xf32>
    %c7 = arith.constant 7 : index
    %45 = memref.load %arg2[%c7] : memref<12xf32, #tpu.memory_space<smem>>
    %46 = vector.broadcast %45 : f32 to vector<64x16xf32>
    %47 = arith.mulf %46, %0 : vector<64x16xf32>
    %48 = arith.addf %44, %47 : vector<64x16xf32>
    %c8 = arith.constant 8 : index
    %49 = memref.load %arg2[%c8] : memref<12xf32, #tpu.memory_space<smem>>
    %50 = vector.broadcast %49 : f32 to vector<64x16xf32>
    %51 = arith.mulf %50, %6 : vector<64x16xf32>
    %52 = arith.addf %48, %51 : vector<64x16xf32>
    %cst_8 = arith.constant 0.000000e+00 : f32
    %53 = vector.broadcast %cst_8 : f32 to vector<64x16xf32>
    %54 = arith.maximumf %52, %53 : vector<64x16xf32>
    %c3_9 = arith.constant 3 : index
    %55 = memref.load %arg3[%c3_9] : memref<4xf32, #tpu.memory_space<smem>>
    %56 = vector.broadcast %55 : f32 to vector<64x16xf32>
    %c9 = arith.constant 9 : index
    %57 = memref.load %arg2[%c9] : memref<12xf32, #tpu.memory_space<smem>>
    %58 = vector.broadcast %57 : f32 to vector<64x16xf32>
    %59 = arith.mulf %58, %3 : vector<64x16xf32>
    %60 = arith.addf %56, %59 : vector<64x16xf32>
    %c10 = arith.constant 10 : index
    %61 = memref.load %arg2[%c10] : memref<12xf32, #tpu.memory_space<smem>>
    %62 = vector.broadcast %61 : f32 to vector<64x16xf32>
    %63 = arith.mulf %62, %0 : vector<64x16xf32>
    %64 = arith.addf %60, %63 : vector<64x16xf32>
    %c11 = arith.constant 11 : index
    %65 = memref.load %arg2[%c11] : memref<12xf32, #tpu.memory_space<smem>>
    %66 = vector.broadcast %65 : f32 to vector<64x16xf32>
    %67 = arith.mulf %66, %6 : vector<64x16xf32>
    %68 = arith.addf %64, %67 : vector<64x16xf32>
    %cst_10 = arith.constant 0.000000e+00 : f32
    %69 = vector.broadcast %cst_10 : f32 to vector<64x16xf32>
    %70 = arith.maximumf %68, %69 : vector<64x16xf32>
    %cst_11 = arith.constant 0.000000e+00 : f32
    %71 = vector.broadcast %cst_11 : f32 to vector<64x1xf32>
    %72 = vector.extract_strided_slice %22 {offsets = [0, 0], sizes = [64, 15], strides = [1, 1]} : vector<64x16xf32> to vector<64x15xf32>
    %73 = tpu.concatenate %71, %72 in 1 : vector<64x1xf32>, vector<64x15xf32> -> vector<64x16xf32>
    %74 = vector.extract_strided_slice %22 {offsets = [0, 1], sizes = [64, 15], strides = [1, 1]} : vector<64x16xf32> to vector<64x15xf32>
    %cst_12 = arith.constant 0.000000e+00 : f32
    %75 = vector.broadcast %cst_12 : f32 to vector<64x1xf32>
    %76 = tpu.concatenate %74, %75 in 1 : vector<64x15xf32>, vector<64x1xf32> -> vector<64x16xf32>
    %cst_13 = arith.constant 0.000000e+00 : f32
    %77 = vector.broadcast %cst_13 : f32 to vector<64x1xf32>
    %78 = vector.extract_strided_slice %38 {offsets = [0, 0], sizes = [64, 15], strides = [1, 1]} : vector<64x16xf32> to vector<64x15xf32>
    %79 = tpu.concatenate %77, %78 in 1 : vector<64x1xf32>, vector<64x15xf32> -> vector<64x16xf32>
    %80 = vector.extract_strided_slice %38 {offsets = [0, 1], sizes = [64, 15], strides = [1, 1]} : vector<64x16xf32> to vector<64x15xf32>
    %cst_14 = arith.constant 0.000000e+00 : f32
    %81 = vector.broadcast %cst_14 : f32 to vector<64x1xf32>
    %82 = tpu.concatenate %80, %81 in 1 : vector<64x15xf32>, vector<64x1xf32> -> vector<64x16xf32>
    %cst_15 = arith.constant 0.000000e+00 : f32
    %83 = vector.broadcast %cst_15 : f32 to vector<64x1xf32>
    %84 = vector.extract_strided_slice %54 {offsets = [0, 0], sizes = [64, 15], strides = [1, 1]} : vector<64x16xf32> to vector<64x15xf32>
    %85 = tpu.concatenate %83, %84 in 1 : vector<64x1xf32>, vector<64x15xf32> -> vector<64x16xf32>
    %86 = vector.extract_strided_slice %54 {offsets = [0, 1], sizes = [64, 15], strides = [1, 1]} : vector<64x16xf32> to vector<64x15xf32>
    %cst_16 = arith.constant 0.000000e+00 : f32
    %87 = vector.broadcast %cst_16 : f32 to vector<64x1xf32>
    %88 = tpu.concatenate %86, %87 in 1 : vector<64x15xf32>, vector<64x1xf32> -> vector<64x16xf32>
    %cst_17 = arith.constant 0.000000e+00 : f32
    %89 = vector.broadcast %cst_17 : f32 to vector<64x1xf32>
    %90 = vector.extract_strided_slice %70 {offsets = [0, 0], sizes = [64, 15], strides = [1, 1]} : vector<64x16xf32> to vector<64x15xf32>
    %91 = tpu.concatenate %89, %90 in 1 : vector<64x1xf32>, vector<64x15xf32> -> vector<64x16xf32>
    %92 = vector.extract_strided_slice %70 {offsets = [0, 1], sizes = [64, 15], strides = [1, 1]} : vector<64x16xf32> to vector<64x15xf32>
    %cst_18 = arith.constant 0.000000e+00 : f32
    %93 = vector.broadcast %cst_18 : f32 to vector<64x1xf32>
    %94 = tpu.concatenate %92, %93 in 1 : vector<64x15xf32>, vector<64x1xf32> -> vector<64x16xf32>
    %c0_19 = arith.constant 0 : index
    %95 = memref.load %arg5[%c0_19] : memref<4xf32, #tpu.memory_space<smem>>
    %96 = vector.broadcast %95 : f32 to vector<64x16xf32>
    %c0_20 = arith.constant 0 : index
    %97 = memref.load %arg4[%c0_20] : memref<48xf32, #tpu.memory_space<smem>>
    %98 = vector.broadcast %97 : f32 to vector<64x16xf32>
    %99 = arith.mulf %98, %73 : vector<64x16xf32>
    %100 = arith.addf %96, %99 : vector<64x16xf32>
    %c1_21 = arith.constant 1 : index
    %101 = memref.load %arg4[%c1_21] : memref<48xf32, #tpu.memory_space<smem>>
    %102 = vector.broadcast %101 : f32 to vector<64x16xf32>
    %103 = arith.mulf %102, %22 : vector<64x16xf32>
    %104 = arith.addf %100, %103 : vector<64x16xf32>
    %c2_22 = arith.constant 2 : index
    %105 = memref.load %arg4[%c2_22] : memref<48xf32, #tpu.memory_space<smem>>
    %106 = vector.broadcast %105 : f32 to vector<64x16xf32>
    %107 = arith.mulf %106, %76 : vector<64x16xf32>
    %108 = arith.addf %104, %107 : vector<64x16xf32>
    %c3_23 = arith.constant 3 : index
    %109 = memref.load %arg4[%c3_23] : memref<48xf32, #tpu.memory_space<smem>>
    %110 = vector.broadcast %109 : f32 to vector<64x16xf32>
    %111 = arith.mulf %110, %79 : vector<64x16xf32>
    %112 = arith.addf %108, %111 : vector<64x16xf32>
    %c4_24 = arith.constant 4 : index
    %113 = memref.load %arg4[%c4_24] : memref<48xf32, #tpu.memory_space<smem>>
    %114 = vector.broadcast %113 : f32 to vector<64x16xf32>
    %115 = arith.mulf %114, %38 : vector<64x16xf32>
    %116 = arith.addf %112, %115 : vector<64x16xf32>
    %c5_25 = arith.constant 5 : index
    %117 = memref.load %arg4[%c5_25] : memref<48xf32, #tpu.memory_space<smem>>
    %118 = vector.broadcast %117 : f32 to vector<64x16xf32>
    %119 = arith.mulf %118, %82 : vector<64x16xf32>
    %120 = arith.addf %116, %119 : vector<64x16xf32>
    %c6_26 = arith.constant 6 : index
    %121 = memref.load %arg4[%c6_26] : memref<48xf32, #tpu.memory_space<smem>>
    %122 = vector.broadcast %121 : f32 to vector<64x16xf32>
    %123 = arith.mulf %122, %85 : vector<64x16xf32>
    %124 = arith.addf %120, %123 : vector<64x16xf32>
    %c7_27 = arith.constant 7 : index
    %125 = memref.load %arg4[%c7_27] : memref<48xf32, #tpu.memory_space<smem>>
    %126 = vector.broadcast %125 : f32 to vector<64x16xf32>
    %127 = arith.mulf %126, %54 : vector<64x16xf32>
    %128 = arith.addf %124, %127 : vector<64x16xf32>
    %c8_28 = arith.constant 8 : index
    %129 = memref.load %arg4[%c8_28] : memref<48xf32, #tpu.memory_space<smem>>
    %130 = vector.broadcast %129 : f32 to vector<64x16xf32>
    %131 = arith.mulf %130, %88 : vector<64x16xf32>
    %132 = arith.addf %128, %131 : vector<64x16xf32>
    %c9_29 = arith.constant 9 : index
    %133 = memref.load %arg4[%c9_29] : memref<48xf32, #tpu.memory_space<smem>>
    %134 = vector.broadcast %133 : f32 to vector<64x16xf32>
    %135 = arith.mulf %134, %91 : vector<64x16xf32>
    %136 = arith.addf %132, %135 : vector<64x16xf32>
    %c10_30 = arith.constant 10 : index
    %137 = memref.load %arg4[%c10_30] : memref<48xf32, #tpu.memory_space<smem>>
    %138 = vector.broadcast %137 : f32 to vector<64x16xf32>
    %139 = arith.mulf %138, %70 : vector<64x16xf32>
    %140 = arith.addf %136, %139 : vector<64x16xf32>
    %c11_31 = arith.constant 11 : index
    %141 = memref.load %arg4[%c11_31] : memref<48xf32, #tpu.memory_space<smem>>
    %142 = vector.broadcast %141 : f32 to vector<64x16xf32>
    %143 = arith.mulf %142, %94 : vector<64x16xf32>
    %144 = arith.addf %140, %143 : vector<64x16xf32>
    %cst_32 = arith.constant 0.000000e+00 : f32
    %145 = vector.broadcast %cst_32 : f32 to vector<64x16xf32>
    %146 = arith.maximumf %144, %145 : vector<64x16xf32>
    %c1_33 = arith.constant 1 : index
    %147 = memref.load %arg5[%c1_33] : memref<4xf32, #tpu.memory_space<smem>>
    %148 = vector.broadcast %147 : f32 to vector<64x16xf32>
    %c12 = arith.constant 12 : index
    %149 = memref.load %arg4[%c12] : memref<48xf32, #tpu.memory_space<smem>>
    %150 = vector.broadcast %149 : f32 to vector<64x16xf32>
    %151 = arith.mulf %150, %73 : vector<64x16xf32>
    %152 = arith.addf %148, %151 : vector<64x16xf32>
    %c13 = arith.constant 13 : index
    %153 = memref.load %arg4[%c13] : memref<48xf32, #tpu.memory_space<smem>>
    %154 = vector.broadcast %153 : f32 to vector<64x16xf32>
    %155 = arith.mulf %154, %22 : vector<64x16xf32>
    %156 = arith.addf %152, %155 : vector<64x16xf32>
    %c14 = arith.constant 14 : index
    %157 = memref.load %arg4[%c14] : memref<48xf32, #tpu.memory_space<smem>>
    %158 = vector.broadcast %157 : f32 to vector<64x16xf32>
    %159 = arith.mulf %158, %76 : vector<64x16xf32>
    %160 = arith.addf %156, %159 : vector<64x16xf32>
    %c15 = arith.constant 15 : index
    %161 = memref.load %arg4[%c15] : memref<48xf32, #tpu.memory_space<smem>>
    %162 = vector.broadcast %161 : f32 to vector<64x16xf32>
    %163 = arith.mulf %162, %79 : vector<64x16xf32>
    %164 = arith.addf %160, %163 : vector<64x16xf32>
    %c16 = arith.constant 16 : index
    %165 = memref.load %arg4[%c16] : memref<48xf32, #tpu.memory_space<smem>>
    %166 = vector.broadcast %165 : f32 to vector<64x16xf32>
    %167 = arith.mulf %166, %38 : vector<64x16xf32>
    %168 = arith.addf %164, %167 : vector<64x16xf32>
    %c17 = arith.constant 17 : index
    %169 = memref.load %arg4[%c17] : memref<48xf32, #tpu.memory_space<smem>>
    %170 = vector.broadcast %169 : f32 to vector<64x16xf32>
    %171 = arith.mulf %170, %82 : vector<64x16xf32>
    %172 = arith.addf %168, %171 : vector<64x16xf32>
    %c18 = arith.constant 18 : index
    %173 = memref.load %arg4[%c18] : memref<48xf32, #tpu.memory_space<smem>>
    %174 = vector.broadcast %173 : f32 to vector<64x16xf32>
    %175 = arith.mulf %174, %85 : vector<64x16xf32>
    %176 = arith.addf %172, %175 : vector<64x16xf32>
    %c19 = arith.constant 19 : index
    %177 = memref.load %arg4[%c19] : memref<48xf32, #tpu.memory_space<smem>>
    %178 = vector.broadcast %177 : f32 to vector<64x16xf32>
    %179 = arith.mulf %178, %54 : vector<64x16xf32>
    %180 = arith.addf %176, %179 : vector<64x16xf32>
    %c20 = arith.constant 20 : index
    %181 = memref.load %arg4[%c20] : memref<48xf32, #tpu.memory_space<smem>>
    %182 = vector.broadcast %181 : f32 to vector<64x16xf32>
    %183 = arith.mulf %182, %88 : vector<64x16xf32>
    %184 = arith.addf %180, %183 : vector<64x16xf32>
    %c21 = arith.constant 21 : index
    %185 = memref.load %arg4[%c21] : memref<48xf32, #tpu.memory_space<smem>>
    %186 = vector.broadcast %185 : f32 to vector<64x16xf32>
    %187 = arith.mulf %186, %91 : vector<64x16xf32>
    %188 = arith.addf %184, %187 : vector<64x16xf32>
    %c22 = arith.constant 22 : index
    %189 = memref.load %arg4[%c22] : memref<48xf32, #tpu.memory_space<smem>>
    %190 = vector.broadcast %189 : f32 to vector<64x16xf32>
    %191 = arith.mulf %190, %70 : vector<64x16xf32>
    %192 = arith.addf %188, %191 : vector<64x16xf32>
    %c23 = arith.constant 23 : index
    %193 = memref.load %arg4[%c23] : memref<48xf32, #tpu.memory_space<smem>>
    %194 = vector.broadcast %193 : f32 to vector<64x16xf32>
    %195 = arith.mulf %194, %94 : vector<64x16xf32>
    %196 = arith.addf %192, %195 : vector<64x16xf32>
    %cst_34 = arith.constant 0.000000e+00 : f32
    %197 = vector.broadcast %cst_34 : f32 to vector<64x16xf32>
    %198 = arith.maximumf %196, %197 : vector<64x16xf32>
    %c2_35 = arith.constant 2 : index
    %199 = memref.load %arg5[%c2_35] : memref<4xf32, #tpu.memory_space<smem>>
    %200 = vector.broadcast %199 : f32 to vector<64x16xf32>
    %c24 = arith.constant 24 : index
    %201 = memref.load %arg4[%c24] : memref<48xf32, #tpu.memory_space<smem>>
    %202 = vector.broadcast %201 : f32 to vector<64x16xf32>
    %203 = arith.mulf %202, %73 : vector<64x16xf32>
    %204 = arith.addf %200, %203 : vector<64x16xf32>
    %c25 = arith.constant 25 : index
    %205 = memref.load %arg4[%c25] : memref<48xf32, #tpu.memory_space<smem>>
    %206 = vector.broadcast %205 : f32 to vector<64x16xf32>
    %207 = arith.mulf %206, %22 : vector<64x16xf32>
    %208 = arith.addf %204, %207 : vector<64x16xf32>
    %c26 = arith.constant 26 : index
    %209 = memref.load %arg4[%c26] : memref<48xf32, #tpu.memory_space<smem>>
    %210 = vector.broadcast %209 : f32 to vector<64x16xf32>
    %211 = arith.mulf %210, %76 : vector<64x16xf32>
    %212 = arith.addf %208, %211 : vector<64x16xf32>
    %c27 = arith.constant 27 : index
    %213 = memref.load %arg4[%c27] : memref<48xf32, #tpu.memory_space<smem>>
    %214 = vector.broadcast %213 : f32 to vector<64x16xf32>
    %215 = arith.mulf %214, %79 : vector<64x16xf32>
    %216 = arith.addf %212, %215 : vector<64x16xf32>
    %c28 = arith.constant 28 : index
    %217 = memref.load %arg4[%c28] : memref<48xf32, #tpu.memory_space<smem>>
    %218 = vector.broadcast %217 : f32 to vector<64x16xf32>
    %219 = arith.mulf %218, %38 : vector<64x16xf32>
    %220 = arith.addf %216, %219 : vector<64x16xf32>
    %c29 = arith.constant 29 : index
    %221 = memref.load %arg4[%c29] : memref<48xf32, #tpu.memory_space<smem>>
    %222 = vector.broadcast %221 : f32 to vector<64x16xf32>
    %223 = arith.mulf %222, %82 : vector<64x16xf32>
    %224 = arith.addf %220, %223 : vector<64x16xf32>
    %c30 = arith.constant 30 : index
    %225 = memref.load %arg4[%c30] : memref<48xf32, #tpu.memory_space<smem>>
    %226 = vector.broadcast %225 : f32 to vector<64x16xf32>
    %227 = arith.mulf %226, %85 : vector<64x16xf32>
    %228 = arith.addf %224, %227 : vector<64x16xf32>
    %c31 = arith.constant 31 : index
    %229 = memref.load %arg4[%c31] : memref<48xf32, #tpu.memory_space<smem>>
    %230 = vector.broadcast %229 : f32 to vector<64x16xf32>
    %231 = arith.mulf %230, %54 : vector<64x16xf32>
    %232 = arith.addf %228, %231 : vector<64x16xf32>
    %c32 = arith.constant 32 : index
    %233 = memref.load %arg4[%c32] : memref<48xf32, #tpu.memory_space<smem>>
    %234 = vector.broadcast %233 : f32 to vector<64x16xf32>
    %235 = arith.mulf %234, %88 : vector<64x16xf32>
    %236 = arith.addf %232, %235 : vector<64x16xf32>
    %c33 = arith.constant 33 : index
    %237 = memref.load %arg4[%c33] : memref<48xf32, #tpu.memory_space<smem>>
    %238 = vector.broadcast %237 : f32 to vector<64x16xf32>
    %239 = arith.mulf %238, %91 : vector<64x16xf32>
    %240 = arith.addf %236, %239 : vector<64x16xf32>
    %c34 = arith.constant 34 : index
    %241 = memref.load %arg4[%c34] : memref<48xf32, #tpu.memory_space<smem>>
    %242 = vector.broadcast %241 : f32 to vector<64x16xf32>
    %243 = arith.mulf %242, %70 : vector<64x16xf32>
    %244 = arith.addf %240, %243 : vector<64x16xf32>
    %c35 = arith.constant 35 : index
    %245 = memref.load %arg4[%c35] : memref<48xf32, #tpu.memory_space<smem>>
    %246 = vector.broadcast %245 : f32 to vector<64x16xf32>
    %247 = arith.mulf %246, %94 : vector<64x16xf32>
    %248 = arith.addf %244, %247 : vector<64x16xf32>
    %cst_36 = arith.constant 0.000000e+00 : f32
    %249 = vector.broadcast %cst_36 : f32 to vector<64x16xf32>
    %250 = arith.maximumf %248, %249 : vector<64x16xf32>
    %c3_37 = arith.constant 3 : index
    %251 = memref.load %arg5[%c3_37] : memref<4xf32, #tpu.memory_space<smem>>
    %252 = vector.broadcast %251 : f32 to vector<64x16xf32>
    %c36 = arith.constant 36 : index
    %253 = memref.load %arg4[%c36] : memref<48xf32, #tpu.memory_space<smem>>
    %254 = vector.broadcast %253 : f32 to vector<64x16xf32>
    %255 = arith.mulf %254, %73 : vector<64x16xf32>
    %256 = arith.addf %252, %255 : vector<64x16xf32>
    %c37 = arith.constant 37 : index
    %257 = memref.load %arg4[%c37] : memref<48xf32, #tpu.memory_space<smem>>
    %258 = vector.broadcast %257 : f32 to vector<64x16xf32>
    %259 = arith.mulf %258, %22 : vector<64x16xf32>
    %260 = arith.addf %256, %259 : vector<64x16xf32>
    %c38 = arith.constant 38 : index
    %261 = memref.load %arg4[%c38] : memref<48xf32, #tpu.memory_space<smem>>
    %262 = vector.broadcast %261 : f32 to vector<64x16xf32>
    %263 = arith.mulf %262, %76 : vector<64x16xf32>
    %264 = arith.addf %260, %263 : vector<64x16xf32>
    %c39 = arith.constant 39 : index
    %265 = memref.load %arg4[%c39] : memref<48xf32, #tpu.memory_space<smem>>
    %266 = vector.broadcast %265 : f32 to vector<64x16xf32>
    %267 = arith.mulf %266, %79 : vector<64x16xf32>
    %268 = arith.addf %264, %267 : vector<64x16xf32>
    %c40 = arith.constant 40 : index
    %269 = memref.load %arg4[%c40] : memref<48xf32, #tpu.memory_space<smem>>
    %270 = vector.broadcast %269 : f32 to vector<64x16xf32>
    %271 = arith.mulf %270, %38 : vector<64x16xf32>
    %272 = arith.addf %268, %271 : vector<64x16xf32>
    %c41 = arith.constant 41 : index
    %273 = memref.load %arg4[%c41] : memref<48xf32, #tpu.memory_space<smem>>
    %274 = vector.broadcast %273 : f32 to vector<64x16xf32>
    %275 = arith.mulf %274, %82 : vector<64x16xf32>
    %276 = arith.addf %272, %275 : vector<64x16xf32>
    %c42 = arith.constant 42 : index
    %277 = memref.load %arg4[%c42] : memref<48xf32, #tpu.memory_space<smem>>
    %278 = vector.broadcast %277 : f32 to vector<64x16xf32>
    %279 = arith.mulf %278, %85 : vector<64x16xf32>
    %280 = arith.addf %276, %279 : vector<64x16xf32>
    %c43 = arith.constant 43 : index
    %281 = memref.load %arg4[%c43] : memref<48xf32, #tpu.memory_space<smem>>
    %282 = vector.broadcast %281 : f32 to vector<64x16xf32>
    %283 = arith.mulf %282, %54 : vector<64x16xf32>
    %284 = arith.addf %280, %283 : vector<64x16xf32>
    %c44 = arith.constant 44 : index
    %285 = memref.load %arg4[%c44] : memref<48xf32, #tpu.memory_space<smem>>
    %286 = vector.broadcast %285 : f32 to vector<64x16xf32>
    %287 = arith.mulf %286, %88 : vector<64x16xf32>
    %288 = arith.addf %284, %287 : vector<64x16xf32>
    %c45 = arith.constant 45 : index
    %289 = memref.load %arg4[%c45] : memref<48xf32, #tpu.memory_space<smem>>
    %290 = vector.broadcast %289 : f32 to vector<64x16xf32>
    %291 = arith.mulf %290, %91 : vector<64x16xf32>
    %292 = arith.addf %288, %291 : vector<64x16xf32>
    %c46 = arith.constant 46 : index
    %293 = memref.load %arg4[%c46] : memref<48xf32, #tpu.memory_space<smem>>
    %294 = vector.broadcast %293 : f32 to vector<64x16xf32>
    %295 = arith.mulf %294, %70 : vector<64x16xf32>
    %296 = arith.addf %292, %295 : vector<64x16xf32>
    %c47 = arith.constant 47 : index
    %297 = memref.load %arg4[%c47] : memref<48xf32, #tpu.memory_space<smem>>
    %298 = vector.broadcast %297 : f32 to vector<64x16xf32>
    %299 = arith.mulf %298, %94 : vector<64x16xf32>
    %300 = arith.addf %296, %299 : vector<64x16xf32>
    %cst_38 = arith.constant 0.000000e+00 : f32
    %301 = vector.broadcast %cst_38 : f32 to vector<64x16xf32>
    %302 = arith.maximumf %300, %301 : vector<64x16xf32>
    %303 = tpu.concatenate %146, %198, %250, %302 in 1 : vector<64x16xf32>, vector<64x16xf32>, vector<64x16xf32>, vector<64x16xf32> -> vector<64x64xf32>
    %c0_39 = arith.constant 0 : index
    %c0_40 = arith.constant 0 : index
    %304 = vector.load %arg6[%c0_39, %c0_40] : memref<64x8xf32, #tpu.memory_space<vmem>>, vector<64x8xf32>
    %cst_41 = arith.constant dense<0.000000e+00> : vector<64x8xf32>
    %305 = tpu.matmul %303, %304, %cst_41 {dimension_numbers = #tpu.dot_dimension_numbers<[1], [0], [0], [1], [0, 0, 1, 1], [], []>} : vector<64x64xf32>, vector<64x8xf32>, vector<64x8xf32> -> vector<64x8xf32>
    %c0_42 = arith.constant 0 : index
    %c0_43 = arith.constant 0 : index
    %306 = vector.load %arg7[%c0_42, %c0_43] : memref<1x8xf32, #tpu.memory_space<vmem>>, vector<1x8xf32>
    %307 = vector.broadcast %306 : vector<1x8xf32> to vector<64x8xf32>
    %308 = arith.addf %305, %307 : vector<64x8xf32>
    %c0_44 = arith.constant 0 : index
    %c0_45 = arith.constant 0 : index
    %309 = vector.load %arg8[%c0_44, %c0_45] : memref<64x8xf32, #tpu.memory_space<vmem>>, vector<64x8xf32>
    tpu.vector_store %arg8[%c0_44, %c0_45], %308 {strides = array<i32>} : memref<64x8xf32, #tpu.memory_space<vmem>>, vector<64x8xf32>,
    return
  }
  func.func @transform_0(%arg0: i32) -> (i32, i32) {
    %c0_i32 = arith.constant 0 : i32
    %c0_i32_0 = arith.constant 0 : i32
    return %arg0, %c0_i32 : i32, i32
  }
  func.func @transform_1(%arg0: i32) -> i32 {
    %c0_i32 = arith.constant 0 : i32
    %c0_i32_0 = arith.constant 0 : i32
    return %c0_i32 : i32
  }
  func.func @transform_2(%arg0: i32) -> i32 {
    %c0_i32 = arith.constant 0 : i32
    %c0_i32_0 = arith.constant 0 : i32
    return %c0_i32 : i32
  }
  func.func @transform_3(%arg0: i32) -> i32 {
    %c0_i32 = arith.constant 0 : i32
    %c0_i32_0 = arith.constant 0 : i32
    return %c0_i32 : i32
  }
  func.func @transform_4(%arg0: i32) -> i32 {
    %c0_i32 = arith.constant 0 : i32
    %c0_i32_0 = arith.constant 0 : i32
    return %c0_i32 : i32
  }
  func.func @transform_5(%arg0: i32) -> (i32, i32) {
    %c0_i32 = arith.constant 0 : i32
    %c0_i32_0 = arith.constant 0 : i32
    %c0_i32_1 = arith.constant 0 : i32
    return %c0_i32, %c0_i32_0 : i32, i32
  }
  func.func @transform_6(%arg0: i32) -> (i32, i32) {
    %c0_i32 = arith.constant 0 : i32
    %c0_i32_0 = arith.constant 0 : i32
    %c0_i32_1 = arith.constant 0 : i32
    return %c0_i32, %c0_i32_0 : i32, i32
  }
  func.func @transform_7(%arg0: i32) -> (i32, i32) {
    %c0_i32 = arith.constant 0 : i32
    %c0_i32_0 = arith.constant 0 : i32
    return %arg0, %c0_i32 : i32, i32
  }
}

</mosaic_0001>

<bundles_post_ra>
// kernel: tpu_custom_call.1
= control target key start
LH: loop header
LB: loop body
LE: loop exit
PB: predicated region body
PF: predicated region fallthrough
CT: control target
= control target key end

     0   :  { %s5382_s0 = inlined_call_operand.vmem [shape: f32[128,16], index: 0, kind: input, shape index: {}]   ;;  %s5383_s1 = inlined_call_operand.vmem [shape: f32[12], index: 1, kind: input, shape index: {}]   ;;  %s5384_s2 = inlined_call_operand.vmem [shape: f32[4], index: 2, kind: input, shape index: {}]   ;;  %s5385_s3 = inlined_call_operand.vmem [shape: f32[48], index: 3, kind: input, shape index: {}]   ;;  %s5386_s4 = inlined_call_operand.vmem [shape: f32[4], index: 4, kind: input, shape index: {}]   ;;  %s5387_s5 = inlined_call_operand.vmem [shape: f32[64,8], index: 5, kind: input, shape index: {}]   ;;  %s5388_s6 = inlined_call_operand.vmem [shape: f32[1,8], index: 6, kind: input, shape index: {}]   ;;  %s5389_s7 = inlined_call_operand.vmem [shape: f32[128,8], index: 7, kind: output, shape index: {}]  }
   0x1   :  { %5468 = sst [smem:[#allocation92_spill]] %s5382_s0 }
   0x2   :  { %5469 = sst [smem:[#allocation93_spill]] %s5383_s1 }
   0x3   :  { %5470 = sst [smem:[#allocation94_spill]] %s5384_s2 }
   0x4   :  { %5471 = sst [smem:[#allocation95_spill]] %s5385_s3 }
   0x5   :  { %5472 = sst [smem:[#allocation96_spill]] %s5386_s4 }
   0x6   :  { %5473 = sst [smem:[#allocation97_spill]] %s5388_s6 }
   0x7   :  { %5474 = sst [smem:[#allocation98_spill]] %s5389_s7 }
   0x8   :  { %12 = vsyncpa [#allocation3], 0 }
   0x9   :  { %13 = vsyncpa [#allocation5], 0 }
   0xa   :  { %14 = vsyncpa [#allocation8], 0  ;;  %s2581_s24 = smov 0  }
   0xb LB: > { %5475 = sst [smem:[#allocation12_spill]] %s2530_s24  ;;  %s5476_s2 = sld [smem:[#allocation94_spill]]  ;;  %s2530_s24 = sphi %s2581_s24, %s20_s24  }
   0xc   : > { %s2238_s28 = sadd.s32 4294967295, %s2530_s24   ;;  %p2240_p0 = scmp.ge.s32.totalorder %s2530_s24, 1 }
   0xd   : > { %p203_p1 = scmp.lt.s32.totalorder %s2530_s24, 3  ;;  %p2594_p2 = scmp.eq.s32.totalorder %s2238_s28, 0 }
   0xe   : > { %s5479_s1 = sld [smem:[#allocation93_spill]]  ;;  %s5480_s3 = sld [smem:[#allocation95_spill]] }
   0xf   : > { %p2598_p3 = pnand %p2240_p0, %p203_p1  ;;  %s5482_s4 = sld [smem:[#allocation96_spill]] }
  0x11   : > { %s227_s27 = sshll.u32 %s5476_s2, 4  ;;  %p2414_p4 = pneg %p2598_p3  ;;  %s228_s27 = int_to_ptr.vmem [resolvable:$true] %s227_s27 }
  0x12   : > { %s2452_s18 = scalar_lea.vmem %s228_s27, 16  ;;  %p2460_p10 = scmp.lt.s32.totalorder %s228_s27, %s228_s27 }
  0x13   : > { %p2616_p5 = pnand %p2594_p2, %p2414_p4  ;;  %p2453_p6 = scmp.ne.s32.totalorder %s228_s27, %s2452_s18 }
  0x14   : > { %s216_s10 = sshll.u32 %s5479_s1, 4  ;;  %s238_s13 = sshll.u32 %s5480_s3, 4  ;;  %s2605_s10 = int_to_ptr.vmem [resolvable:$true] %s216_s10  ;;  %s2612_s13 = int_to_ptr.vmem [resolvable:$true] %s238_s13 }
  0x15   : > { %s249_s17 = sshll.u32 %s5482_s4, 4  ;;  %p2454_p7 = pneg %p2616_p5  ;;  %s2623_s17 = int_to_ptr.vmem [resolvable:$true] %s249_s17 }
  0x16   : > { %p2461_p11 = scmp.lt.s32.totalorder %s2452_s18, %s2452_s18 }
  0x17   : > { %p2455_p8 = pnand %p2454_p7, %p2453_p6 }
  0x18   : > { %p2462_p12 = por %p2461_p11, %p2460_p10 }
  0x19   : > { %p2456_p9 = pneg %p2455_p8 }
  0x1b   : > { %p2463_p13 = pnand %p2462_p12, %p2456_p9 }
  0x1d   : > { %2466 = shalt.err (!%p2463_p13)
}
  0x1e   : > { %s2532_s19 = smov [#allocation4]   ;;  %s2467_s20 = scalar_lea.vmem %s2605_s10, 16 }
  0x1f   : > { %2420 = dma.vmem_to_smem (!%p2616_p5), %s228_s27, 16, %s2532_s19, [#allocation5]  }
  0x20   : > { %p2468_p0 = scmp.ne.s32.totalorder %s2605_s10, %s2467_s20  ;;  %p2475_p6 = scmp.lt.s32.totalorder %s2605_s10, %s2605_s10 }
  0x21   : > { %p2476_p8 = scmp.lt.s32.totalorder %s2467_s20, %s2467_s20 }
  0x22   : > { %p2470_p1 = pnand %p2468_p0, %p2454_p7 }
  0x23   : > { %p2477_p10 = por %p2476_p8, %p2475_p6 }
  0x24   : > { %p2471_p4 = pneg %p2470_p1 }
  0x26   : > { %p2478_p9 = pnand %p2477_p10, %p2471_p4 }
  0x28   : > { %2481 = shalt.err (!%p2478_p9)
}
  0x29   : > { %s2533_s21 = smov [#allocation2]   ;;  %s2482_s22 = scalar_lea.vmem %s2612_s13, 16 }
  0x2a   : > { %2417 = dma.vmem_to_smem (!%p2616_p5), %s2605_s10, 16, %s2533_s21, [#allocation3]  }
  0x2b   : > { %p2483_p11 = scmp.ne.s32.totalorder %s2612_s13, %s2482_s22  ;;  %p2490_p0 = scmp.lt.s32.totalorder %s2612_s13, %s2612_s13 }
  0x2c   : > { %p2491_p1 = scmp.lt.s32.totalorder %s2482_s22, %s2482_s22 }
  0x2d   : > { %p2485_p12 = pnand %p2483_p11, %p2454_p7 }
  0x2e   : > { %p2492_p4 = por %p2491_p1, %p2490_p0 }
  0x2f   : > { %p2486_p13 = pneg %p2485_p12 }
  0x31   : > { %p2493_p6 = pnand %p2492_p4, %p2486_p13 }
  0x33   : > { %2496 = shalt.err (!%p2493_p6)
}
  0x34   : > { %s2534_s23 = smov [#allocation6]   ;;  %s2497_s25 = scalar_lea.vmem %s2623_s17, 16 }
  0x35   : > { %2423 = dma.vmem_to_smem (!%p2616_p5), %s2612_s13, 16, %s2534_s23, [#allocation5]  }
  0x36   : > { %p2498_p8 = scmp.ne.s32.totalorder %s2623_s17, %s2497_s25  ;;  %p2505_p11 = scmp.lt.s32.totalorder %s2623_s17, %s2623_s17 }
  0x37   : > { %p2506_p12 = scmp.lt.s32.totalorder %s2497_s25, %s2497_s25 }
  0x38   : > { %p2500_p10 = pnand %p2498_p8, %p2454_p7 }
  0x39   : > { %p2507_p13 = por %p2506_p12, %p2505_p11 }
  0x3a   : > { %p2501_p9 = pneg %p2500_p10 }
  0x3c   : > { %p2508_p0 = pnand %p2507_p13, %p2501_p9 }
  0x3e   : > { %2511 = shalt.err (!%p2508_p0)
}
  0x3f   : > { %s2535_s26 = smov [#allocation7]   ;;  %277 = sbr.rel (%p2598_p3) target bundleno = 898 (0x382), region = 48 }
  0x40   : > { %2426 = dma.vmem_to_smem (!%p2616_p5), %s2623_s17, 16, %s2535_s26, [#allocation8]  }
  0x46   : > { %2517 = dma.done.wait (%p2594_p2), [#allocation3], 16  }
  0x47   : > { %2519 = vsyncadd (%p2594_p2), [#allocation3], 4294967280 }
  0x48   : > { %2521 = dma.done.wait (%p2594_p2), [#allocation5], 32  }
  0x49   : > { %2523 = vsyncadd (%p2594_p2), [#allocation5], 4294967264 }
  0x4a   : > { %2525 = dma.done.wait (%p2594_p2), [#allocation8], 16  }
  0x4b   : > { %2527 = vsyncadd (%p2594_p2), [#allocation8], 4294967280 }
  0x4c   : > { %295 = sfence }
  0x4d   : > { %s2251_s27 = sshll.u32 %s2238_s28, 3  ;;  %s5483_s0 = sld [smem:[#allocation92_spill]]  ;;  %vm374_vm0 = vcmask 7168   ;;  %vm407_vm1 = vcmask 121856   ;;  %vm1960_vm2 = vcmask 130048   ;;  %vm1969_vm3 = vcmask 261120  }
  0x4e   : > { %p323_p3 = scmp.lt.s32.totalorder %s2251_s27, 15  ;;  %s5399_s29 = smov 1   ;;  %vm1978_vm4 = vcmask 392192   ;;  %vm2002_vm5 = vcmask 523264   ;;  %vm2132_vm6 = vcmask 64512  }
  0x4f   : > { %s5397_s28 = smov 127   ;;  %s2262_s11 = sld [smem:[#allocation2 + $0x6]] }
  0x50   : > { %s5875_s27 = smov (!%p323_p3, %s2251_s27), 15  ;;  %s2266_s12 = sld [smem:[#allocation2 + $0x9]] }
  0x51   : > { %s5396_s30 = sshll.u32 %s5875_s27, 3  ;;  %s418_s13 = sld [smem:[#allocation2]] }
  0x52   : > { %s416_s14 = sld [smem:[#allocation4]]  ;;  %s2261_s15 = sld [smem:[#allocation4 + $0x2]] }
  0x53   : > { %s326_s10 = scalar_lea.vmem %s5483_s0, %s5396_s30  ;;  %s2265_s16 = sld [smem:[#allocation4 + $0x3]] }
  0x54   : > { %v2686_v0 = vld [vmem:[%s326_s10 + $0x8] sm:$0xff]  ;;  %v2688_v1 = vld [vmem:[%s326_s10] sm:$0xff]  ;;  %v2702_v4 = vld [vmem:[%s326_s10 + $0x30] sm:$0xff]  ;;  %s2255_s17 = sld [smem:[#allocation2 + $0x1]]  ;;  %s2263_s18 = sld [smem:[#allocation2 + $0x7]] }
  0x55   : > { %5484 = vst [vmem:[#allocation13_spill] sm:$0xff] %v2686_v0  ;;  %352 = vrot.lane.b32.xlu1 %v2686_v0, %s5399_s29  ;;  %350 = vrot.lane.b32.xlu0 %v2688_v1, %s5399_s29  ;;  %v2694_v2 = vld [vmem:[%s326_s10 + $0x28] sm:$0xff]  ;;  %v2696_v3 = vld [vmem:[%s326_s10 + $0x20] sm:$0xff]  ;;  %5485 = vst [vmem:[#allocation14_spill] sm:$0xff] %v2702_v4  ;;  %s2267_s19 = sld [smem:[#allocation2 + $0xa]]  ;;  %s2264_s21 = sld [smem:[#allocation2 + $0x8]] }
  0x56   : > { %v2704_v5 = vld [vmem:[%s326_s10 + $0x10] sm:$0xff]  ;;  %v2714_v6 = vld [vmem:[%s326_s10 + $0x38] sm:$0xff]  ;;  %s2256_s20 = sld [smem:[#allocation2 + $0x2]]  ;;  %v2739_v13 = vstv %s2262_s11  ;;  %v2741_v14 = vstv %s2266_s12  ;;  %s2746_s22 = sld [smem:[#allocation2 + $0xb]] }
  0x57   : > { %5486 = vst [vmem:[#allocation15_spill] sm:$0xff] %v2704_v5  ;;  %5487 = vst [vmem:[#allocation16_spill] sm:$0xff] %v2714_v6  ;;  %v2716_v7 = vld [vmem:[%s326_s10 + $0x18] sm:$0xff]  ;;  %v2748_v16 = vstv %s418_s13  ;;  %s2750_s23 = sld [smem:[#allocation4 + $0x1]]  ;;  %s2787_s25 = sld [smem:[#allocation2 + $0x3]] }
  0x58   : > { %v2756_v19 = vstv %s416_s14  ;;  %v2764_v23 = vstv %s2261_s15  ;;  %s2802_s26 = sld [smem:[#allocation2 + $0x4]]  ;;  %s2966_s8 = sld [smem:[#allocation2 + $0x5]] }
  0x59   : > { %360 = vrot.lane.b32.xlu1 %v2694_v2, %s5399_s29  ;;  %358 = vrot.lane.b32.xlu0 %v2696_v3, %s5399_s29  ;;  %v2766_v24 = vstv %s2265_s16  ;;  %s3219_s9 = sld [smem:[#allocation6 + $0x1]]  ;;  %s3221_s10 = sld [smem:[#allocation6 + $0xd]] }
  0x5a   : > { %v2774_v28 = vstv %s2255_s17  ;;  %v2776_v29 = vstv %s2263_s18  ;;  %s3225_s11 = sld [smem:[#allocation6 + $0x19]]  ;;  %s3227_s12 = sld [smem:[#allocation6 + $0x25]] }
  0x5b   : > { %v2778_v30 = vstv %s2267_s19  ;;  %v442_v32 = vmul.f32 %v2774_v28, %v2696_v3  ;;  %v570_v34 = vmul.f32 %v2776_v29, %v2696_v3  ;;  %v2791_v37 = vstv %s2264_s21  ;;  %s3232_s13 = sld [smem:[#allocation6 + $0x4]]  ;;  %s3234_s14 = sld [smem:[#allocation6 + $0x10]] }
  0x5c   : > { %v2783_v33 = vstv %s2256_s20  ;;  %v634_v38 = vmul.f32 %v2778_v30, %v2696_v3  ;;  %v566_v42 = vmul.f32 %v2776_v29, %v2688_v1  ;;  %v630_v43 = vmul.f32 %v2778_v30, %v2688_v1  ;;  %s3236_s15 = sld [smem:[#allocation6 + $0x1c]]  ;;  %s3238_s16 = sld [smem:[#allocation6 + $0x28]] }
  0x5d   : > { %362 = vrot.lane.b32.xlu1 %v2702_v4, %s5399_s29  ;;  %354 = vrot.lane.b32.xlu0 %v2704_v5, %s5399_s29  ;;  %v2805_v45 = vstv %s2746_s22  ;;  %v438_v47 = vmul.f32 %v2774_v28, %v2688_v1  ;;  %v2810_v48 = vstv %s2750_s23  ;;  %s3242_s17 = sld [smem:[#allocation6 + $0x7]]  ;;  %s3244_s18 = sld [smem:[#allocation6 + $0x13]] }
  0x5e   : > { %s3248_s19 = sld [smem:[#allocation6 + $0x1f]]  ;;  %s3250_s20 = sld [smem:[#allocation6 + $0x2b]] }
  0x5f   : > { %s3252_s21 = sld [smem:[#allocation6 + $0xa]]  ;;  %s3254_s22 = sld [smem:[#allocation6 + $0x16]] }
  0x60   : > { %s3259_s23 = sld [smem:[#allocation6 + $0x2e]]  ;;  %s3271_s30 = sld [smem:[#allocation7 + $0x1]] }
  0x61   : > { %391 = vrot.lane.b32.xlu1 %v2696_v3, %s5397_s28  ;;  %383 = vrot.lane.b32.xlu0 %v2688_v1, %s5397_s28  ;;  %s3273_s0 = sld [smem:[#allocation6 + $0xc]]  ;;  %s3278_s1 = sld [smem:[#allocation7 + $0x2]] }
  0x62   : > { %s3282_s2 = sld [smem:[#allocation7 + $0x3]]  ;;  %s5509_s3 = smov 1  }
  0x63   : > { %s3291_s4 = sld [smem:[#allocation6 + $0x2]]  ;;  %s3296_s24 = sld [smem:[#allocation6 + $0xe]] }
  0x64   : > { %s5510_s7 = smov 127   ;;  %s3303_s6 = sld [smem:[#allocation6 + $0x1a]] }
  0x65   : > { %364 = vrot.lane.b32.xlu1 %v2714_v6, %s5399_s29  ;;  %356 = vrot.lane.b32.xlu0 %v2716_v7, %s5399_s29 }
  0x69   : > { %393 = vrot.lane.b32.xlu1 %v2694_v2, %s5397_s28  ;;  %385 = vrot.lane.b32.xlu0 %v2686_v0, %s5397_s28 }
  0x6d   : > { %395 = vrot.lane.b32.xlu1 %v2702_v4, %s5397_s28  ;;  %387 = vrot.lane.b32.xlu0 %v2704_v5, %s5397_s28 }
  0x71   : > { %397 = vrot.lane.b32.xlu1 %v2714_v6, %s5397_s28  ;;  %389 = vrot.lane.b32.xlu0 %v2716_v7, %s5397_s28 }
  0xc7   : > { %v2734_v8 = vpop.permute.xlu1 %352  ;;  %v351_v9 = vpop.permute.xlu0 %350 }
  0xc8   : > { %v2744_v15 = vsel %vm374_vm0, 0.0, %v351_v9  ;;  %v2833_v9 = vsel %vm374_vm0, 0.0, %v2734_v8 }
  0xc9   : > { %v548_v25 = vmul.f32 %v2739_v13, %v2744_v15  ;;  %v612_v26 = vmul.f32 %v2741_v14, %v2744_v15  ;;  %v420_v27 = vmul.f32 %v2748_v16, %v2744_v15 }
  0xcb   : > { %v361_v10 = vpop.permute.xlu1 %360  ;;  %v359_v11 = vpop.permute.xlu0 %358  ;;  %v556_v40 = vadd.f32 %v548_v25, %v2764_v23  ;;  %v620_v41 = vadd.f32 %v612_v26, %v2766_v24  ;;  %v428_v44 = vadd.f32 %v420_v27, %v2756_v19 }
  0xcc   : > { %v2737_v12 = vsel %vm374_vm0, 0.0, %v359_v11  ;;  %v2813_v49 = vsel %vm374_vm0, 0.0, %v361_v10 }
  0xcd   : > { %v552_v17 = vmul.f32 %v2739_v13, %v2737_v12  ;;  %v424_v20 = vmul.f32 %v2748_v16, %v2737_v12  ;;  %v616_v21 = vmul.f32 %v2741_v14, %v2737_v12  ;;  %v574_v58 = vadd.f32 %v566_v42, %v556_v40 }
  0xce   : > { %v638_v59 = vadd.f32 %v630_v43, %v620_v41  ;;  %v446_v62 = vadd.f32 %v438_v47, %v428_v44  ;;  %v617_v25 = vmul.f32 %v2741_v14, %v2813_v49  ;;  %v425_v8 = vmul.f32 %v2748_v16, %v2813_v49 }
  0xcf   : > { %v2754_v18 = vpop.permute.xlu1 %362  ;;  %v2762_v22 = vpop.permute.xlu0 %354  ;;  %v560_v31 = vadd.f32 %v552_v17, %v2764_v23  ;;  %v432_v35 = vadd.f32 %v424_v20, %v2756_v19  ;;  %v624_v36 = vadd.f32 %v616_v21, %v2766_v24  ;;  %v2842_v21 = vstv %s2787_s25  ;;  %s3261_s25 = sld [smem:[#allocation6 + $0x22]] }
  0xd0   : > { %v439_v40 = vmul.f32 %v2774_v28, %v2686_v0  ;;  %v421_v41 = vmul.f32 %v2748_v16, %v2833_v9  ;;  %v2871_v42 = vsel %vm374_vm0, 0.0, %v2754_v18  ;;  %v635_v43 = vmul.f32 %v2778_v30, %v2694_v2 }
  0xd1   : > { %v578_v51 = vadd.f32 %v570_v34, %v560_v31  ;;  %v450_v52 = vadd.f32 %v442_v32, %v432_v35  ;;  %v642_v55 = vadd.f32 %v634_v38, %v624_v36  ;;  %v443_v35 = vmul.f32 %v2774_v28, %v2694_v2  ;;  %5492 = vst [vmem:[#allocation21_spill] sm:$0xff] %v2871_v42 }
  0xd2   : > { %v613_v36 = vmul.f32 %v2741_v14, %v2833_v9  ;;  %v2859_v38 = vstv %s2802_s26  ;;  %v631_v44 = vmul.f32 %v2778_v30, %v2686_v0  ;;  %v444_v47 = vmul.f32 %v2774_v28, %v2702_v4  ;;  %s3265_s26 = sld [smem:[#allocation7]] }
  0xd3   : > { %v392_v39 = vpop.permute.xlu1 %391  ;;  %v384_v46 = vpop.permute.xlu0 %383  ;;  %v636_v18 = vmul.f32 %v2778_v30, %v2702_v4 }
  0xd4   : > { %v2816_v50 = vsel %vm407_vm1, %v392_v39, 0.0  ;;  %v2825_v57 = vsel %vm407_vm1, %v384_v46, 0.0  ;;  %v625_v46 = vadd.f32 %v617_v25, %v2766_v24  ;;  %v2915_v25 = vmul.f32 %v2778_v30, %v2714_v6 }
  0xd5   : > { %v460_v53 = vmul.f32 %v2783_v33, %v2816_v50  ;;  %v588_v54 = vmul.f32 %v2791_v37, %v2816_v50  ;;  %v652_v56 = vmul.f32 %v2805_v45, %v2816_v50  ;;  %v456_v63 = vmul.f32 %v2783_v33, %v2825_v57 }
  0xd6   : > { %v584_v11 = vmul.f32 %v2791_v37, %v2825_v57  ;;  %v648_v17 = vmul.f32 %v2805_v45, %v2825_v57 }
  0xd7   : > { %v468_v60 = vadd.f32 %v460_v53, %v450_v52  ;;  %v2827_v61 = vadd.f32 %v588_v54, %v578_v51  ;;  %v2835_v10 = vadd.f32 %v652_v56, %v642_v55  ;;  %v365_v20 = vpop.permute.xlu1 %364  ;;  %v464_v27 = vadd.f32 %v456_v63, %v446_v62  ;;  %v357_v34 = vpop.permute.xlu0 %356 }
  0xd8   : > { %v2850_v31 = vadd.f32 %v584_v11, %v574_v58  ;;  %v2852_v32 = vadd.f32 %v648_v17, %v638_v59  ;;  %v572_v51 = vmul.f32 %v2776_v29, %v2702_v4  ;;  %v433_v52 = vadd.f32 %v425_v8, %v2756_v19 }
  0xd9   : > { %5488 = vst [vmem:[#allocation17_spill] sm:$0xff] %v2827_v61  ;;  %5489 = vst [vmem:[#allocation18_spill] sm:$0xff] %v2835_v10  ;;  %v2846_v26 = vmax.f32 %v468_v60, 0.0  ;;  %v2861_v39 = vmax.f32 %v464_v27, 0.0  ;;  %v2889_v53 = vsel %vm374_vm0, 0.0, %v2762_v22  ;;  %v2893_v55 = vmul.f32 %v2774_v28, %v2704_v5 }
  0xda   : > { %5490 = vst [vmem:[#allocation19_spill] sm:$0xff] %v2850_v31  ;;  %5491 = vst [vmem:[#allocation20_spill] sm:$0xff] %v2852_v32  ;;  %v568_v56 = vmul.f32 %v2776_v29, %v2704_v5  ;;  %v621_v58 = vadd.f32 %v613_v36, %v2766_v24  ;;  %v554_v59 = vmul.f32 %v2739_v13, %v2871_v42 }
  0xdb   : > { %688 = vrot.lane.b32.xlu1 %v2846_v26, %s5399_s29  ;;  %680 = vrot.lane.b32.xlu0 %v2861_v39, %s5399_s29  ;;  %v394_v54 = vpop.permute.xlu1 %393  ;;  %v632_v60 = vmul.f32 %v2778_v30, %v2704_v5  ;;  %v2904_v22 = vmul.f32 %v2774_v28, %v2714_v6  ;;  %v429_v62 = vadd.f32 %v421_v41, %v2756_v19  ;;  %v386_v11 = vpop.permute.xlu0 %385 }
  0xdc   : > { %v618_v63 = vmul.f32 %v2741_v14, %v2871_v42  ;;  %v2911_v17 = vmul.f32 %v2776_v29, %v2714_v6  ;;  %v426_v27 = vmul.f32 %v2748_v16, %v2871_v42  ;;  %v422_v8 = vmul.f32 %v2748_v16, %v2889_v53 }
  0xdd   : > { %v643_v36 = vadd.f32 %v635_v43, %v625_v46  ;;  %v2922_v41 = vsel %vm407_vm1, %v394_v54, 0.0  ;;  %v550_v32 = vmul.f32 %v2739_v13, %v2889_v53  ;;  %v451_v10 = vadd.f32 %v443_v35, %v433_v52 }
  0xde   : > { %v461_v31 = vmul.f32 %v2783_v33, %v2922_v41  ;;  %v653_v61 = vmul.f32 %v2805_v45, %v2922_v41  ;;  %v562_v6 = vadd.f32 %v554_v59, %v2764_v23  ;;  %v614_v5 = vmul.f32 %v2741_v14, %v2889_v53 }
  0xdf   : > { %v639_v4 = vadd.f32 %v631_v44, %v621_v58  ;;  %v2934_v43 = vsel %vm407_vm1, %v386_v11, 0.0  ;;  %v626_v46 = vadd.f32 %v618_v63, %v2766_v24  ;;  %v2938_v54 = vsel %vm374_vm0, 0.0, %v365_v20  ;;  %v396_v58 = vpop.permute.xlu1 %395 }
  0xe0   : > { %v469_v35 = vadd.f32 %v461_v31, %v451_v10  ;;  %v2940_v52 = vadd.f32 %v653_v61, %v643_v36  ;;  %v434_v42 = vadd.f32 %v426_v27, %v2756_v19  ;;  %v447_v0 = vadd.f32 %v439_v40, %v429_v62 }
  0xe1   : > { %v457_v59 = vmul.f32 %v2783_v33, %v2934_v43  ;;  %v649_v44 = vmul.f32 %v2805_v45, %v2934_v43  ;;  %v430_v11 = vadd.f32 %v422_v8, %v2756_v19  ;;  %v558_v63 = vadd.f32 %v550_v32, %v2764_v23 }
  0xe2   : > { %5493 = vst [vmem:[#allocation22_spill] sm:$0xff] %v2940_v52  ;;  %v2950_v20 = vsel %vm374_vm0, 0.0, %v357_v34  ;;  %v2952_v10 = vmax.f32 %v469_v35, 0.0  ;;  %v622_v61 = vadd.f32 %v614_v5, %v2766_v24  ;;  %v555_v31 = vmul.f32 %v2739_v13, %v2938_v54  ;;  %v388_v34 = vpop.permute.xlu0 %387 }
  0xe3   : > { %v465_v40 = vadd.f32 %v457_v59, %v447_v0  ;;  %v2957_v62 = vadd.f32 %v649_v44, %v639_v4  ;;  %v619_v27 = vmul.f32 %v2741_v14, %v2938_v54  ;;  %v580_v36 = vadd.f32 %v572_v51, %v562_v6 }
  0xe4   : > { %v644_v8 = vadd.f32 %v636_v18, %v626_v46  ;;  %v2962_v32 = vsel %vm407_vm1, %v396_v58, 0.0  ;;  %690 = vrot.lane.b32.xlu1 %v2952_v10, %s5399_s29  ;;  %v427_v5 = vmul.f32 %v2748_v16, %v2938_v54  ;;  %v551_v0 = vmul.f32 %v2739_v13, %v2950_v20 }
  0xe5   : > { %5494 = vst [vmem:[#allocation23_spill] sm:$0xff] %v2957_v62  ;;  %v615_v4 = vmul.f32 %v2741_v14, %v2950_v20  ;;  %v2974_v6 = vmax.f32 %v465_v40, 0.0  ;;  %v452_v51 = vadd.f32 %v444_v47, %v434_v42  ;;  %v462_v18 = vmul.f32 %v2783_v33, %v2962_v32 }
  0xe6   : > { %v590_v46 = vmul.f32 %v2791_v37, %v2962_v32  ;;  %v654_v35 = vmul.f32 %v2805_v45, %v2962_v32  ;;  %v563_v59 = vadd.f32 %v555_v31, %v2764_v23  ;;  %v576_v44 = vadd.f32 %v568_v56, %v558_v63 }
  0xe7   : > { %v640_v58 = vadd.f32 %v632_v60, %v622_v61  ;;  %v2984_v62 = vsel %vm407_vm1, %v388_v34, 0.0  ;;  %682 = vrot.lane.b32.xlu0 %v2974_v6, %s5399_s29  ;;  %v627_v14 = vadd.f32 %v619_v27, %v2766_v24  ;;  %v470_v42 = vadd.f32 %v462_v18, %v452_v51  ;;  %v398_v51 = vpop.permute.xlu1 %397 }
  0xe8   : > { %v2989_v47 = vadd.f32 %v590_v46, %v580_v36  ;;  %v2991_v40 = vadd.f32 %v654_v35, %v644_v8  ;;  %v448_v52 = vadd.f32 %v2893_v55, %v430_v11  ;;  %v458_v31 = vmul.f32 %v2783_v33, %v2984_v62 }
  0xe9   : > { %v586_v56 = vmul.f32 %v2791_v37, %v2984_v62  ;;  %v650_v60 = vmul.f32 %v2805_v45, %v2984_v62  ;;  %v423_v63 = vmul.f32 %v2748_v16, %v2950_v20  ;;  %v559_v61 = vadd.f32 %v551_v0, %v2764_v23 }
  0xea   : > { %v3003_v27 = vmax.f32 %v470_v42, 0.0  ;;  %v569_v55 = vmul.f32 %v2776_v29, %v2716_v7  ;;  %v435_v11 = vadd.f32 %v427_v5, %v2756_v19  ;;  %v466_v36 = vadd.f32 %v458_v31, %v448_v52 }
  0xeb   : > { %v3008_v8 = vadd.f32 %v586_v56, %v576_v44  ;;  %v3010_v34 = vadd.f32 %v650_v60, %v640_v58  ;;  %v623_v18 = vadd.f32 %v615_v4, %v2766_v24  ;;  %v581_v16 = vadd.f32 %v2911_v17, %v563_v59  ;;  %v390_v24 = vpop.permute.xlu0 %389 }
  0xec   : > { %v645_v46 = vadd.f32 %v2915_v25, %v627_v14  ;;  %v633_v0 = vmul.f32 %v2778_v30, %v2716_v7  ;;  %692 = vrot.lane.b32.xlu1 %v3003_v27, %s5399_s29  ;;  %v488_v52 = vmul.f32 %v2842_v21, %v2737_v12  ;;  %v506_v5 = vmul.f32 %v2859_v38, %v2696_v3 }
  0xed   : > { %v3024_v35 = vstv %s2966_s8  ;;  %v3026_v44 = vmax.f32 %v466_v36, 0.0  ;;  %v431_v17 = vadd.f32 %v423_v63, %v2756_v19  ;;  %v3030_v25 = vsel %vm407_vm1, %v398_v51, 0.0  ;;  %s3267_s8 = sld [smem:[#allocation6]] }
  0xee   : > { %v441_v30 = vmul.f32 %v2774_v28, %v2716_v7  ;;  %v577_v4 = vadd.f32 %v569_v55, %v559_v61  ;;  %v453_v59 = vadd.f32 %v2904_v22, %v435_v11  ;;  %v463_v12 = vmul.f32 %v2783_v33, %v3030_v25 }
  0xef   : > { %v591_v3 = vmul.f32 %v2791_v37, %v3030_v25  ;;  %v655_v58 = vmul.f32 %v2805_v45, %v3030_v25  ;;  %684 = vrot.lane.b32.xlu0 %v3026_v44, %s5399_s29  ;;  %v484_v19 = vmul.f32 %v2842_v21, %v2744_v15  ;;  %v489_v28 = vmul.f32 %v2842_v21, %v2813_v49 }
  0xf0   : > { %v641_v14 = vadd.f32 %v633_v0, %v623_v18  ;;  %v3048_v22 = vsel %vm407_vm1, %v390_v24, 0.0  ;;  %720 = vrot.lane.b32.xlu1 %v2846_v26, %s5397_s28  ;;  %v496_v42 = vadd.f32 %v488_v52, %v2810_v48  ;;  %v471_v31 = vadd.f32 %v463_v12, %v453_v59  ;;  %v5495_v12 = vld [vmem:[#allocation13_spill] sm:$0xff] }
  0xf1   : > { %v3053_v56 = vadd.f32 %v591_v3, %v581_v16  ;;  %v3055_v60 = vadd.f32 %v655_v58, %v645_v46  ;;  %v449_v63 = vadd.f32 %v441_v30, %v431_v17  ;;  %v459_v15 = vmul.f32 %v2783_v33, %v3048_v22 }
  0xf2   : > { %v587_v61 = vmul.f32 %v2791_v37, %v3048_v22  ;;  %v651_v55 = vmul.f32 %v2805_v45, %v3048_v22  ;;  %v485_v11 = vmul.f32 %v2842_v21, %v2833_v9  ;;  %v524_v36 = vmul.f32 %v3024_v35, %v2816_v50 }
  0xf3   : > { %v502_v51 = vmul.f32 %v2859_v38, %v2688_v1  ;;  %v3069_v18 = vmax.f32 %v471_v31, 0.0  ;;  %712 = vrot.lane.b32.xlu0 %v2861_v39, %s5397_s28  ;;  %v492_v33 = vadd.f32 %v484_v19, %v2810_v48  ;;  %v467_v16 = vadd.f32 %v459_v15, %v449_v63 }
  0xf4   : > { %v3074_v46 = vadd.f32 %v587_v61, %v577_v4  ;;  %v3076_v45 = vadd.f32 %v651_v55, %v641_v14  ;;  %v497_v0 = vadd.f32 %v489_v28, %v2810_v48  ;;  %v514_v52 = vadd.f32 %v506_v5, %v496_v42  ;;  %v5496_v42 = vld [vmem:[#allocation21_spill] sm:$0xff] }
  0xf5   : > { %v507_v50 = vmul.f32 %v2859_v38, %v2694_v2  ;;  %694 = vrot.lane.b32.xlu1 %v3069_v18, %s5399_s29  ;;  %v520_v1 = vmul.f32 %v3024_v35, %v2825_v57  ;;  %v3085_v24 = vmax.f32 %v467_v16, 0.0  ;;  %v525_v30 = vmul.f32 %v3024_v35, %v2922_v41 }
  0xf6   : > { %v532_v17 = vadd.f32 %v524_v36, %v514_v52  ;;  %v493_v4 = vadd.f32 %v485_v11, %v2810_v48  ;;  %v510_v59 = vadd.f32 %v502_v51, %v492_v33  ;;  %v503_v5 = vmul.f32 %v2859_v38, %v5495_v12  ;;  %v5497_v36 = vld [vmem:[#allocation14_spill] sm:$0xff]  ;;  %v5498_v52 = vld [vmem:[#allocation15_spill] sm:$0xff] }
  0xf7   : > { %686 = vrot.lane.b32.xlu0 %v3085_v24, %s5399_s29  ;;  %v515_v3 = vadd.f32 %v507_v50, %v497_v0  ;;  %v521_v58 = vmul.f32 %v3024_v35, %v2934_v43  ;;  %v490_v31 = vmul.f32 %v2842_v21, %v5496_v42  ;;  %v486_v55 = vmul.f32 %v2842_v21, %v2889_v53 }
  0xf8   : > { %v528_v57 = vadd.f32 %v520_v1, %v510_v59  ;;  %v3098_v19 = vmax.f32 %v532_v17, 0.0  ;;  %v511_v14 = vadd.f32 %v503_v5, %v493_v4  ;;  %v508_v51 = vmul.f32 %v2859_v38, %v5497_v36  ;;  %v5499_v5 = vld [vmem:[#allocation16_spill] sm:$0xff] }
  0xf9   : > { %722 = vrot.lane.b32.xlu1 %v2952_v10, %s5397_s28  ;;  %v533_v28 = vadd.f32 %v525_v30, %v515_v3  ;;  %v498_v11 = vadd.f32 %v490_v31, %v2810_v48  ;;  %v526_v16 = vmul.f32 %v3024_v35, %v2962_v32  ;;  %v494_v0 = vadd.f32 %v486_v55, %v2810_v48 }
  0xfa   : > { %v3106_v63 = vmax.f32 %v528_v57, 0.0  ;;  %v529_v15 = vadd.f32 %v521_v58, %v511_v14  ;;  %v504_v53 = vmul.f32 %v2859_v38, %v5498_v52  ;;  %v491_v50 = vmul.f32 %v2842_v21, %v2938_v54 }
  0xfb   : > { %714 = vrot.lane.b32.xlu0 %v2974_v6, %s5397_s28  ;;  %v3108_v61 = vmax.f32 %v533_v28, 0.0  ;;  %v516_v1 = vadd.f32 %v508_v51, %v498_v11  ;;  %v522_v17 = vmul.f32 %v3024_v35, %v2984_v62  ;;  %v487_v32 = vmul.f32 %v2842_v21, %v2950_v20  ;;  %v5500_v11 = vld [vmem:[#allocation17_spill] sm:$0xff] }
  0xfc   : > { %v3119_v33 = vmax.f32 %v529_v15, 0.0  ;;  %v512_v4 = vadd.f32 %v504_v53, %v494_v0  ;;  %v499_v59 = vadd.f32 %v491_v50, %v2810_v48  ;;  %v509_v54 = vmul.f32 %v2859_v38, %v5499_v5 }
  0xfd   : > { %760 = vrot.lane.b32.xlu1 %v3098_v19, %s5399_s29  ;;  %v534_v30 = vadd.f32 %v526_v16, %v516_v1  ;;  %v527_v62 = vmul.f32 %v3024_v35, %v3030_v25  ;;  %v495_v21 = vadd.f32 %v487_v32, %v2810_v48  ;;  %v505_v20 = vmul.f32 %v2859_v38, %v2716_v7 }
  0xfe   : > { %v530_v3 = vadd.f32 %v522_v17, %v512_v4  ;;  %v517_v58 = vadd.f32 %v509_v54, %v499_v59  ;;  %v523_v14 = vmul.f32 %v3024_v35, %v3048_v22  ;;  %v553_v7 = vmul.f32 %v2739_v13, %v2813_v49  ;;  %v5512_v59 = vld [vmem:[#allocation18_spill] sm:$0xff] }
  0xff   : > { %752 = vrot.lane.b32.xlu0 %v3106_v63, %s5399_s29  ;;  %v3143_v57 = vmax.f32 %v534_v30, 0.0  ;;  %v513_v31 = vadd.f32 %v505_v20, %v495_v21  ;;  %v549_v25 = vmul.f32 %v2739_v13, %v2833_v9  ;;  %v571_v22 = vmul.f32 %v2776_v29, %v2694_v2  ;;  %v5516_v21 = vld [vmem:[#allocation20_spill] sm:$0xff] }
 0x100   : > { %v3154_v28 = vmax.f32 %v530_v3, 0.0  ;;  %v535_v42 = vadd.f32 %v527_v62, %v517_v58  ;;  %v561_v35 = vadd.f32 %v553_v7, %v2764_v23  ;;  %v589_v15 = vmul.f32 %v2791_v37, %v2922_v41  ;;  %v5518_v58 = vld [vmem:[#allocation22_spill] sm:$0xff] }
 0x101   : > { %762 = vrot.lane.b32.xlu1 %v3108_v61, %s5399_s29  ;;  %v531_v48 = vadd.f32 %v523_v14, %v513_v31  ;;  %v557_v55 = vadd.f32 %v549_v25, %v2764_v23  ;;  %v567_v13 = vmul.f32 %v2776_v29, %v5495_v12  ;;  %v585_v2 = vmul.f32 %v2791_v37, %v2934_v43  ;;  %v5501_v23 = vld [vmem:[#allocation19_spill] sm:$0xff] }
 0x102   : > { %v3164_v38 = vmax.f32 %v535_v42, 0.0  ;;  %v579_v9 = vadd.f32 %v571_v22, %v561_v35  ;;  %v3189_v36 = vmax.f32 %v5500_v11, 0.0  ;;  %v3196_v29 = vmax.f32 %v5501_v23, 0.0  ;;  %v5520_v42 = vld [vmem:[#allocation23_spill] sm:$0xff] }
 0x103   : > { %754 = vrot.lane.b32.xlu0 %v3119_v33, %s5399_s29  ;;  %v3175_v49 = vmax.f32 %v531_v48, 0.0  ;;  %v575_v41 = vadd.f32 %v567_v13, %v557_v55  ;;  %v3215_v43 = vmax.f32 %v2989_v47, 0.0  ;;  %v3230_v0 = vmax.f32 %v3008_v8, 0.0 }
 0x104   : > { %v597_v51 = vadd.f32 %v589_v15, %v579_v9  ;;  %5502 = vst [vmem:[#allocation13_spill] sm:$0xff] %v3196_v29  ;;  %v3257_v47 = vmax.f32 %v3053_v56, 0.0  ;;  %v3276_v8 = vmax.f32 %v3074_v46, 0.0  ;;  %v3289_v56 = vstv %s3219_s9  ;;  %s3308_s9 = sld [smem:[#allocation6 + $0x26]] }
 0x105   : > { %724 = vrot.lane.b32.xlu1 %v3003_v27, %s5397_s28  ;;  %v593_v12 = vadd.f32 %v585_v2, %v575_v41  ;;  %5505 = vst [vmem:[#allocation15_spill] sm:$0xff] %v3215_v43  ;;  %5506 = vst [vmem:[#allocation16_spill] sm:$0xff] %v3230_v0  ;;  %v3294_v46 = vstv %s3221_s10  ;;  %v3299_v52 = vstv %s3225_s11  ;;  %v3306_v53 = vstv %s3227_s12  ;;  %s3362_s10 = sld [smem:[#allocation6 + $0x3]]  ;;  %s3364_s11 = sld [smem:[#allocation6 + $0xf]] }
 0x106   : > { %v3198_v16 = vmax.f32 %v597_v51, 0.0  ;;  %5507 = vst [vmem:[#allocation17_spill] sm:$0xff] %v3257_v47  ;;  %5508 = vst [vmem:[#allocation19_spill] sm:$0xff] %v3276_v8  ;;  %v3311_v50 = vstv %s3232_s13  ;;  %v3314_v1 = vstv %s3234_s14  ;;  %v3317_v17 = vstv %s3236_s15  ;;  %s3384_s12 = sld [smem:[#allocation6 + $0x1b]]  ;;  %s3386_s13 = sld [smem:[#allocation6 + $0x27]] }
 0x107   : > { %716 = vrot.lane.b32.xlu0 %v3026_v44, %s5397_s28  ;;  %v3204_v37 = vmax.f32 %v593_v12, 0.0  ;;  %v3320_v30 = vstv %s3238_s16  ;;  %v3323_v32 = vstv %s3242_s17  ;;  %v3326_v4 = vstv %s3244_s18  ;;  %s4792_s14 = sld [smem:[#allocation6 + $0x20]]  ;;  %s4794_s15 = sld [smem:[#allocation6 + $0x2c]] }
 0x108   : > { %5503 = vst [vmem:[#allocation21_spill] sm:$0xff] %v3198_v16  ;;  %5511 = vst [vmem:[#allocation24_spill] sm:$0xff] %v3326_v4  ;;  %v3329_v5 = vmax.f32 %v5512_v59, 0.0  ;;  %v3332_v54 = vstv %s3248_s19  ;;  %v3335_v3 = vstv %s3250_s20  ;;  %v3338_v62 = vstv %s3252_s21  ;;  %s4845_s16 = sld [smem:[#allocation6 + $0x15]]  ;;  %s4847_s17 = sld [smem:[#allocation6 + $0x21]] }
 0x109   : > { %726 = vrot.lane.b32.xlu1 %v3069_v18, %s5397_s28  ;;  %5504 = vst [vmem:[#allocation14_spill] sm:$0xff] %v3204_v37  ;;  %5514 = vst [vmem:[#allocation25_spill] sm:$0xff] %v3335_v3  ;;  %v3341_v20 = vmax.f32 %v5516_v21, 0.0  ;;  %v3344_v14 = vmax.f32 %v5518_v58, 0.0  ;;  %v3347_v31 = vmax.f32 %v5520_v42, 0.0  ;;  %v3352_v7 = vstv %s3254_s22  ;;  %s4861_s18 = sld [smem:[#allocation6 + $0x2d]] }
 0x10a   : > { %5513 = vst [vmem:[#allocation18_spill] sm:$0xff] %v3329_v5  ;;  %5515 = vst [vmem:[#allocation26_spill] sm:$0xff] %v3338_v62  ;;  %v3355_v48 = vmax.f32 %v2991_v40, 0.0  ;;  %v3358_v25 = vmax.f32 %v3010_v34, 0.0  ;;  %v3367_v35 = vstv %s3259_s23  ;;  %v3370_v22 = vstv %s3261_s25  ;;  %s4886_s19 = sld [smem:[#allocation6 + $0xb]]  ;;  %s4942_s20 = sld [smem:[#allocation6 + $0x17]] }
 0x10b   : > { %718 = vrot.lane.b32.xlu0 %v3085_v24, %s5397_s28  ;;  %5517 = vst [vmem:[#allocation20_spill] sm:$0xff] %v3341_v20  ;;  %5519 = vst [vmem:[#allocation22_spill] sm:$0xff] %v3344_v14  ;;  %v3373_v40 = vmax.f32 %v3055_v60, 0.0  ;;  %v3376_v34 = vstv %s3265_s26  ;;  %v3379_v15 = vstv %s3267_s8  ;;  %v3382_v55 = vstv %s3271_s30  ;;  %s4360_s30 = sld [smem:[#allocation6 + $0x8]]  ;;  %s5052_s21 = sld [smem:[#allocation6 + $0x23]] }
 0x10c   : > { %5521 = vst [vmem:[#allocation23_spill] sm:$0xff] %v3347_v31  ;;  %5522 = vst [vmem:[#allocation27_spill] sm:$0xff] %v3352_v7  ;;  %v3389_v13 = vstv %s3273_s0  ;;  %v3392_v9 = vstv %s3278_s1  ;;  %v3399_v60 = vmul.f32 %v3289_v56, %v2846_v26  ;;  %v3402_v11 = vmax.f32 %v3076_v45, 0.0  ;;  %s3752_s0 = sld [smem:[#allocation6 + $0x5]]  ;;  %s4192_s1 = sld [smem:[#allocation6 + $0x6]] }
 0x10d   : > { %764 = vrot.lane.b32.xlu1 %v3143_v57, %s5399_s29  ;;  %5523 = vst [vmem:[#allocation28_spill] sm:$0xff] %v3355_v48  ;;  %5524 = vst [vmem:[#allocation29_spill] sm:$0xff] %v3358_v25  ;;  %v3407_v51 = vstv %s3282_s2  ;;  %v3413_v23 = vstv %s3291_s4  ;;  %v3418_v12 = vstv %s3296_s24  ;;  %v1212_v45 = vmul.f32 %v3294_v46, %v2846_v26  ;;  %s4237_s2 = sld [smem:[#allocation6 + $0x11]]  ;;  %s4355_s24 = sld [smem:[#allocation6 + $0x2a]] }
 0x10e   : > { %5525 = vst [vmem:[#allocation30_spill] sm:$0xff] %v3367_v35  ;;  %5526 = vst [vmem:[#allocation31_spill] sm:$0xff] %v3370_v22  ;;  %v3421_v59 = vstv %s3303_s6  ;;  %v3424_v21 = vstv %s3308_s9  ;;  %v1438_v58 = vmul.f32 %v3299_v52, %v2846_v26  ;;  %v1664_v42 = vmul.f32 %v3306_v53, %v2846_v26  ;;  %s4253_s4 = sld [smem:[#allocation6 + $0x29]]  ;;  %s4324_s6 = sld [smem:[#allocation6 + $0x12]] }
 0x10f   : > { %756 = vrot.lane.b32.xlu0 %v3154_v28, %s5399_s29  ;;  %5527 = vst [vmem:[#allocation32_spill] sm:$0xff] %v3373_v40  ;;  %5528 = vst [vmem:[#allocation33_spill] sm:$0xff] %v3402_v11  ;;  %v3434_v22 = vmul.f32 %v3289_v56, %v2861_v39  ;;  %v3438_v35 = vmul.f32 %v3294_v46, %v2861_v39  ;;  %v3442_v7 = vmul.f32 %v3299_v52, %v2861_v39  ;;  %s5073_s22 = sld [smem:[#allocation6 + $0x2f]]  ;;  %s2538_s23 = smov 16  }
 0x110   : > { %5529 = vst [vmem:[#allocation34_spill] sm:$0xff] %v3413_v23  ;;  %5530 = vst [vmem:[#allocation35_spill] sm:$0xff] %v3418_v12  ;;  %v3446_v62 = vmul.f32 %v3306_v53, %v2861_v39  ;;  %v3450_v26 = vmul.f32 %v3289_v56, %v2952_v10  ;;  %v3468_v39 = vmul.f32 %v3289_v56, %v2974_v6  ;;  %v3494_v3 = vstv %s3386_s13  ;;  %s2539_s25 = smov 32  }
 0x111   : > { %792 = vrot.lane.b32.xlu1 %v3098_v19, %s5397_s28  ;;  %5531 = vst [vmem:[#allocation36_spill] sm:$0xff] %v3421_v59  ;;  %5532 = vst [vmem:[#allocation37_spill] sm:$0xff] %v3424_v21  ;;  %v3464_v21 = vmul.f32 %v3306_v53, %v2952_v10  ;;  %v3472_v59 = vmul.f32 %v3294_v46, %v2974_v6  ;;  %v3478_v12 = vmul.f32 %v3299_v52, %v2974_v6 }
 0x112   : > { %5533 = vst [vmem:[#allocation38_spill] sm:$0xff] %v3468_v39  ;;  %v3482_v23 = vmul.f32 %v3306_v53, %v2974_v6  ;;  %v3491_v39 = vstv %s3384_s12  ;;  %5538 = vst [vmem:[#allocation43_spill] sm:$0xff] %v3494_v3  ;;  %v3506_v6 = vmul.f32 %v3299_v52, %v3003_v27  ;;  %v3518_v3 = vmul.f32 %v3294_v46, %v3026_v44 }
 0x113   : > { %784 = vrot.lane.b32.xlu0 %v3106_v63, %s5397_s28  ;;  %5534 = vst [vmem:[#allocation39_spill] sm:$0xff] %v3472_v59  ;;  %5537 = vst [vmem:[#allocation42_spill] sm:$0xff] %v3491_v39  ;;  %v3498_v59 = vmul.f32 %v3289_v56, %v3003_v27  ;;  %v3514_v39 = vmul.f32 %v3289_v56, %v3026_v44 }
 0x114   : > { %5539 = vst [vmem:[#allocation44_spill] sm:$0xff] %v3506_v6  ;;  %5541 = vst [vmem:[#allocation46_spill] sm:$0xff] %v3518_v3  ;;  %v3528_v6 = vmul.f32 %v3306_v53, %v3026_v44  ;;  %v3542_v3 = vmul.f32 %v3299_v52, %v3069_v18 }
 0x115   : > { %766 = vrot.lane.b32.xlu1 %v3164_v38, %s5399_s29  ;;  %5540 = vst [vmem:[#allocation45_spill] sm:$0xff] %v3514_v39  ;;  %v3536_v39 = vmul.f32 %v3294_v46, %v3069_v18 }
 0x116   : > { %5543 = vst [vmem:[#allocation48_spill] sm:$0xff] %v3528_v6  ;;  %5546 = vst [vmem:[#allocation51_spill] sm:$0xff] %v3542_v3  ;;  %v3550_v6 = vmul.f32 %v3289_v56, %v3085_v24  ;;  %v3563_v3 = vmul.f32 %v3306_v53, %v3085_v24 }
 0x117   : > { %758 = vrot.lane.b32.xlu0 %v3175_v49, %s5399_s29  ;;  %5545 = vst [vmem:[#allocation50_spill] sm:$0xff] %v3536_v39 }
 0x118   : > { %5548 = vst [vmem:[#allocation53_spill] sm:$0xff] %v3550_v6  ;;  %5551 = vst [vmem:[#allocation56_spill] sm:$0xff] %v3563_v3 }
 0x119   : > { %794 = vrot.lane.b32.xlu1 %v3108_v61, %s5397_s28 }
 0x11b   : > { %786 = vrot.lane.b32.xlu0 %v3119_v33, %s5397_s28 }
 0x11d   : > { %832 = vrot.lane.b32.xlu1 %v3189_v36, %s5399_s29 }
 0x11f   : > { %824 = vrot.lane.b32.xlu0 %v3196_v29, %s5399_s29 }
 0x121   : > { %834 = vrot.lane.b32.xlu1 %v3198_v16, %s5399_s29 }
 0x123   : > { %826 = vrot.lane.b32.xlu0 %v3204_v37, %s5399_s29 }
 0x125   : > { %796 = vrot.lane.b32.xlu1 %v3143_v57, %s5397_s28 }
 0x127   : > { %788 = vrot.lane.b32.xlu0 %v3154_v28, %s5397_s28 }
 0x129   : > { %798 = vrot.lane.b32.xlu1 %v3164_v38, %s5397_s28 }
 0x12b   : > { %790 = vrot.lane.b32.xlu0 %v3175_v49, %s5397_s28 }
 0x12d   : > { %836 = vrot.lane.b32.xlu1 %v3215_v43, %s5399_s29 }
 0x12f   : > { %828 = vrot.lane.b32.xlu0 %v3230_v0, %s5399_s29 }
 0x131   : > { %864 = vrot.lane.b32.xlu1 %v3189_v36, %s5397_s28 }
 0x133   : > { %856 = vrot.lane.b32.xlu0 %v3196_v29, %s5397_s28  ;;  %s3280_s28 = sld [smem:[#allocation6 + $0x18]]  ;;  %v3488_v29 = vstv %s3364_s11 }
 0x134   : > { %5536 = vst [vmem:[#allocation41_spill] sm:$0xff] %v3488_v29  ;;  %v3524_v29 = vmul.f32 %v3299_v52, %v3026_v44  ;;  %v3546_v44 = vmul.f32 %v3306_v53, %v3069_v18 }
 0x135   : > { %838 = vrot.lane.b32.xlu1 %v3257_v47, %s5399_s29  ;;  %s3284_s29 = sld [smem:[#allocation6 + $0x24]] }
 0x136   : > { %5542 = vst [vmem:[#allocation47_spill] sm:$0xff] %v3524_v29  ;;  %5547 = vst [vmem:[#allocation52_spill] sm:$0xff] %v3546_v44 }
 0x137   : > { %830 = vrot.lane.b32.xlu0 %v3276_v8, %s5509_s3 }
 0x139   : > { %866 = vrot.lane.b32.xlu1 %v3198_v16, %s5510_s7  ;;  %v3395_v2 = vstv %s3280_s28  ;;  %v3460_v16 = vmul.f32 %v3299_v52, %v2952_v10  ;;  %s4788_s28 = sld [smem:[#allocation6 + $0x14]] }
 0x13b   : > { %858 = vrot.lane.b32.xlu0 %v3204_v37, %s5510_s7  ;;  %v3410_v41 = vstv %s3284_s29  ;;  %v3454_v37 = vmul.f32 %v3294_v46, %v2952_v10  ;;  %v3485_v10 = vstv %s3362_s10  ;;  %s4622_s29 = sld [smem:[#allocation6 + $0x9]] }
 0x13c   : > { %5535 = vst [vmem:[#allocation40_spill] sm:$0xff] %v3485_v10  ;;  %v3510_v10 = vmul.f32 %v3306_v53, %v3003_v27  ;;  %v3582_v53 = vmul.f32 %v3317_v17, %v3098_v19 }
 0x13d   : > { %904 = vrot.lane.b32.xlu1 %v3329_v5, %s5509_s3 }
 0x13e   : > { %5554 = vst [vmem:[#allocation59_spill] sm:$0xff] %v3582_v53 }
 0x13f   : > { %896 = vrot.lane.b32.xlu0 %v3341_v20, %s5509_s3 }
 0x141   : > { %906 = vrot.lane.b32.xlu1 %v3344_v14, %s5509_s3 }
 0x143   : > { %898 = vrot.lane.b32.xlu0 %v3347_v31, %s5509_s3 }
 0x145   : > { %868 = vrot.lane.b32.xlu1 %v3215_v43, %s5510_s7  ;;  %v3502_v43 = vmul.f32 %v3294_v46, %v3003_v27  ;;  %v3532_v27 = vmul.f32 %v3289_v56, %v3069_v18  ;;  %v3567_v18 = vmul.f32 %v3311_v50, %v3098_v19 }
 0x147   : > { %860 = vrot.lane.b32.xlu0 %v3230_v0, %s5510_s7  ;;  %5544 = vst [vmem:[#allocation49_spill] sm:$0xff] %v3532_v27  ;;  %v3554_v27 = vmul.f32 %v3294_v46, %v3085_v24  ;;  %5552 = vst [vmem:[#allocation57_spill] sm:$0xff] %v3567_v18  ;;  %v3586_v18 = vmul.f32 %v3320_v30, %v3098_v19 }
 0x149   : > { %870 = vrot.lane.b32.xlu1 %v3257_v47, %s5510_s7  ;;  %5549 = vst [vmem:[#allocation54_spill] sm:$0xff] %v3554_v27  ;;  %v3559_v47 = vmul.f32 %v3299_v52, %v3085_v24  ;;  %v3578_v24 = vmul.f32 %v3314_v1, %v3098_v19  ;;  %5555 = vst [vmem:[#allocation60_spill] sm:$0xff] %v3586_v18 }
 0x14b   : > { %5550 = vst [vmem:[#allocation55_spill] sm:$0xff] %v3559_v47  ;;  %862 = vrot.lane.b32.xlu0 %v3276_v8, %s5510_s7  ;;  %5553 = vst [vmem:[#allocation58_spill] sm:$0xff] %v3578_v24 }
 0x14d   : > { %v689_v0 = vpop.permute.xlu1 %688  ;;  %v681_v27 = vpop.permute.xlu0 %680  ;;  %908 = vrot.lane.b32.xlu1 %v3355_v48, %s5509_s3 }
 0x14e   : > { %v708_v39 = vsel %vm374_vm0, 0.0, %v689_v0  ;;  %v704_v52 = vsel %vm374_vm0, 0.0, %v681_v27 }
 0x14f   : > { %v968_v56 = vmul.f32 %v3379_v15, %v708_v39  ;;  %v1194_v6 = vmul.f32 %v3389_v13, %v708_v39  ;;  %v1420_v46 = vmul.f32 %v3395_v2, %v708_v39  ;;  %v1646_v0 = vmul.f32 %v3410_v41, %v708_v39  ;;  %900 = vrot.lane.b32.xlu0 %v3358_v25, %s5509_s3 }
 0x150   : > { %v964_v24 = vmul.f32 %v3379_v15, %v704_v52  ;;  %v1190_v47 = vmul.f32 %v3389_v13, %v704_v52  ;;  %v1416_v53 = vmul.f32 %v3395_v2, %v704_v52  ;;  %v1642_v19 = vmul.f32 %v3410_v41, %v704_v52 }
 0x151   : > { %v976_v39 = vadd.f32 %v968_v56, %v3376_v34  ;;  %v1202_v8 = vadd.f32 %v1194_v6, %v3382_v55  ;;  %v1428_v27 = vadd.f32 %v1420_v46, %v3392_v9  ;;  %v1654_v3 = vadd.f32 %v1646_v0, %v3407_v51  ;;  %936 = vrot.lane.b32.xlu1 %v3329_v5, %s5510_s7 }
 0x152   : > { %v972_v46 = vadd.f32 %v964_v24, %v3376_v34  ;;  %v1198_v0 = vadd.f32 %v1190_v47, %v3382_v55  ;;  %v1424_v29 = vadd.f32 %v1416_v53, %v3392_v9  ;;  %v1650_v52 = vadd.f32 %v1642_v19, %v3407_v51 }
 0x153   : > { %v3599_v18 = vadd.f32 %v3399_v60, %v976_v39  ;;  %v3601_v44 = vadd.f32 %v1212_v45, %v1202_v8  ;;  %v3603_v56 = vadd.f32 %v1438_v58, %v1428_v27  ;;  %v3605_v6 = vadd.f32 %v1664_v42, %v1654_v3  ;;  %928 = vrot.lane.b32.xlu0 %v3341_v20, %s5510_s7 }
 0x154   : > { %v3617_v8 = vmul.f32 %v3311_v50, %v3106_v63  ;;  %v3621_v3 = vmul.f32 %v3314_v1, %v3106_v63  ;;  %v3625_v60 = vmul.f32 %v3317_v17, %v3106_v63  ;;  %v3629_v47 = vmul.f32 %v3320_v30, %v3106_v63 }
 0x155   : > { %v3632_v45 = vadd.f32 %v3434_v22, %v972_v46  ;;  %v3635_v58 = vadd.f32 %v3438_v35, %v1198_v0  ;;  %v3638_v42 = vadd.f32 %v3442_v7, %v1424_v29  ;;  %v3641_v24 = vadd.f32 %v3446_v62, %v1650_v52  ;;  %910 = vrot.lane.b32.xlu1 %v3373_v40, %s5509_s3 }
 0x156   : > { %5556 = vst [vmem:[#allocation61_spill] sm:$0xff] %v3617_v8  ;;  %5557 = vst [vmem:[#allocation62_spill] sm:$0xff] %v3621_v3  ;;  %v3645_v53 = vmul.f32 %v3311_v50, %v3108_v61  ;;  %v3649_v63 = vmul.f32 %v3314_v1, %v3108_v61  ;;  %v3653_v22 = vmul.f32 %v3317_v17, %v3108_v61 }
 0x157   : > { %5558 = vst [vmem:[#allocation63_spill] sm:$0xff] %v3625_v60  ;;  %5559 = vst [vmem:[#allocation64_spill] sm:$0xff] %v3629_v47  ;;  %v3657_v35 = vmul.f32 %v3320_v30, %v3108_v61  ;;  %v3663_v29 = vmul.f32 %v3311_v50, %v3119_v33  ;;  %v3667_v62 = vmul.f32 %v3314_v1, %v3119_v33  ;;  %902 = vrot.lane.b32.xlu0 %v3402_v11, %s5509_s3  ;;  %s4251_s3 = sld [smem:[#allocation6 + $0x1d]] }
 0x158   : > { %5560 = vst [vmem:[#allocation65_spill] sm:$0xff] %v3645_v53  ;;  %5561 = vst [vmem:[#allocation66_spill] sm:$0xff] %v3649_v63  ;;  %v3671_v7 = vmul.f32 %v3317_v17, %v3119_v33  ;;  %v3675_v39 = vmul.f32 %v3320_v30, %v3119_v33  ;;  %v3681_v61 = vmul.f32 %v3311_v50, %v3143_v57  ;;  %v691_v33 = vpop.permute.xlu1 %690 }
 0x159   : > { %5562 = vst [vmem:[#allocation67_spill] sm:$0xff] %v3653_v22  ;;  %5563 = vst [vmem:[#allocation68_spill] sm:$0xff] %v3657_v35  ;;  %v3685_v27 = vmul.f32 %v3314_v1, %v3143_v57  ;;  %v3689_v19 = vmul.f32 %v3317_v17, %v3143_v57  ;;  %v3693_v46 = vmul.f32 %v3320_v30, %v3143_v57  ;;  %v709_v57 = vsel %vm374_vm0, 0.0, %v691_v33 }
 0x15a   : > { %5564 = vst [vmem:[#allocation69_spill] sm:$0xff] %v3663_v29  ;;  %5565 = vst [vmem:[#allocation70_spill] sm:$0xff] %v3667_v62  ;;  %v3697_v0 = vmul.f32 %v3311_v50, %v3154_v28  ;;  %v3701_v52 = vmul.f32 %v3314_v1, %v3154_v28  ;;  %v1421_v33 = vmul.f32 %v3395_v2, %v709_v57  ;;  %938 = vrot.lane.b32.xlu1 %v3344_v14, %s5510_s7 }
 0x15b   : > { %5566 = vst [vmem:[#allocation71_spill] sm:$0xff] %v3671_v7  ;;  %5567 = vst [vmem:[#allocation72_spill] sm:$0xff] %v3675_v39  ;;  %v3746_v20 = vmul.f32 %v3317_v17, %v3175_v49  ;;  %930 = vrot.lane.b32.xlu0 %v3347_v31, %s5510_s7 }
 0x15c   : > { %5568 = vst [vmem:[#allocation73_spill] sm:$0xff] %v3681_v61  ;;  %5569 = vst [vmem:[#allocation74_spill] sm:$0xff] %v3685_v27  ;;  %v3705_v27 = vmul.f32 %v3317_v17, %v3154_v28  ;;  %v3742_v61 = vmul.f32 %v3314_v1, %v3175_v49  ;;  %v1429_v5 = vadd.f32 %v1421_v33, %v3392_v9 }
 0x15d   : > { %5570 = vst [vmem:[#allocation75_spill] sm:$0xff] %v3689_v19  ;;  %5571 = vst [vmem:[#allocation76_spill] sm:$0xff] %v3693_v46  ;;  %v3709_v19 = vmul.f32 %v3320_v30, %v3154_v28  ;;  %v3714_v46 = vmul.f32 %v3311_v50, %v3164_v38  ;;  %v969_v28 = vmul.f32 %v3379_v15, %v709_v57 }
 0x15e   : > { %5572 = vst [vmem:[#allocation77_spill] sm:$0xff] %v3697_v0  ;;  %5573 = vst [vmem:[#allocation78_spill] sm:$0xff] %v3701_v52  ;;  %v3718_v0 = vmul.f32 %v3314_v1, %v3164_v38  ;;  %v3722_v52 = vmul.f32 %v3317_v17, %v3164_v38  ;;  %v3757_v1 = vmul.f32 %v3320_v30, %v3175_v49  ;;  %940 = vrot.lane.b32.xlu1 %v3355_v48, %s5510_s7 }
 0x15f   : > { %5574 = vst [vmem:[#allocation79_spill] sm:$0xff] %v3705_v27  ;;  %5575 = vst [vmem:[#allocation80_spill] sm:$0xff] %v3709_v19  ;;  %v1195_v19 = vmul.f32 %v3389_v13, %v709_v57  ;;  %v1647_v27 = vmul.f32 %v3410_v41, %v709_v57  ;;  %v977_v57 = vadd.f32 %v969_v28, %v3376_v34  ;;  %932 = vrot.lane.b32.xlu0 %v3358_v25, %s5510_s7 }
 0x160   : > { %5576 = vst [vmem:[#allocation81_spill] sm:$0xff] %v3714_v46  ;;  %5577 = vst [vmem:[#allocation82_spill] sm:$0xff] %v3718_v0  ;;  %v683_v46 = vpop.permute.xlu0 %682  ;;  %v3734_v0 = vmul.f32 %v3320_v30, %v3164_v38  ;;  %v3761_v17 = vmul.f32 %v3323_v32, %v3189_v36  ;;  %v3765_v28 = vmul.f32 %v3326_v4, %v3189_v36  ;;  %v3827_v48 = vstv %s3752_s0 }
 0x161   : > { %5578 = vst [vmem:[#allocation83_spill] sm:$0xff] %v3722_v52  ;;  %v3738_v52 = vmul.f32 %v3311_v50, %v3175_v49  ;;  %5581 = vst [vmem:[#allocation86_spill] sm:$0xff] %v3742_v61  ;;  %v1203_v14 = vadd.f32 %v1195_v19, %v3382_v55  ;;  %v1655_v38 = vadd.f32 %v1647_v27, %v3407_v51  ;;  %v705_v50 = vsel %vm374_vm0, 0.0, %v683_v46 }
 0x162   : > { %5579 = vst [vmem:[#allocation84_spill] sm:$0xff] %v3734_v0  ;;  %5582 = vst [vmem:[#allocation87_spill] sm:$0xff] %v3746_v20  ;;  %v965_v27 = vmul.f32 %v3379_v15, %v705_v50  ;;  %v1191_v19 = vmul.f32 %v3389_v13, %v705_v50  ;;  %v1417_v46 = vmul.f32 %v3395_v2, %v705_v50  ;;  %942 = vrot.lane.b32.xlu1 %v3373_v40, %s5510_s7 }
 0x163   : > { %5580 = vst [vmem:[#allocation85_spill] sm:$0xff] %v3738_v52  ;;  %5583 = vst [vmem:[#allocation88_spill] sm:$0xff] %v3757_v1  ;;  %v1643_v49 = vmul.f32 %v3410_v41, %v705_v50  ;;  %v3776_v30 = vadd.f32 %v3450_v26, %v977_v57  ;;  %v3779_v33 = vadd.f32 %v3454_v37, %v1203_v14  ;;  %v693_v52 = vpop.permute.xlu1 %692  ;;  %v5589_v14 = vld [vmem:[#allocation13_spill] sm:$0xff]  ;;  %934 = vrot.lane.b32.xlu0 %v3402_v11, %s5510_s7  ;;  %s4326_s7 = sld [smem:[#allocation6 + $0x1e]] }
 0x164   : > { %5584 = vst [vmem:[#allocation89_spill] sm:$0xff] %v3761_v17  ;;  %5585 = vst [vmem:[#allocation90_spill] sm:$0xff] %v3765_v28  ;;  %v3782_v28 = vadd.f32 %v3460_v16, %v1429_v5  ;;  %v3785_v17 = vadd.f32 %v3464_v21, %v1655_v38  ;;  %v973_v1 = vadd.f32 %v965_v27, %v3376_v34  ;;  %v710_v26 = vsel %vm374_vm0, 0.0, %v693_v52  ;;  %v5587_v16 = vld [vmem:[#allocation25_spill] sm:$0xff] }
 0x165   : > { %v1199_v20 = vadd.f32 %v1191_v19, %v3382_v55  ;;  %v1425_v50 = vadd.f32 %v1417_v46, %v3392_v9  ;;  %v1651_v61 = vadd.f32 %v1643_v49, %v3407_v51  ;;  %v3794_v37 = vmul.f32 %v3332_v54, %v3189_v36  ;;  %v685_v19 = vpop.permute.xlu0 %684  ;;  %v5592_v49 = vld [vmem:[#allocation39_spill] sm:$0xff] }
 0x166   : > { %v3798_v5 = vmul.f32 %v5587_v16, %v3189_v36  ;;  %v3802_v21 = vmul.f32 %v3323_v32, %v5589_v14  ;;  %v970_v57 = vmul.f32 %v3379_v15, %v710_v26  ;;  %v1196_v52 = vmul.f32 %v3389_v13, %v710_v26  ;;  %v5591_v36 = vld [vmem:[#allocation38_spill] sm:$0xff] }
 0x167   : > { %5586 = vst [vmem:[#allocation91_spill] sm:$0xff] %v3794_v37  ;;  %v1422_v38 = vmul.f32 %v3395_v2, %v710_v26  ;;  %v1648_v27 = vmul.f32 %v3410_v41, %v710_v26  ;;  %v3813_v46 = vadd.f32 %v5591_v36, %v973_v1  ;;  %v3819_v25 = vadd.f32 %v3478_v12, %v1425_v50  ;;  %v721_v0 = vpop.permute.xlu1 %720 }
 0x168   : > { %5588 = vst [vmem:[#allocation25_spill] sm:$0xff] %v3798_v5  ;;  %5590 = vst [vmem:[#allocation13_spill] sm:$0xff] %v3802_v21  ;;  %v3816_v21 = vadd.f32 %v5592_v49, %v1199_v20  ;;  %v3822_v5 = vadd.f32 %v3482_v23, %v1651_v61  ;;  %v978_v37 = vadd.f32 %v970_v57, %v3376_v34  ;;  %v706_v12 = vsel %vm374_vm0, 0.0, %v685_v19  ;;  %v5594_v49 = vld [vmem:[#allocation34_spill] sm:$0xff]  ;;  %v5597_v19 = vld [vmem:[#allocation37_spill] sm:$0xff] }
 0x169   : > { %v1204_v26 = vadd.f32 %v1196_v52, %v3382_v55  ;;  %v3831_v1 = vmul.f32 %v3326_v4, %v5589_v14  ;;  %v1430_v20 = vadd.f32 %v1422_v38, %v3392_v9  ;;  %v1656_v36 = vadd.f32 %v1648_v27, %v3407_v51  ;;  %v5595_v38 = vld [vmem:[#allocation35_spill] sm:$0xff]  ;;  %v5596_v27 = vld [vmem:[#allocation36_spill] sm:$0xff] }
 0x16a   : > { %v740_v23 = vsel %vm407_vm1, %v721_v0, 0.0  ;;  %v966_v61 = vmul.f32 %v3379_v15, %v706_v12  ;;  %v1192_v50 = vmul.f32 %v3389_v13, %v706_v12  ;;  %v1418_v57 = vmul.f32 %v3395_v2, %v706_v12  ;;  %v713_v0 = vpop.permute.xlu0 %712 }
 0x16b   : > { %5593 = vst [vmem:[#allocation38_spill] sm:$0xff] %v3831_v1  ;;  %v1644_v52 = vmul.f32 %v3410_v41, %v706_v12  ;;  %v1004_v40 = vmul.f32 %v5594_v49, %v740_v23  ;;  %v1230_v1 = vmul.f32 %v5595_v38, %v740_v23  ;;  %v1456_v31 = vmul.f32 %v5596_v27, %v740_v23 }
 0x16c   : > { %v1682_v39 = vmul.f32 %v5597_v19, %v740_v23  ;;  %v974_v7 = vadd.f32 %v966_v61, %v3376_v34  ;;  %v1200_v62 = vadd.f32 %v1192_v50, %v3382_v55  ;;  %v3850_v29 = vadd.f32 %v1418_v57, %v3392_v9  ;;  %v695_v61 = vpop.permute.xlu1 %694 }
 0x16d   : > { %v3853_v12 = vadd.f32 %v1644_v52, %v3407_v51  ;;  %v3856_v11 = vadd.f32 %v1004_v40, %v3599_v18  ;;  %v3859_v35 = vadd.f32 %v1230_v1, %v3601_v44  ;;  %v3862_v22 = vadd.f32 %v1456_v31, %v3603_v56 }
 0x16e   : > { %v3865_v23 = vadd.f32 %v1682_v39, %v3605_v6  ;;  %v736_v50 = vsel %vm407_vm1, %v713_v0, 0.0  ;;  %v711_v57 = vsel %vm374_vm0, 0.0, %v695_v61  ;;  %v3870_v52 = vadd.f32 %v3498_v59, %v978_v37  ;;  %v687_v37 = vpop.permute.xlu0 %686 }
 0x16f   : > { %v3873_v40 = vadd.f32 %v3502_v43, %v1204_v26  ;;  %v1000_v44 = vmul.f32 %v5594_v49, %v736_v50  ;;  %v1226_v18 = vmul.f32 %v5595_v38, %v736_v50  ;;  %v1452_v31 = vmul.f32 %v5596_v27, %v736_v50 }
 0x170   : > { %v1678_v56 = vmul.f32 %v5597_v19, %v736_v50  ;;  %v971_v6 = vmul.f32 %v3379_v15, %v711_v57  ;;  %v1197_v39 = vmul.f32 %v3389_v13, %v711_v57  ;;  %v1423_v1 = vmul.f32 %v3395_v2, %v711_v57  ;;  %v723_v50 = vpop.permute.xlu1 %722 }
 0x171   : > { %v1649_v59 = vmul.f32 %v3410_v41, %v711_v57  ;;  %v3884_v43 = vadd.f32 %v1000_v44, %v3632_v45  ;;  %v3887_v26 = vadd.f32 %v1226_v18, %v3635_v58  ;;  %v3890_v0 = vadd.f32 %v1452_v31, %v3638_v42  ;;  %v5598_v44 = vld [vmem:[#allocation44_spill] sm:$0xff] }
 0x172   : > { %v3893_v61 = vadd.f32 %v1678_v56, %v3641_v24  ;;  %v3896_v63 = vadd.f32 %v971_v6, %v3376_v34  ;;  %v3899_v53 = vadd.f32 %v1197_v39, %v3382_v55  ;;  %v3902_v57 = vadd.f32 %v1423_v1, %v3392_v9  ;;  %v715_v1 = vpop.permute.xlu0 %714 }
 0x173   : > { %v3905_v45 = vadd.f32 %v1649_v59, %v3407_v51  ;;  %v707_v58 = vsel %vm374_vm0, 0.0, %v687_v37  ;;  %v741_v42 = vsel %vm407_vm1, %v723_v50, 0.0  ;;  %v3910_v24 = vadd.f32 %v5598_v44, %v1430_v20 }
 0x174   : > { %v3913_v18 = vadd.f32 %v3510_v10, %v1656_v36  ;;  %v967_v31 = vmul.f32 %v3379_v15, %v707_v58  ;;  %v1193_v56 = vmul.f32 %v3389_v13, %v707_v58  ;;  %v1419_v6 = vmul.f32 %v3395_v2, %v707_v58  ;;  %v761_v44 = vpop.permute.xlu1 %760 }
 0x175   : > { %v1645_v39 = vmul.f32 %v3410_v41, %v707_v58  ;;  %v1005_v59 = vmul.f32 %v5594_v49, %v741_v42  ;;  %v1231_v37 = vmul.f32 %v5595_v38, %v741_v42  ;;  %v1457_v50 = vmul.f32 %v5596_v27, %v741_v42 }
 0x176   : > { %v1683_v20 = vmul.f32 %v5597_v19, %v741_v42  ;;  %v3924_v10 = vadd.f32 %v967_v31, %v3376_v34  ;;  %v3927_v15 = vadd.f32 %v1193_v56, %v3382_v55  ;;  %v3930_v13 = vadd.f32 %v1419_v6, %v3392_v9  ;;  %v753_v55 = vpop.permute.xlu0 %752  ;;  %v5599_v56 = vld [vmem:[#allocation45_spill] sm:$0xff]  ;;  %v5600_v9 = vld [vmem:[#allocation46_spill] sm:$0xff] }
 0x177   : > { %v3933_v2 = vadd.f32 %v1645_v39, %v3407_v51  ;;  %v1013_v41 = vadd.f32 %v1005_v59, %v3776_v30  ;;  %v1239_v36 = vadd.f32 %v1231_v37, %v3779_v33  ;;  %v1465_v58 = vadd.f32 %v1457_v50, %v3782_v28  ;;  %v5601_v39 = vld [vmem:[#allocation40_spill] sm:$0xff]  ;;  %v5602_v59 = vld [vmem:[#allocation41_spill] sm:$0xff]  ;;  %v5603_v50 = vld [vmem:[#allocation42_spill] sm:$0xff] }
 0x178   : > { %v1691_v42 = vadd.f32 %v1683_v20, %v3785_v17  ;;  %v737_v34 = vsel %vm407_vm1, %v715_v1, 0.0  ;;  %v780_v31 = vsel %vm374_vm0, 0.0, %v761_v44  ;;  %v3942_v47 = vadd.f32 %v5599_v56, %v974_v7  ;;  %v763_v17 = vpop.permute.xlu1 %762  ;;  %v5604_v7 = vld [vmem:[#allocation43_spill] sm:$0xff] }
 0x179   : > { %v3945_v6 = vadd.f32 %v5600_v9, %v1200_v62  ;;  %v1001_v51 = vmul.f32 %v5594_v49, %v737_v34  ;;  %v1227_v30 = vmul.f32 %v5595_v38, %v737_v34  ;;  %v1453_v33 = vmul.f32 %v5596_v27, %v737_v34 }
 0x17a   : > { %v1679_v28 = vmul.f32 %v5597_v19, %v737_v34  ;;  %v1022_v1 = vmul.f32 %v5601_v39, %v780_v31  ;;  %v1248_v37 = vmul.f32 %v5602_v59, %v780_v31  ;;  %v1474_v20 = vmul.f32 %v5603_v50, %v780_v31 }
 0x17b   : > { %v1700_v44 = vmul.f32 %v5604_v7, %v780_v31  ;;  %v1009_v62 = vadd.f32 %v1001_v51, %v3813_v46  ;;  %v1235_v56 = vadd.f32 %v1227_v30, %v3816_v21  ;;  %v1461_v9 = vadd.f32 %v1453_v33, %v3819_v25  ;;  %v755_v31 = vpop.permute.xlu0 %754 }
 0x17c   : > { %v1687_v60 = vadd.f32 %v1679_v28, %v3822_v5  ;;  %v3960_v3 = vadd.f32 %v1022_v1, %v3856_v11  ;;  %v3963_v34 = vadd.f32 %v1248_v37, %v3859_v35  ;;  %v3966_v4 = vadd.f32 %v1474_v20, %v3862_v22  ;;  %v725_v5 = vpop.permute.xlu1 %724  ;;  %v5605_v11 = vld [vmem:[#allocation47_spill] sm:$0xff] }
 0x17d   : > { %v3969_v8 = vadd.f32 %v1700_v44, %v3865_v23  ;;  %v776_v46 = vsel %vm374_vm0, 0.0, %v753_v55  ;;  %v781_v21 = vsel %vm374_vm0, 0.0, %v763_v17  ;;  %v777_v25 = vsel %vm374_vm0, 0.0, %v755_v31 }
 0x17e   : > { %v1444_v51 = vadd.f32 %v5605_v11, %v3850_v29  ;;  %v1018_v35 = vmul.f32 %v5601_v39, %v776_v46  ;;  %v1244_v30 = vmul.f32 %v5602_v59, %v776_v46  ;;  %v1470_v22 = vmul.f32 %v5603_v50, %v776_v46 }
 0x17f   : > { %v1696_v23 = vmul.f32 %v5604_v7, %v776_v46  ;;  %v1023_v33 = vmul.f32 %v5601_v39, %v781_v21  ;;  %v1249_v55 = vmul.f32 %v5602_v59, %v781_v21  ;;  %v1475_v28 = vmul.f32 %v5603_v50, %v781_v21  ;;  %v717_v44 = vpop.permute.xlu0 %716 }
 0x180   : > { %v1701_v17 = vmul.f32 %v5604_v7, %v781_v21  ;;  %v3985_v1 = vadd.f32 %v1018_v35, %v3884_v43  ;;  %v3988_v29 = vadd.f32 %v1244_v30, %v3887_v26  ;;  %v3991_v37 = vadd.f32 %v1470_v22, %v3890_v0  ;;  %v727_v43 = vpop.permute.xlu1 %726 }
 0x181   : > { %v3994_v20 = vadd.f32 %v1696_v23, %v3893_v61  ;;  %v3996_v31 = vadd.f32 %v1023_v33, %v1013_v41  ;;  %v3998_v46 = vadd.f32 %v1249_v55, %v1239_v36  ;;  %v4000_v11 = vadd.f32 %v1475_v28, %v1465_v58  ;;  %v5607_v41 = vld [vmem:[#allocation48_spill] sm:$0xff]  ;;  %v5608_v58 = vld [vmem:[#allocation49_spill] sm:$0xff] }
 0x182   : > { %v4002_v21 = vadd.f32 %v1701_v17, %v1691_v42  ;;  %v1019_v35 = vmul.f32 %v5601_v39, %v777_v25  ;;  %v1245_v26 = vmul.f32 %v5602_v59, %v777_v25  ;;  %v1471_v0 = vmul.f32 %v5603_v50, %v777_v25 }
 0x183   : > { %v1697_v30 = vmul.f32 %v5604_v7, %v777_v25  ;;  %v742_v61 = vsel %vm407_vm1, %v725_v5, 0.0  ;;  %v1670_v22 = vadd.f32 %v5607_v41, %v3853_v12  ;;  %v738_v36 = vsel %vm407_vm1, %v717_v44, 0.0  ;;  %v719_v17 = vpop.permute.xlu0 %718 }
 0x184   : > { %5606 = vst [vmem:[#allocation39_spill] sm:$0xff] %v4002_v21  ;;  %v997_v42 = vadd.f32 %v5608_v58, %v3896_v63  ;;  %v4014_v23 = vadd.f32 %v1019_v35, %v1009_v62  ;;  %v4016_v33 = vadd.f32 %v1245_v26, %v1235_v56  ;;  %v4018_v55 = vadd.f32 %v1471_v0, %v1461_v9  ;;  %v765_v41 = vpop.permute.xlu1 %764 }
 0x185   : > { %v4020_v28 = vadd.f32 %v1697_v30, %v1687_v60  ;;  %v1006_v25 = vmul.f32 %v5594_v49, %v742_v61  ;;  %v1232_v5 = vmul.f32 %v5595_v38, %v742_v61  ;;  %v1458_v12 = vmul.f32 %v5596_v27, %v742_v61 }
 0x186   : > { %5609 = vst [vmem:[#allocation34_spill] sm:$0xff] %v4014_v23  ;;  %5610 = vst [vmem:[#allocation35_spill] sm:$0xff] %v4016_v33  ;;  %v1684_v44 = vmul.f32 %v5597_v19, %v742_v61  ;;  %v1002_v63 = vmul.f32 %v5594_v49, %v738_v36  ;;  %v1228_v62 = vmul.f32 %v5595_v38, %v738_v36  ;;  %v5613_v33 = vld [vmem:[#allocation50_spill] sm:$0xff] }
 0x187   : > { %5611 = vst [vmem:[#allocation36_spill] sm:$0xff] %v4018_v55  ;;  %5612 = vst [vmem:[#allocation37_spill] sm:$0xff] %v4020_v28  ;;  %v1454_v56 = vmul.f32 %v5596_v27, %v738_v36  ;;  %v1680_v9 = vmul.f32 %v5597_v19, %v738_v36  ;;  %v1014_v60 = vadd.f32 %v1006_v25, %v3870_v52  ;;  %v757_v55 = vpop.permute.xlu0 %756  ;;  %v5614_v36 = vld [vmem:[#allocation51_spill] sm:$0xff]  ;;  %v5615_v52 = vld [vmem:[#allocation52_spill] sm:$0xff] }
 0x188   : > { %v1240_v35 = vadd.f32 %v1232_v5, %v3873_v40  ;;  %v1466_v26 = vadd.f32 %v1458_v12, %v3910_v24  ;;  %v1692_v0 = vadd.f32 %v1684_v44, %v3913_v18  ;;  %v1010_v30 = vadd.f32 %v1002_v63, %v3942_v47  ;;  %v793_v25 = vpop.permute.xlu1 %792  ;;  %v5618_v5 = vld [vmem:[#allocation55_spill] sm:$0xff] }
 0x189   : > { %v1236_v61 = vadd.f32 %v1228_v62, %v3945_v6  ;;  %v1462_v58 = vadd.f32 %v1454_v56, %v1444_v51  ;;  %v1688_v28 = vadd.f32 %v1680_v9, %v1670_v22  ;;  %v1223_v23 = vadd.f32 %v5613_v33, %v3899_v53  ;;  %v5616_v22 = vld [vmem:[#allocation53_spill] sm:$0xff]  ;;  %v5617_v33 = vld [vmem:[#allocation54_spill] sm:$0xff] }
 0x18a   : > { %v1449_v21 = vadd.f32 %v5614_v36, %v3902_v57  ;;  %v1675_v40 = vadd.f32 %v5615_v52, %v3905_v45  ;;  %v743_v24 = vsel %vm407_vm1, %v727_v43, 0.0  ;;  %v993_v53 = vadd.f32 %v5616_v22, %v3924_v10  ;;  %v5619_v43 = vld [vmem:[#allocation56_spill] sm:$0xff] }
 0x18b   : > { %v1007_v18 = vmul.f32 %v5594_v49, %v743_v24  ;;  %v1233_v47 = vmul.f32 %v5595_v38, %v743_v24  ;;  %v1459_v6 = vmul.f32 %v5596_v27, %v743_v24  ;;  %v1685_v51 = vmul.f32 %v5597_v19, %v743_v24  ;;  %v785_v9 = vpop.permute.xlu0 %784 }
 0x18c   : > { %v1219_v57 = vadd.f32 %v5617_v33, %v3927_v15  ;;  %v1445_v45 = vadd.f32 %v5618_v5, %v3930_v13  ;;  %v1671_v12 = vadd.f32 %v5619_v43, %v3933_v2  ;;  %v739_v10 = vsel %vm407_vm1, %v719_v17, 0.0  ;;  %v767_v52 = vpop.permute.xlu1 %766  ;;  %v5620_v5 = vld [vmem:[#allocation57_spill] sm:$0xff] }
 0x18d   : > { %v4055_v44 = vadd.f32 %v1007_v18, %v997_v42  ;;  %v4057_v63 = vadd.f32 %v1233_v47, %v1223_v23  ;;  %v4059_v62 = vadd.f32 %v1459_v6, %v1449_v21  ;;  %v4061_v56 = vadd.f32 %v1685_v51, %v1675_v40 }
 0x18e   : > { %v782_v36 = vsel %vm374_vm0, 0.0, %v765_v41  ;;  %v778_v15 = vsel %vm374_vm0, 0.0, %v757_v55  ;;  %v4067_v13 = vsel %vm407_vm1, %v793_v25, 0.0  ;;  %v1003_v2 = vmul.f32 %v5594_v49, %v739_v10 }
 0x18f   : > { %v1229_v42 = vmul.f32 %v5595_v38, %v739_v10  ;;  %v1455_v21 = vmul.f32 %v5596_v27, %v739_v10  ;;  %v1681_v23 = vmul.f32 %v5597_v19, %v739_v10  ;;  %v1024_v40 = vmul.f32 %v5601_v39, %v782_v36  ;;  %v759_v38 = vpop.permute.xlu0 %758 }
 0x190   : > { %v1250_v17 = vmul.f32 %v5602_v59, %v782_v36  ;;  %v1476_v41 = vmul.f32 %v5603_v50, %v782_v36  ;;  %v1702_v55 = vmul.f32 %v5604_v7, %v782_v36  ;;  %v4077_v24 = vadd.f32 %v1003_v2, %v993_v53  ;;  %v795_v51 = vpop.permute.xlu1 %794  ;;  %v5622_v2 = vld [vmem:[#allocation59_spill] sm:$0xff] }
 0x191   : > { %v4079_v25 = vadd.f32 %v1229_v42, %v1219_v57  ;;  %v4081_v18 = vadd.f32 %v1455_v21, %v1445_v45  ;;  %v4083_v49 = vadd.f32 %v1681_v23, %v1671_v12  ;;  %v4085_v27 = vadd.f32 %v1024_v40, %v1014_v60 }
 0x192   : > { %v4087_v19 = vadd.f32 %v1250_v17, %v1240_v35  ;;  %v4089_v47 = vadd.f32 %v1476_v41, %v1466_v26  ;;  %v4091_v6 = vadd.f32 %v1702_v55, %v1692_v0  ;;  %v1020_v22 = vmul.f32 %v5601_v39, %v778_v15  ;;  %v5621_v35 = vld [vmem:[#allocation58_spill] sm:$0xff]  ;;  %v5628_v17 = vld [vmem:[#allocation24_spill] sm:$0xff] }
 0x193   : > { %v1246_v53 = vmul.f32 %v5602_v59, %v778_v15  ;;  %v1472_v33 = vmul.f32 %v5603_v50, %v778_v15  ;;  %v1698_v57 = vmul.f32 %v5604_v7, %v778_v15  ;;  %v1048_v45 = vadd.f32 %v5620_v5, %v3960_v3  ;;  %v4117_v3 = vpop.permute.xlu0 %786  ;;  %v5630_v55 = vld [vmem:[#allocation62_spill] sm:$0xff] }
 0x194   : > { %v1058_v60 = vmul.f32 %v3827_v48, %v4067_v13  ;;  %v4103_v26 = vadd.f32 %v5621_v35, %v3963_v34  ;;  %v4107_v0 = vmul.f32 %v3332_v54, %v5589_v14  ;;  %v4109_v43 = vadd.f32 %v1020_v22, %v1010_v30  ;;  %v4125_v42 = vpop.permute.xlu1 %832  ;;  %v5635_v5 = vld [vmem:[#allocation14_spill] sm:$0xff] }
 0x195   : > { %v4111_v12 = vadd.f32 %v1246_v53, %v1236_v61  ;;  %v4113_v10 = vadd.f32 %v1472_v33, %v1462_v58  ;;  %v4115_v36 = vadd.f32 %v1698_v57, %v1688_v28  ;;  %v4123_v34 = vadd.f32 %v5622_v2, %v3966_v4  ;;  %v5624_v61 = vld [vmem:[#allocation21_spill] sm:$0xff]  ;;  %v5626_v28 = vld [vmem:[#allocation60_spill] sm:$0xff] }
 0x196   : > { %v4119_v15 = vadd.f32 %v1058_v60, %v1048_v45  ;;  %v4129_v30 = vmul.f32 %v5587_v16, %v5589_v14  ;;  %v4133_v58 = vmul.f32 %v3323_v32, %v5624_v61  ;;  %v4137_v21 = vadd.f32 %v5626_v28, %v3969_v8  ;;  %v5627_v4 = vld [vmem:[#allocation61_spill] sm:$0xff]  ;;  %v5634_v33 = vld [vmem:[#allocation64_spill] sm:$0xff] }
 0x197   : > { %v4140_v23 = vsel %vm407_vm1, %v785_v9, 0.0  ;;  %v1044_v40 = vadd.f32 %v5627_v4, %v3985_v1  ;;  %v4146_v41 = vmul.f32 %v5628_v17, %v5624_v61  ;;  %v4152_v22 = vadd.f32 %v5630_v55, %v3988_v29  ;;  %v5633_v1 = vld [vmem:[#allocation63_spill] sm:$0xff]  ;;  %v825_v2 = vpop.permute.xlu0 %824 }
 0x198   : > { %5623 = vst [vmem:[#allocation44_spill] sm:$0xff] %v4129_v30  ;;  %5625 = vst [vmem:[#allocation45_spill] sm:$0xff] %v4133_v58  ;;  %v1054_v14 = vmul.f32 %v3827_v48, %v4140_v23  ;;  %v4156_v8 = vmul.f32 %v3332_v54, %v5624_v61  ;;  %v4160_v9 = vmul.f32 %v5587_v16, %v5624_v61  ;;  %v783_v35 = vsel %vm374_vm0, 0.0, %v767_v52 }
 0x199   : > { %5629 = vst [vmem:[#allocation46_spill] sm:$0xff] %v4146_v41  ;;  %v4164_v53 = vadd.f32 %v5633_v1, %v3991_v37  ;;  %v4168_v57 = vadd.f32 %v5634_v33, %v3994_v20  ;;  %v4172_v29 = vmul.f32 %v3323_v32, %v5635_v5  ;;  %v4176_v45 = vmul.f32 %v5628_v17, %v5635_v5  ;;  %v5642_v1 = vld [vmem:[#allocation65_spill] sm:$0xff]  ;;  %v5687_v41 = vld [vmem:[#allocation28_spill] sm:$0xff] }
 0x19a   : > { %5631 = vst [vmem:[#allocation40_spill] sm:$0xff] %v4156_v8  ;;  %5632 = vst [vmem:[#allocation41_spill] sm:$0xff] %v4160_v9  ;;  %v4178_v60 = vadd.f32 %v1054_v14, %v1044_v40  ;;  %v4183_v37 = vmul.f32 %v3332_v54, %v5635_v5  ;;  %v4187_v20 = vmul.f32 %v5587_v16, %v5635_v5  ;;  %v5640_v40 = vld [vmem:[#allocation15_spill] sm:$0xff]  ;;  %v779_v55 = vsel %vm374_vm0, 0.0, %v759_v38  ;;  %v835_v5 = vpop.permute.xlu1 %834 }
 0x19b   : > { %5636 = vst [vmem:[#allocation42_spill] sm:$0xff] %v4172_v29  ;;  %5637 = vst [vmem:[#allocation43_spill] sm:$0xff] %v4176_v45  ;;  %v1025_v61 = vmul.f32 %v5601_v39, %v783_v35  ;;  %v1251_v28 = vmul.f32 %v5602_v59, %v783_v35  ;;  %v1477_v4 = vmul.f32 %v5603_v50, %v783_v35  ;;  %v4284_v9 = vstv %s4192_s1  ;;  %s2540_s1 = smov 48  }
 0x19c   : > { %5638 = vst [vmem:[#allocation47_spill] sm:$0xff] %v4183_v37  ;;  %5639 = vst [vmem:[#allocation48_spill] sm:$0xff] %v4187_v20  ;;  %v4196_v52 = vmul.f32 %v3323_v32, %v5640_v40  ;;  %v1703_v14 = vmul.f32 %v5604_v7, %v783_v35  ;;  %v1049_v33 = vadd.f32 %v5642_v1, %v3996_v31  ;;  %v4436_v58 = vstv %s4326_s7 }
 0x19d   : > { %v4204_v20 = vmul.f32 %v5628_v17, %v5640_v40  ;;  %v4207_v37 = vadd.f32 %v1025_v61, %v4055_v44  ;;  %v4210_v45 = vadd.f32 %v1251_v28, %v4057_v63  ;;  %v1021_v35 = vmul.f32 %v5601_v39, %v779_v55  ;;  %v5644_v63 = vld [vmem:[#allocation66_spill] sm:$0xff]  ;;  %v5646_v39 = vld [vmem:[#allocation39_spill] sm:$0xff] }
 0x19e   : > { %5641 = vst [vmem:[#allocation49_spill] sm:$0xff] %v4196_v52  ;;  %v4213_v52 = vadd.f32 %v1477_v4, %v4059_v62  ;;  %v4217_v38 = vadd.f32 %v1703_v14, %v4061_v56  ;;  %v1247_v31 = vmul.f32 %v5602_v59, %v779_v55  ;;  %v1473_v1 = vmul.f32 %v5603_v50, %v779_v55  ;;  %v5645_v62 = vld [vmem:[#allocation67_spill] sm:$0xff]  ;;  %v5647_v56 = vld [vmem:[#allocation68_spill] sm:$0xff]  ;;  %v5653_v14 = vld [vmem:[#allocation69_spill] sm:$0xff] }
 0x19f   : > { %5643 = vst [vmem:[#allocation50_spill] sm:$0xff] %v4204_v20  ;;  %v1699_v20 = vmul.f32 %v5604_v7, %v779_v55  ;;  %v4223_v44 = vadd.f32 %v1021_v35, %v4077_v24  ;;  %v4227_v61 = vadd.f32 %v5644_v63, %v3998_v46  ;;  %v4231_v28 = vadd.f32 %v5645_v62, %v4000_v11  ;;  %v827_v11 = vpop.permute.xlu0 %826  ;;  %v5654_v35 = vld [vmem:[#allocation35_spill] sm:$0xff]  ;;  %v5656_v63 = vld [vmem:[#allocation36_spill] sm:$0xff] }
 0x1a0   : > { %v4235_v4 = vadd.f32 %v5647_v56, %v5646_v39  ;;  %v4240_v59 = vadd.f32 %v1247_v31, %v4079_v25  ;;  %v4243_v50 = vadd.f32 %v1473_v1, %v4081_v18  ;;  %v4249_v46 = vsel %vm407_vm1, %v795_v51, 0.0  ;;  %v5655_v31 = vld [vmem:[#allocation70_spill] sm:$0xff]  ;;  %v5657_v62 = vld [vmem:[#allocation71_spill] sm:$0xff]  ;;  %v5659_v56 = vld [vmem:[#allocation37_spill] sm:$0xff] }
 0x1a1   : > { %v4246_v7 = vadd.f32 %v1699_v20, %v4083_v49  ;;  %v1059_v24 = vmul.f32 %v3827_v48, %v4249_v46  ;;  %v4259_v25 = vmul.f32 %v3332_v54, %v5640_v40  ;;  %v4263_v18 = vmul.f32 %v5587_v16, %v5640_v40  ;;  %v5650_v49 = vld [vmem:[#allocation16_spill] sm:$0xff]  ;;  %v5652_v20 = vld [vmem:[#allocation34_spill] sm:$0xff]  ;;  %v797_v40 = vpop.permute.xlu1 %796 }
 0x1a2   : > { %v4267_v51 = vmul.f32 %v3323_v32, %v5650_v49  ;;  %v1045_v55 = vadd.f32 %v5653_v14, %v5652_v20  ;;  %v4273_v1 = vadd.f32 %v5655_v31, %v5654_v35  ;;  %v4277_v39 = vadd.f32 %v5657_v62, %v5656_v63 }
 0x1a3   : > { %5648 = vst [vmem:[#allocation51_spill] sm:$0xff] %v4259_v25  ;;  %5649 = vst [vmem:[#allocation52_spill] sm:$0xff] %v4263_v18  ;;  %v5660_v25 = vld [vmem:[#allocation72_spill] sm:$0xff]  ;;  %v1067_v18 = vadd.f32 %v1059_v24, %v1049_v33  ;;  %v4292_v20 = vmul.f32 %v3332_v54, %v5650_v49  ;;  %v4296_v14 = vsel %vm407_vm1, %v4117_v3, 0.0  ;;  %v4304_v33 = vmul.f32 %v5587_v16, %v5650_v49  ;;  %v5665_v24 = vld [vmem:[#allocation17_spill] sm:$0xff] }
 0x1a4   : > { %5651 = vst [vmem:[#allocation53_spill] sm:$0xff] %v4267_v51  ;;  %5658 = vst [vmem:[#allocation54_spill] sm:$0xff] %v4277_v39  ;;  %v4281_v29 = vadd.f32 %v5660_v25, %v5659_v56  ;;  %v4288_v51 = vmul.f32 %v5628_v17, %v5650_v49  ;;  %v4300_v25 = vsel %vm374_vm0, 0.0, %v4125_v42  ;;  %v4308_v35 = vmul.f32 %v3323_v32, %v5665_v24  ;;  %v789_v56 = vpop.permute.xlu0 %788 }
 0x1a5   : > { %5663 = vst [vmem:[#allocation57_spill] sm:$0xff] %v4292_v20  ;;  %5664 = vst [vmem:[#allocation58_spill] sm:$0xff] %v4304_v33  ;;  %v1055_v31 = vmul.f32 %v3827_v48, %v4296_v14  ;;  %v4314_v3 = vmul.f32 %v5628_v17, %v5665_v24  ;;  %v4318_v42 = vmul.f32 %v3332_v54, %v5665_v24  ;;  %v4331_v62 = vsel %vm374_vm0, 0.0, %v825_v2 }
 0x1a6   : > { %5661 = vst [vmem:[#allocation55_spill] sm:$0xff] %v4281_v29  ;;  %5662 = vst [vmem:[#allocation56_spill] sm:$0xff] %v4288_v51  ;;  %v4322_v49 = vmul.f32 %v5587_v16, %v5665_v24  ;;  %v1076_v63 = vmul.f32 %v4284_v9, %v4300_v25  ;;  %v4353_v20 = vstv %s4237_s2  ;;  %v5684_v51 = vld [vmem:[#allocation23_spill] sm:$0xff]  ;;  %v4453_v29 = vstv %s4355_s24 }
 0x1a7   : > { %5666 = vst [vmem:[#allocation59_spill] sm:$0xff] %v4308_v35  ;;  %5667 = vst [vmem:[#allocation21_spill] sm:$0xff] %v4314_v3  ;;  %v5670_v3 = vld [vmem:[#allocation19_spill] sm:$0xff]  ;;  %v4342_v35 = vsel %vm374_vm0, 0.0, %v835_v5  ;;  %v5675_v5 = vld [vmem:[#allocation18_spill] sm:$0xff]  ;;  %v4458_v30 = vstv %s4360_s30 }
 0x1a8   : > { %5668 = vst [vmem:[#allocation60_spill] sm:$0xff] %v4318_v42  ;;  %5669 = vst [vmem:[#allocation61_spill] sm:$0xff] %v4322_v49  ;;  %v4335_v42 = vmul.f32 %v3323_v32, %v5670_v3  ;;  %v4339_v24 = vmul.f32 %v5628_v17, %v5670_v3  ;;  %v1063_v49 = vadd.f32 %v1055_v31, %v1045_v55  ;;  %v799_v17 = vpop.permute.xlu1 %798  ;;  %v5676_v55 = vld [vmem:[#allocation26_spill] sm:$0xff] }
 0x1a9   : > { %v4346_v33 = vmul.f32 %v3332_v54, %v5670_v3  ;;  %v4350_v2 = vmul.f32 %v5587_v16, %v5670_v3  ;;  %v4358_v32 = vadd.f32 %v1076_v63, %v4119_v15  ;;  %v4364_v31 = vmul.f32 %v5676_v55, %v5675_v5  ;;  %v5678_v54 = vld [vmem:[#allocation20_spill] sm:$0xff]  ;;  %v5680_v15 = vld [vmem:[#allocation22_spill] sm:$0xff] }
 0x1aa   : > { %5671 = vst [vmem:[#allocation24_spill] sm:$0xff] %v4335_v42  ;;  %5672 = vst [vmem:[#allocation62_spill] sm:$0xff] %v4339_v24  ;;  %v4371_v16 = vstv %s4251_s3  ;;  %v4374_v3 = vstv %s4253_s4  ;;  %v4380_v63 = vmul.f32 %v5676_v55, %v5680_v15  ;;  %v1077_v24 = vmul.f32 %v4284_v9, %v4342_v35 }
 0x1ab   : > { %5673 = vst [vmem:[#allocation63_spill] sm:$0xff] %v4346_v33  ;;  %5674 = vst [vmem:[#allocation64_spill] sm:$0xff] %v4350_v2  ;;  %v4368_v33 = vmul.f32 %v5676_v55, %v5678_v54  ;;  %v1072_v2 = vmul.f32 %v4284_v9, %v4331_v62 }
 0x1ac   : > { %5677 = vst [vmem:[#allocation14_spill] sm:$0xff] %v4364_v31  ;;  %5681 = vst [vmem:[#allocation65_spill] sm:$0xff] %v4380_v63  ;;  %v5682_v31 = vld [vmem:[#allocation27_spill] sm:$0xff]  ;;  %v1284_v63 = vmul.f32 %v4353_v20, %v4067_v13 }
 0x1ad   : > { %5679 = vst [vmem:[#allocation15_spill] sm:$0xff] %v4368_v33  ;;  %v4386_v42 = vmul.f32 %v5682_v31, %v5675_v5  ;;  %v4390_v33 = vmul.f32 %v5676_v55, %v5684_v51  ;;  %v4394_v8 = vmul.f32 %v5682_v31, %v5678_v54  ;;  %v4399_v15 = vadd.f32 %v1072_v2, %v4178_v60  ;;  %v791_v60 = vpop.permute.xlu0 %790 }
 0x1ae   : > { %v4403_v5 = vmul.f32 %v5676_v55, %v5687_v41  ;;  %v1280_v54 = vmul.f32 %v4353_v20, %v4140_v23  ;;  %v4415_v31 = vadd.f32 %v1077_v24, %v1067_v18  ;;  %v4418_v2 = vsel %vm374_vm0, 0.0, %v827_v11 }
 0x1af   : > { %5683 = vst [vmem:[#allocation66_spill] sm:$0xff] %v4386_v42  ;;  %5685 = vst [vmem:[#allocation67_spill] sm:$0xff] %v4390_v33  ;;  %v5689_v42 = vld [vmem:[#allocation30_spill] sm:$0xff]  ;;  %v1510_v33 = vmul.f32 %v4371_v16, %v4067_v13  ;;  %v1506_v18 = vmul.f32 %v4371_v16, %v4140_v23  ;;  %v4433_v24 = vstv %s4324_s6  ;;  %v1073_v11 = vmul.f32 %v4284_v9, %v4418_v2 }
 0x1b0   : > { %5686 = vst [vmem:[#allocation39_spill] sm:$0xff] %v4394_v8  ;;  %5688 = vst [vmem:[#allocation68_spill] sm:$0xff] %v4403_v5  ;;  %v4407_v51 = vmul.f32 %v5689_v42, %v5687_v41  ;;  %v1736_v8 = vmul.f32 %v4374_v3, %v4067_v13  ;;  %v5692_v5 = vld [vmem:[#allocation73_spill] sm:$0xff]  ;;  %v5693_v41 = vld [vmem:[#allocation74_spill] sm:$0xff] }
 0x1b1   : > { %5691 = vst [vmem:[#allocation34_spill] sm:$0xff] %v4415_v31  ;;  %v4424_v42 = vadd.f32 %v5693_v41, %v4087_v19  ;;  %v5695_v13 = vld [vmem:[#allocation75_spill] sm:$0xff]  ;;  %v837_v31 = vpop.permute.xlu1 %836  ;;  %v4445_v19 = vsel %vm407_vm1, %v797_v40, 0.0  ;;  %v4455_v39 = vadd.f32 %v1073_v11, %v1063_v49  ;;  %v4463_v40 = vadd.f32 %v1280_v54, %v4152_v22  ;;  %v5704_v11 = vld [vmem:[#allocation81_spill] sm:$0xff] }
 0x1b2   : > { %5690 = vst [vmem:[#allocation16_spill] sm:$0xff] %v4407_v51  ;;  %v1050_v51 = vadd.f32 %v5692_v5, %v4085_v27  ;;  %v4428_v55 = vadd.f32 %v5695_v13, %v4089_v47  ;;  %v5697_v27 = vld [vmem:[#allocation76_spill] sm:$0xff]  ;;  %v5699_v47 = vld [vmem:[#allocation77_spill] sm:$0xff]  ;;  %v5700_v13 = vld [vmem:[#allocation78_spill] sm:$0xff]  ;;  %v810_v49 = vsel %vm407_vm1, %v789_v56, 0.0  ;;  %v1732_v22 = vmul.f32 %v4374_v3, %v4140_v23 }
 0x1b3   : > { %5694 = vst [vmem:[#allocation69_spill] sm:$0xff] %v4424_v42  ;;  %v4442_v5 = vadd.f32 %v5697_v27, %v4091_v6  ;;  %v1046_v41 = vadd.f32 %v5699_v47, %v4109_v43  ;;  %v1292_v42 = vadd.f32 %v1284_v63, %v4103_v26  ;;  %5701 = vst [vmem:[#allocation36_spill] sm:$0xff] %v4455_v39  ;;  %v5703_v26 = vld [vmem:[#allocation80_spill] sm:$0xff] }
 0x1b4   : > { %5696 = vst [vmem:[#allocation35_spill] sm:$0xff] %v4428_v55  ;;  %v1272_v55 = vadd.f32 %v5700_v13, %v4111_v12  ;;  %v1518_v6 = vadd.f32 %v1510_v33, %v4123_v34  ;;  %v1744_v27 = vadd.f32 %v1736_v8, %v4137_v21  ;;  %v1060_v43 = vmul.f32 %v3827_v48, %v4445_v19  ;;  %v5702_v12 = vld [vmem:[#allocation79_spill] sm:$0xff]  ;;  %v829_v34 = vpop.permute.xlu0 %828 }
 0x1b5   : > { %5698 = vst [vmem:[#allocation70_spill] sm:$0xff] %v4442_v5  ;;  %v1498_v47 = vadd.f32 %v5702_v12, %v4113_v10  ;;  %v1724_v63 = vadd.f32 %v5703_v26, %v4115_v36  ;;  %v1051_v13 = vadd.f32 %v5704_v11, %v4207_v37  ;;  %v1514_v21 = vadd.f32 %v1506_v18, %v4164_v53  ;;  %v865_v12 = vpop.permute.xlu1 %864  ;;  %v5705_v37 = vld [vmem:[#allocation82_spill] sm:$0xff]  ;;  %v5707_v53 = vld [vmem:[#allocation83_spill] sm:$0xff]  ;;  %v5709_v18 = vld [vmem:[#allocation84_spill] sm:$0xff] }
 0x1b6   : > { %v1302_v8 = vmul.f32 %v4433_v24, %v4300_v25  ;;  %v1068_v33 = vadd.f32 %v1060_v43, %v1050_v51  ;;  %v1056_v10 = vmul.f32 %v3827_v48, %v810_v49  ;;  %v1282_v54 = vmul.f32 %v4353_v20, %v810_v49 }
 0x1b7   : > { %v1508_v36 = vmul.f32 %v4371_v16, %v810_v49  ;;  %v1734_v56 = vmul.f32 %v4374_v3, %v810_v49  ;;  %v4485_v26 = vadd.f32 %v5705_v37, %v4210_v45  ;;  %v4489_v23 = vadd.f32 %v5707_v53, %v4213_v52 }
 0x1b8   : > { %v4493_v51 = vadd.f32 %v5709_v18, %v4217_v38  ;;  %v4496_v43 = vsel %vm407_vm1, %v799_v17, 0.0  ;;  %v1064_v11 = vadd.f32 %v1056_v10, %v1046_v41  ;;  %v4498_v5 = vadd.f32 %v1282_v54, %v1272_v55  ;;  %v5714_v41 = vld [vmem:[#allocation85_spill] sm:$0xff]  ;;  %v857_v37 = vpop.permute.xlu0 %856 }
 0x1b9   : > { %5706 = vst [vmem:[#allocation71_spill] sm:$0xff] %v4485_v26  ;;  %5708 = vst [vmem:[#allocation37_spill] sm:$0xff] %v4489_v23  ;;  %v4500_v49 = vadd.f32 %v1508_v36, %v1498_v47  ;;  %v4502_v39 = vadd.f32 %v1734_v56, %v1724_v63  ;;  %v1285_v45 = vmul.f32 %v4353_v20, %v4249_v46  ;;  %v5715_v47 = vld [vmem:[#allocation86_spill] sm:$0xff]  ;;  %v5716_v63 = vld [vmem:[#allocation87_spill] sm:$0xff] }
 0x1ba   : > { %5710 = vst [vmem:[#allocation72_spill] sm:$0xff] %v4493_v51  ;;  %5711 = vst [vmem:[#allocation17_spill] sm:$0xff] %v4498_v5  ;;  %v1511_v52 = vmul.f32 %v4371_v16, %v4249_v46  ;;  %v1737_v38 = vmul.f32 %v4374_v3, %v4249_v46  ;;  %v1061_v17 = vmul.f32 %v3827_v48, %v4496_v43  ;;  %v5717_v36 = vld [vmem:[#allocation88_spill] sm:$0xff] }
 0x1bb   : > { %5712 = vst [vmem:[#allocation19_spill] sm:$0xff] %v4500_v49  ;;  %5713 = vst [vmem:[#allocation73_spill] sm:$0xff] %v4502_v39  ;;  %v1047_v55 = vadd.f32 %v5714_v41, %v4223_v44  ;;  %v1273_v10 = vadd.f32 %v5715_v47, %v4240_v59  ;;  %v1499_v54 = vadd.f32 %v5716_v63, %v4243_v50  ;;  %v811_v50 = vsel %vm407_vm1, %v791_v60, 0.0 }
 0x1bc   : > { %v1725_v56 = vadd.f32 %v5717_v36, %v4246_v7  ;;  %v1310_v53 = vadd.f32 %v1302_v8, %v1292_v42  ;;  %v1528_v46 = vmul.f32 %v4436_v58, %v4300_v25  ;;  %v1754_v18 = vmul.f32 %v4453_v29, %v4300_v25  ;;  %v839_v42 = vpop.permute.xlu1 %838  ;;  %v831_v23 = vpop.permute.xlu0 %830 }
 0x1bd   : > { %v4524_v39 = vadd.f32 %v1061_v17, %v1051_v13  ;;  %v1298_v44 = vmul.f32 %v4433_v24, %v4331_v62  ;;  %v1524_v59 = vmul.f32 %v4436_v58, %v4331_v62  ;;  %v4532_v7 = vsel %vm374_vm0, 0.0, %v837_v31 }
 0x1be   : > { %v1057_v8 = vmul.f32 %v3827_v48, %v811_v50  ;;  %v1283_v41 = vmul.f32 %v4353_v20, %v811_v50  ;;  %v1509_v25 = vmul.f32 %v4371_v16, %v811_v50  ;;  %v1735_v13 = vmul.f32 %v4374_v3, %v811_v50 }
 0x1bf   : > { %v1750_v17 = vmul.f32 %v4453_v29, %v4331_v62  ;;  %v1078_v47 = vmul.f32 %v4284_v9, %v4532_v7  ;;  %v4543_v60 = vsel %vm374_vm0, 0.0, %v829_v34  ;;  %v4546_v31 = vsel %vm407_vm1, %v865_v12, 0.0 }
 0x1c0   : > { %v1065_v63 = vadd.f32 %v1057_v8, %v1047_v55  ;;  %v4548_v48 = vadd.f32 %v1283_v41, %v1273_v10  ;;  %v4550_v36 = vadd.f32 %v1509_v25, %v1499_v54  ;;  %v4552_v49 = vadd.f32 %v1735_v13, %v1725_v56  ;;  %v5718_v54 = vld [vmem:[#allocation89_spill] sm:$0xff]  ;;  %v5723_v41 = vld [vmem:[#allocation38_spill] sm:$0xff]  ;;  %v5724_v13 = vld [vmem:[#allocation44_spill] sm:$0xff] }
 0x1c1   : > { %v1740_v50 = vadd.f32 %v1732_v22, %v4168_v57  ;;  %v1293_v62 = vadd.f32 %v1285_v45, %v4227_v61  ;;  %v1536_v51 = vadd.f32 %v1528_v46, %v1518_v6  ;;  %v4556_v5 = vadd.f32 %v1078_v47, %v1068_v33  ;;  %v5719_v61 = vld [vmem:[#allocation90_spill] sm:$0xff]  ;;  %v867_v22 = vpop.permute.xlu1 %866  ;;  %v5721_v46 = vld [vmem:[#allocation25_spill] sm:$0xff] }
 0x1c2   : > { %v1519_v34 = vadd.f32 %v1511_v52, %v4231_v28  ;;  %v1745_v12 = vadd.f32 %v1737_v38, %v4235_v4  ;;  %v1762_v26 = vadd.f32 %v1754_v18, %v1744_v27  ;;  %v1074_v55 = vmul.f32 %v4284_v9, %v4543_v60  ;;  %v5720_v52 = vld [vmem:[#allocation91_spill] sm:$0xff] }
 0x1c3   : > { %v1306_v10 = vadd.f32 %v1298_v44, %v4463_v40  ;;  %v1102_v56 = vadd.f32 %v5718_v54, %v4358_v32  ;;  %v1112_v57 = vmul.f32 %v4458_v30, %v4546_v31  ;;  %v4568_v6 = vadd.f32 %v5719_v61, %v1310_v53 }
 0x1c4   : > { %v1281_v28 = vmul.f32 %v4353_v20, %v4296_v14  ;;  %v1532_v4 = vadd.f32 %v1524_v59, %v1514_v21  ;;  %v1758_v27 = vadd.f32 %v1750_v17, %v1740_v50  ;;  %v4572_v33 = vadd.f32 %v1074_v55, %v1064_v11  ;;  %v5722_v11 = vld [vmem:[#allocation13_spill] sm:$0xff] }
 0x1c5   : > { %v1303_v40 = vmul.f32 %v4433_v24, %v4342_v35  ;;  %v1529_v32 = vmul.f32 %v4436_v58, %v4342_v35  ;;  %v4578_v45 = vadd.f32 %v1112_v57, %v1102_v56  ;;  %v4581_v38 = vadd.f32 %v5720_v52, %v1536_v51  ;;  %v5725_v57 = vld [vmem:[#allocation54_spill] sm:$0xff]  ;;  %v5728_v52 = vld [vmem:[#allocation45_spill] sm:$0xff] }
 0x1c6   : > { %v1755_v53 = vmul.f32 %v4453_v29, %v4342_v35  ;;  %v4586_v18 = vadd.f32 %v5721_v46, %v1762_v26  ;;  %v4589_v21 = vsel %vm407_vm1, %v857_v37, 0.0  ;;  %v1098_v44 = vadd.f32 %v5722_v11, %v4399_v15  ;;  %v859_v26 = vpop.permute.xlu0 %858 }
 0x1c7   : > { %v1507_v59 = vmul.f32 %v4371_v16, %v4296_v14  ;;  %v1733_v8 = vmul.f32 %v4374_v3, %v4296_v14  ;;  %v1108_v51 = vmul.f32 %v4458_v30, %v4589_v21  ;;  %v4600_v35 = vadd.f32 %v5723_v41, %v1306_v10  ;;  %v5736_v41 = vld [vmem:[#allocation46_spill] sm:$0xff] }
 0x1c8   : > { %v1289_v25 = vadd.f32 %v1281_v28, %v4273_v1  ;;  %v1299_v37 = vmul.f32 %v4433_v24, %v4418_v2  ;;  %v4606_v15 = vadd.f32 %v4107_v0, %v1532_v4  ;;  %v4609_v17 = vadd.f32 %v5724_v13, %v1758_v27  ;;  %v905_v1 = vpop.permute.xlu1 %904  ;;  %v5726_v28 = vld [vmem:[#allocation55_spill] sm:$0xff]  ;;  %v5727_v27 = vld [vmem:[#allocation34_spill] sm:$0xff]  ;;  %v5738_v13 = vld [vmem:[#allocation40_spill] sm:$0xff] }
 0x1c9   : > { %v1525_v14 = vmul.f32 %v4436_v58, %v4418_v2  ;;  %v1751_v47 = vmul.f32 %v4453_v29, %v4418_v2  ;;  %v4615_v50 = vadd.f32 %v1108_v51, %v1098_v44  ;;  %v4618_v55 = vsel %vm374_vm0, 0.0, %v839_v42 }
 0x1ca   : > { %v1311_v10 = vadd.f32 %v1303_v40, %v1293_v62  ;;  %v1537_v54 = vadd.f32 %v1529_v32, %v1519_v34  ;;  %v1763_v56 = vadd.f32 %v1755_v53, %v1745_v12  ;;  %v1079_v0 = vmul.f32 %v4284_v9, %v4618_v55  ;;  %v5729_v34 = vld [vmem:[#allocation29_spill] sm:$0xff]  ;;  %v5730_v12 = vld [vmem:[#allocation26_spill] sm:$0xff]  ;;  %v5732_v32 = vld [vmem:[#allocation32_spill] sm:$0xff] }
 0x1cb   : > { %v1515_v61 = vadd.f32 %v1507_v59, %v5725_v57  ;;  %v1741_v4 = vadd.f32 %v1733_v8, %v5726_v28  ;;  %v4627_v2 = vsel %vm374_vm0, 0.0, %v831_v23  ;;  %v1103_v42 = vadd.f32 %v5728_v52, %v5727_v27  ;;  %v897_v59 = vpop.permute.xlu0 %896  ;;  %v5734_v8 = vld [vmem:[#allocation31_spill] sm:$0xff]  ;;  %v5740_v57 = vld [vmem:[#allocation41_spill] sm:$0xff] }
 0x1cc   : > { %v4632_v46 = vadd.f32 %v1079_v0, %v4524_v39  ;;  %v1075_v62 = vmul.f32 %v4284_v9, %v4627_v2  ;;  %v4638_v40 = vmul.f32 %v5730_v12, %v5729_v34  ;;  %v4642_v53 = vmul.f32 %v5730_v12, %v5732_v32 }
 0x1cd   : > { %v1307_v11 = vadd.f32 %v1299_v37, %v1289_v25  ;;  %v1533_v23 = vadd.f32 %v1525_v14, %v1515_v61  ;;  %v1759_v44 = vadd.f32 %v1751_v47, %v1741_v4  ;;  %v4646_v51 = vmul.f32 %v5734_v8, %v5732_v32  ;;  %v907_v14 = vpop.permute.xlu1 %906  ;;  %v5742_v47 = vld [vmem:[#allocation22_spill] sm:$0xff] }
 0x1ce   : > { %5731 = vst [vmem:[#allocation74_spill] sm:$0xff] %v4638_v40  ;;  %5733 = vst [vmem:[#allocation75_spill] sm:$0xff] %v4642_v53  ;;  %v4648_v39 = vadd.f32 %v1075_v62, %v1065_v63  ;;  %v4651_v9 = vadd.f32 %v5736_v41, %v1311_v10  ;;  %v4654_v0 = vadd.f32 %v5738_v13, %v1537_v54  ;;  %v4662_v37 = vsel %vm407_vm1, %v867_v22, 0.0  ;;  %v5743_v63 = vld [vmem:[#allocation27_spill] sm:$0xff]  ;;  %v5745_v10 = vld [vmem:[#allocation33_spill] sm:$0xff] }
 0x1cf   : > { %5735 = vst [vmem:[#allocation76_spill] sm:$0xff] %v4646_v51  ;;  %v4657_v28 = vadd.f32 %v5740_v57, %v1763_v56  ;;  %v1286_v25 = vmul.f32 %v4353_v20, %v4445_v19  ;;  %v4666_v61 = vmul.f32 %v5743_v63, %v5742_v47  ;;  %v4670_v4 = vmul.f32 %v5730_v12, %v5745_v10  ;;  %v5748_v22 = vld [vmem:[#allocation23_spill] sm:$0xff]  ;;  %v5750_v62 = vld [vmem:[#allocation36_spill] sm:$0xff]  ;;  %v5751_v41 = vld [vmem:[#allocation42_spill] sm:$0xff] }
 0x1d0   : > { %5737 = vst [vmem:[#allocation77_spill] sm:$0xff] %v4651_v9  ;;  %5739 = vst [vmem:[#allocation78_spill] sm:$0xff] %v4654_v0  ;;  %v1512_v54 = vmul.f32 %v4371_v16, %v4445_v19  ;;  %v1113_v56 = vmul.f32 %v4458_v30, %v4662_v37  ;;  %v4678_v27 = vmul.f32 %v5734_v8, %v5745_v10  ;;  %v5752_v57 = vld [vmem:[#allocation43_spill] sm:$0xff]  ;;  %v5756_v53 = vld [vmem:[#allocation48_spill] sm:$0xff] }
 0x1d1   : > { %5741 = vst [vmem:[#allocation79_spill] sm:$0xff] %v4657_v28  ;;  %5744 = vst [vmem:[#allocation80_spill] sm:$0xff] %v4666_v61  ;;  %v4682_v52 = vmul.f32 %v5743_v63, %v5748_v22  ;;  %v1099_v13 = vadd.f32 %v5751_v41, %v5750_v62  ;;  %v4687_v12 = vadd.f32 %v5752_v57, %v1307_v11  ;;  %v5754_v51 = vld [vmem:[#allocation47_spill] sm:$0xff]  ;;  %v4696_v28 = vstv %s4622_s29  ;;  %v5762_v62 = vld [vmem:[#allocation69_spill] sm:$0xff] }
 0x1d2   : > { %5746 = vst [vmem:[#allocation81_spill] sm:$0xff] %v4670_v4  ;;  %5747 = vst [vmem:[#allocation82_spill] sm:$0xff] %v4678_v27  ;;  %v4690_v4 = vadd.f32 %v5754_v51, %v1533_v23  ;;  %v4693_v61 = vadd.f32 %v5756_v53, %v1759_v44  ;;  %v1121_v40 = vadd.f32 %v1113_v56, %v1103_v42  ;;  %v5758_v27 = vld [vmem:[#allocation18_spill] sm:$0xff]  ;;  %v4710_v51 = vsel %vm407_vm1, %v859_v26, 0.0  ;;  %v899_v53 = vpop.permute.xlu0 %898  ;;  %v5764_v44 = vld [vmem:[#allocation35_spill] sm:$0xff] }
 0x1d3   : > { %5749 = vst [vmem:[#allocation83_spill] sm:$0xff] %v4682_v52  ;;  %5753 = vst [vmem:[#allocation84_spill] sm:$0xff] %v4687_v12  ;;  %v4700_v0 = vmul.f32 %v5734_v8, %v5758_v27  ;;  %v5760_v52 = vld [vmem:[#allocation20_spill] sm:$0xff]  ;;  %v1294_v11 = vadd.f32 %v1286_v25, %v5762_v62  ;;  %v1738_v23 = vmul.f32 %v4374_v3, %v4445_v19  ;;  %v4713_v42 = vsel %vm374_vm0, 0.0, %v905_v1  ;;  %v869_v62 = vpop.permute.xlu1 %868 }
 0x1d4   : > { %5755 = vst [vmem:[#allocation85_spill] sm:$0xff] %v4690_v4  ;;  %5757 = vst [vmem:[#allocation86_spill] sm:$0xff] %v4693_v61  ;;  %v4704_v9 = vmul.f32 %v5734_v8, %v5760_v52  ;;  %v1520_v56 = vadd.f32 %v1512_v54, %v5764_v44  ;;  %v1304_v41 = vmul.f32 %v4433_v24, %v4532_v7  ;;  %v4729_v54 = vsel %vm374_vm0, 0.0, %v897_v59 }
 0x1d5   : > { %5759 = vst [vmem:[#allocation87_spill] sm:$0xff] %v4700_v0  ;;  %5763 = vst [vmem:[#allocation89_spill] sm:$0xff] %v4710_v51  ;;  %v1530_v57 = vmul.f32 %v4436_v58, %v4532_v7  ;;  %v1109_v25 = vmul.f32 %v4458_v30, %v4710_v51  ;;  %v1287_v19 = vmul.f32 %v4353_v20, %v4496_v43  ;;  %v4736_v61 = vsel %vm374_vm0, 0.0, %v907_v14  ;;  %v5767_v20 = vld [vmem:[#allocation70_spill] sm:$0xff] }
 0x1d6   : > { %5761 = vst [vmem:[#allocation88_spill] sm:$0xff] %v4704_v9  ;;  %v1513_v26 = vmul.f32 %v4371_v16, %v4496_v43  ;;  %v1130_v1 = vmul.f32 %v4696_v28, %v4713_v42  ;;  %5765 = vst [vmem:[#allocation90_spill] sm:$0xff] %v4729_v54  ;;  %v1756_v44 = vmul.f32 %v4453_v29, %v4532_v7 }
 0x1d7   : > { %v1300_v9 = vmul.f32 %v4433_v24, %v4543_v60  ;;  %v1117_v0 = vadd.f32 %v1109_v25, %v1099_v13  ;;  %5766 = vst [vmem:[#allocation91_spill] sm:$0xff] %v4736_v61  ;;  %v1746_v4 = vadd.f32 %v1738_v23, %v5767_v20  ;;  %v4744_v59 = vmul.f32 %v5734_v8, %v5742_v47  ;;  %v5771_v23 = vld [vmem:[#allocation71_spill] sm:$0xff] }
 0x1d8   : > { %v4740_v16 = vadd.f32 %v1130_v1, %v4578_v45  ;;  %v4748_v12 = vmul.f32 %v5734_v8, %v5748_v22  ;;  %v1739_v7 = vmul.f32 %v4374_v3, %v4496_v43  ;;  %v1312_v13 = vadd.f32 %v1304_v41, %v1294_v11  ;;  %v5773_v43 = vld [vmem:[#allocation17_spill] sm:$0xff] }
 0x1d9   : > { %5769 = vst [vmem:[#allocation13_spill] sm:$0xff] %v4744_v59  ;;  %v1538_v25 = vadd.f32 %v1530_v57, %v1520_v56  ;;  %v1126_v14 = vmul.f32 %v4696_v28, %v4729_v54  ;;  %v1295_v20 = vadd.f32 %v1287_v19, %v5771_v23  ;;  %v1526_v45 = vmul.f32 %v4436_v58, %v4543_v60  ;;  %v871_v23 = vpop.permute.xlu1 %870 }
 0x1da   : > { %5768 = vst [vmem:[#allocation25_spill] sm:$0xff] %v4740_v16  ;;  %5770 = vst [vmem:[#allocation38_spill] sm:$0xff] %v4748_v12  ;;  %v1752_v1 = vmul.f32 %v4453_v29, %v4543_v60  ;;  %v1131_v59 = vmul.f32 %v4696_v28, %v4736_v61  ;;  %v861_v12 = vpop.permute.xlu0 %860  ;;  %v5772_v16 = vld [vmem:[#allocation37_spill] sm:$0xff]  ;;  %v1764_v3 = vadd.f32 %v1756_v44, %v1746_v4 }
 0x1db   : > { %v1521_v51 = vadd.f32 %v1513_v26, %v5772_v16  ;;  %v1308_v11 = vadd.f32 %v1300_v9, %v5773_v43  ;;  %v4764_v56 = vadd.f32 %v1126_v14, %v4615_v50  ;;  %v1305_v41 = vmul.f32 %v4433_v24, %v4618_v55  ;;  %v5775_v9 = vld [vmem:[#allocation49_spill] sm:$0xff]  ;;  %v5776_v50 = vld [vmem:[#allocation50_spill] sm:$0xff]  ;;  %v5777_v16 = vld [vmem:[#allocation51_spill] sm:$0xff] }
 0x1dc   : > { %v1531_v57 = vmul.f32 %v4436_v58, %v4618_v55  ;;  %v1757_v60 = vmul.f32 %v4453_v29, %v4618_v55  ;;  %v4772_v19 = vadd.f32 %v1131_v59, %v1121_v40  ;;  %v4775_v26 = vsel %vm374_vm0, 0.0, %v899_v53  ;;  %v5778_v43 = vld [vmem:[#allocation72_spill] sm:$0xff]  ;;  %v5780_v55 = vld [vmem:[#allocation73_spill] sm:$0xff] }
 0x1dd   : > { %5774 = vst [vmem:[#allocation44_spill] sm:$0xff] %v4764_v56  ;;  %v1104_v4 = vadd.f32 %v5775_v9, %v4556_v5  ;;  %v4780_v44 = vadd.f32 %v5776_v50, %v1312_v13  ;;  %v4783_v14 = vadd.f32 %v5777_v16, %v1538_v25  ;;  %v1747_v61 = vadd.f32 %v1739_v7, %v5778_v43  ;;  %v5779_v56 = vld [vmem:[#allocation19_spill] sm:$0xff]  ;;  %v5781_v5 = vld [vmem:[#allocation52_spill] sm:$0xff]  ;;  %v5782_v7 = vld [vmem:[#allocation53_spill] sm:$0xff] }
 0x1de   : > { %v1534_v54 = vadd.f32 %v1526_v45, %v5779_v56  ;;  %v1760_v40 = vadd.f32 %v1752_v1, %v5780_v55  ;;  %v1127_v53 = vmul.f32 %v4696_v28, %v4775_v26  ;;  %v4797_v59 = vadd.f32 %v5781_v5, %v1764_v3  ;;  %v5783_v45 = vld [vmem:[#allocation56_spill] sm:$0xff]  ;;  %v863_v16 = vpop.permute.xlu0 %862 }
 0x1df   : > { %v4800_v13 = vsel %vm407_vm1, %v869_v62, 0.0  ;;  %v1100_v25 = vadd.f32 %v5782_v7, %v4572_v33  ;;  %v4805_v1 = vadd.f32 %v5783_v45, %v1308_v11  ;;  %v1301_v56 = vmul.f32 %v4433_v24, %v4627_v2  ;;  %v5784_v11 = vld [vmem:[#allocation57_spill] sm:$0xff]  ;;  %v5785_v7 = vld [vmem:[#allocation58_spill] sm:$0xff] }
 0x1e0   : > { %v1527_v9 = vmul.f32 %v4436_v58, %v4627_v2  ;;  %v1753_v50 = vmul.f32 %v4453_v29, %v4627_v2  ;;  %v4813_v3 = vadd.f32 %v1127_v53, %v1117_v0  ;;  %v1313_v62 = vadd.f32 %v1305_v41, %v1295_v20  ;;  %v5786_v29 = vld [vmem:[#allocation59_spill] sm:$0xff]  ;;  %v909_v0 = vpop.permute.xlu1 %908 }
 0x1e1   : > { %v1539_v43 = vadd.f32 %v1531_v57, %v1521_v51  ;;  %v1765_v55 = vadd.f32 %v1757_v60, %v1747_v61  ;;  %v1114_v33 = vmul.f32 %v4458_v30, %v4800_v13  ;;  %v4818_v5 = vadd.f32 %v5784_v11, %v1534_v54  ;;  %v5787_v51 = vld [vmem:[#allocation30_spill] sm:$0xff] }
 0x1e2   : > { %v4821_v24 = vadd.f32 %v5785_v7, %v1760_v40  ;;  %v4824_v58 = vsel %vm407_vm1, %v861_v12, 0.0  ;;  %v1105_v2 = vadd.f32 %v5786_v29, %v4632_v46  ;;  %v4830_v61 = vmul.f32 %v5787_v51, %v5758_v27  ;;  %v901_v40 = vpop.permute.xlu0 %900  ;;  %v5802_v7 = vld [vmem:[#allocation63_spill] sm:$0xff] }
 0x1e3   : > { %v1122_v53 = vadd.f32 %v1114_v33, %v1104_v4  ;;  %v4834_v20 = vmul.f32 %v5787_v51, %v5760_v52  ;;  %v4838_v54 = vmul.f32 %v5787_v51, %v5742_v47  ;;  %v1309_v12 = vadd.f32 %v1301_v56, %v4548_v48  ;;  %v5790_v52 = vld [vmem:[#allocation21_spill] sm:$0xff]  ;;  %v5791_v47 = vld [vmem:[#allocation60_spill] sm:$0xff]  ;;  %v5800_v33 = vld [vmem:[#allocation62_spill] sm:$0xff] }
 0x1e4   : > { %v1535_v41 = vadd.f32 %v1527_v9, %v4550_v36  ;;  %v1761_v46 = vadd.f32 %v1753_v50, %v4552_v49  ;;  %v1110_v27 = vmul.f32 %v4458_v30, %v4824_v58  ;;  %v4850_v57 = vadd.f32 %v5790_v52, %v1313_v62  ;;  %v5793_v48 = vld [vmem:[#allocation61_spill] sm:$0xff]  ;;  %v5796_v56 = vld [vmem:[#allocation28_spill] sm:$0xff] }
 0x1e5   : > { %5788 = vst [vmem:[#allocation54_spill] sm:$0xff] %v4834_v20  ;;  %5789 = vst [vmem:[#allocation55_spill] sm:$0xff] %v4838_v54  ;;  %v4853_v60 = vadd.f32 %v5791_v47, %v1539_v43  ;;  %v4856_v4 = vadd.f32 %v5793_v48, %v1765_v55  ;;  %v4859_v36 = vsel %vm407_vm1, %v871_v23, 0.0  ;;  %v4865_v45 = vmul.f32 %v5787_v51, %v5748_v22  ;;  %v5799_v22 = vld [vmem:[#allocation24_spill] sm:$0xff]  ;;  %v937_v47 = vpop.permute.xlu1 %936  ;;  %v5821_v54 = vld [vmem:[#allocation79_spill] sm:$0xff] }
 0x1e6   : > { %v1118_v49 = vadd.f32 %v1110_v27, %v1100_v25  ;;  %v4869_v9 = vmul.f32 %v5743_v63, %v5796_v56  ;;  %v4873_v50 = vmul.f32 %v5743_v63, %v5729_v34  ;;  %v4876_v62 = vstv %s4788_s28  ;;  %v5804_v27 = vld [vmem:[#allocation64_spill] sm:$0xff] }
 0x1e7   : > { %5792 = vst [vmem:[#allocation34_spill] sm:$0xff] %v4853_v60  ;;  %5794 = vst [vmem:[#allocation45_spill] sm:$0xff] %v4856_v4  ;;  %v4879_v23 = vstv %s4792_s14  ;;  %v4882_v43 = vstv %s4794_s15  ;;  %v1115_v25 = vmul.f32 %v4458_v30, %v4859_v36  ;;  %v1101_v55 = vadd.f32 %v5799_v22, %v4648_v39  ;;  %s5870_s15 = sld [smem:[#allocation97_spill]] }
 0x1e8   : > { %5795 = vst [vmem:[#allocation26_spill] sm:$0xff] %v4865_v45  ;;  %5797 = vst [vmem:[#allocation31_spill] sm:$0xff] %v4869_v9  ;;  %v4891_v11 = vadd.f32 %v5800_v33, %v1309_v12  ;;  %v4894_v29 = vadd.f32 %v5802_v7, %v1535_v41  ;;  %v4897_v52 = vadd.f32 %v5804_v27, %v1761_v46  ;;  %v4918_v41 = vsel %vm407_vm1, %v863_v16, 0.0  ;;  %v5820_v45 = vld [vmem:[#allocation78_spill] sm:$0xff] }
 0x1e9   : > { %5798 = vst [vmem:[#allocation46_spill] sm:$0xff] %v4873_v50  ;;  %v4899_v48 = vadd.f32 %v1115_v25, %v1105_v2  ;;  %v4903_v51 = vmul.f32 %v5743_v63, %v5732_v32  ;;  %v4907_v4 = vmul.f32 %v5743_v63, %v5745_v10  ;;  %v4911_v39 = vmul.f32 %v5734_v8, %v5796_v56 }
 0x1ea   : > { %5801 = vst [vmem:[#allocation40_spill] sm:$0xff] %v4891_v11  ;;  %5803 = vst [vmem:[#allocation41_spill] sm:$0xff] %v4894_v29  ;;  %v1338_v12 = vmul.f32 %v4876_v62, %v4546_v31  ;;  %v1564_v2 = vmul.f32 %v4879_v23, %v4546_v31  ;;  %v4921_v46 = vsel %vm374_vm0, 0.0, %v909_v0  ;;  %v1790_v63 = vmul.f32 %v4882_v43, %v4546_v31 }
 0x1eb   : > { %5805 = vst [vmem:[#allocation22_spill] sm:$0xff] %v4897_v52  ;;  %5806 = vst [vmem:[#allocation27_spill] sm:$0xff] %v4903_v51  ;;  %v1334_v56 = vmul.f32 %v4876_v62, %v4589_v21  ;;  %v1111_v25 = vmul.f32 %v4458_v30, %v4918_v41  ;;  %v4931_v22 = vmul.f32 %v5734_v8, %v5729_v34  ;;  %v4940_v33 = vsel %vm374_vm0, 0.0, %v901_v40  ;;  %v929_v30 = vpop.permute.xlu0 %928  ;;  %v911_v40 = vpop.permute.xlu1 %910 }
 0x1ec   : > { %5807 = vst [vmem:[#allocation23_spill] sm:$0xff] %v4907_v4  ;;  %5808 = vst [vmem:[#allocation36_spill] sm:$0xff] %v4911_v39  ;;  %v1560_v16 = vmul.f32 %v4879_v23, %v4589_v21  ;;  %v1786_v0 = vmul.f32 %v4882_v43, %v4589_v21  ;;  %v1132_v31 = vmul.f32 %v4696_v28, %v4921_v46  ;;  %v4947_v7 = vstv %s4845_s16  ;;  %s5871_s16 = sshll.u32 %s5875_s27, 3 }
 0x1ed   : > { %5809 = vst [vmem:[#allocation42_spill] sm:$0xff] %v4931_v22  ;;  %5810 = vst [vmem:[#allocation43_spill] sm:$0xff] %v4940_v33  ;;  %v1339_v8 = vmul.f32 %v4876_v62, %v4662_v37  ;;  %v4950_v27 = vstv %s4847_s17  ;;  %v1119_v10 = vadd.f32 %v1111_v25, %v1101_v55  ;;  %v1346_v21 = vadd.f32 %v1338_v12, %v4568_v6  ;;  %v5811_v12 = vld [vmem:[#allocation77_spill] sm:$0xff] }
 0x1ee   : > { %v1572_v52 = vadd.f32 %v1564_v2, %v4581_v38  ;;  %v4955_v32 = vstv %s4861_s18  ;;  %v4957_v34 = vadd.f32 %v1132_v31, %v1122_v53  ;;  %v1798_v22 = vadd.f32 %v1790_v63, %v4586_v18  ;;  %v5813_v25 = vld [vmem:[#allocation25_spill] sm:$0xff] }
 0x1ef   : > { %v1342_v39 = vadd.f32 %v1334_v56, %v4600_v35  ;;  %v1128_v4 = vmul.f32 %v4696_v28, %v4940_v33  ;;  %v4964_v29 = vstv %s4886_s19  ;;  %v1568_v55 = vadd.f32 %v1560_v16, %v4606_v15  ;;  %v5812_v15 = vld [vmem:[#allocation89_spill] sm:$0xff]  ;;  %v5814_v16 = vld [vmem:[#allocation14_spill] sm:$0xff]  ;;  %v903_v31 = vpop.permute.xlu0 %902  ;;  %s5872_s19 = sld [smem:[#allocation98_spill]] }
 0x1f0   : > { %v1794_v6 = vadd.f32 %v1786_v0, %v4609_v17  ;;  %v1565_v38 = vmul.f32 %v4879_v23, %v4662_v37  ;;  %v4971_v53 = vsel %vm407_vm1, %v937_v47, 0.0  ;;  %v1347_v18 = vadd.f32 %v1339_v8, %v5811_v12  ;;  %v5815_v8 = vld [vmem:[#allocation90_spill] sm:$0xff] }
 0x1f1   : > { %v1791_v35 = vmul.f32 %v4882_v43, %v4662_v37  ;;  %v1356_v2 = vmul.f32 %v4947_v7, %v4713_v42  ;;  %v4978_v63 = vadd.f32 %v1128_v4, %v1118_v49  ;;  %v1335_v17 = vmul.f32 %v4876_v62, %v5812_v15 }
 0x1f2   : > { %v1561_v56 = vmul.f32 %v4879_v23, %v5812_v15  ;;  %v1156_v47 = vadd.f32 %v5814_v16, %v5813_v25  ;;  %v1166_v0 = vmul.f32 %v4964_v29, %v4971_v53  ;;  %v1787_v37 = vmul.f32 %v4882_v43, %v5812_v15  ;;  %v5818_v25 = vld [vmem:[#allocation44_spill] sm:$0xff]  ;;  %v5819_v16 = vld [vmem:[#allocation15_spill] sm:$0xff]  ;;  %v939_v15 = vpop.permute.xlu1 %938 }
 0x1f3   : > { %v1352_v4 = vmul.f32 %v4947_v7, %v5815_v8  ;;  %v4993_v49 = vsel %vm407_vm1, %v929_v30, 0.0  ;;  %v4996_v12 = vsel %vm374_vm0, 0.0, %v911_v40  ;;  %v4999_v51 = vstv %s4942_s20 }
 0x1f4   : > { %5816 = vst [vmem:[#allocation47_spill] sm:$0xff] %v4996_v12  ;;  %v5001_v50 = vadd.f32 %v1166_v0, %v1156_v47  ;;  %v1152_v9 = vadd.f32 %v5819_v16, %v5818_v25  ;;  %v1162_v11 = vmul.f32 %v4964_v29, %v4993_v49  ;;  %v1573_v60 = vadd.f32 %v1565_v38, %v5820_v45  ;;  %v5824_v16 = vld [vmem:[#allocation84_spill] sm:$0xff]  ;;  %v5825_v38 = vld [vmem:[#allocation85_spill] sm:$0xff] }
 0x1f5   : > { %v1799_v20 = vadd.f32 %v1791_v35, %v5821_v54  ;;  %v1364_v30 = vadd.f32 %v1356_v2, %v1346_v21  ;;  %v1133_v40 = vmul.f32 %v4696_v28, %v4996_v12  ;;  %v1582_v33 = vmul.f32 %v4950_v27, %v4713_v42  ;;  %v5826_v2 = vld [vmem:[#allocation86_spill] sm:$0xff]  ;;  %s332_s20 = scalar_lea.vmem %s5872_s19, %s5871_s16 }
 0x1f6   : > { %5817 = vst [vmem:[#allocation48_spill] sm:$0xff] %v5001_v50  ;;  %v1808_v47 = vmul.f32 %v4955_v32, %v4713_v42  ;;  %v5015_v0 = vadd.f32 %v1162_v11, %v1152_v9  ;;  %v5018_v25 = vsel %vm374_vm0, 0.0, %v903_v31  ;;  %v1343_v50 = vadd.f32 %v1335_v17, %v5824_v16  ;;  %v931_v11 = vpop.permute.xlu0 %930 }
 0x1f7   : > { %5823 = vst [vmem:[#allocation20_spill] sm:$0xff] %v5018_v25  ;;  %v1392_v54 = vmul.f32 %v4999_v51, %v4971_v53  ;;  %v1141_v45 = vadd.f32 %v1133_v40, %v4899_v48  ;;  %v1129_v21 = vmul.f32 %v4696_v28, %v5018_v25  ;;  %v1569_v35 = vadd.f32 %v1561_v56, %v5825_v38  ;;  %v5827_v48 = vld [vmem:[#allocation66_spill] sm:$0xff]  ;;  %v5828_v28 = vld [vmem:[#allocation91_spill] sm:$0xff] }
 0x1f8   : > { %5822 = vst [vmem:[#allocation18_spill] sm:$0xff] %v5015_v0  ;;  %v1795_v12 = vadd.f32 %v1787_v37, %v5826_v2  ;;  %v1360_v42 = vadd.f32 %v1352_v4, %v1342_v39  ;;  %v1578_v9 = vmul.f32 %v4950_v27, %v5815_v8  ;;  %v1804_v17 = vmul.f32 %v4955_v32, %v5815_v8  ;;  %v5829_v37 = vld [vmem:[#allocation65_spill] sm:$0xff]  ;;  %v941_v8 = vpop.permute.xlu1 %940 }
 0x1f9   : > { %v5032_v31 = vadd.f32 %v1129_v21, %v1119_v10  ;;  %v5035_v16 = vsel %vm407_vm1, %v939_v15, 0.0  ;;  %v1382_v40 = vadd.f32 %v5827_v48, %v1364_v30  ;;  %v1357_v56 = vmul.f32 %v4947_v7, %v5828_v28 }
 0x1fa   : > { %v1388_v39 = vmul.f32 %v4999_v51, %v4993_v49  ;;  %v1157_v4 = vadd.f32 %v5829_v37, %v4772_v19  ;;  %v1167_v38 = vmul.f32 %v4964_v29, %v5035_v16  ;;  %v5046_v10 = vadd.f32 %v1582_v33, %v1572_v52  ;;  %v5830_v37 = vld [vmem:[#allocation39_spill] sm:$0xff] }
 0x1fb   : > { %v5048_v21 = vadd.f32 %v1808_v47, %v1798_v22  ;;  %v1583_v15 = vmul.f32 %v4950_v27, %v5828_v28  ;;  %v1400_v30 = vadd.f32 %v1392_v54, %v1382_v40  ;;  %v1809_v2 = vmul.f32 %v4955_v32, %v5828_v28  ;;  %v5831_v33 = vld [vmem:[#allocation67_spill] sm:$0xff] }
 0x1fc   : > { %v5056_v48 = vadd.f32 %v1167_v38, %v1157_v4  ;;  %v5059_v19 = vsel %vm407_vm1, %v931_v11, 0.0  ;;  %v1378_v0 = vadd.f32 %v5830_v37, %v1360_v42  ;;  %v5062_v52 = vadd.f32 %v1578_v9, %v1568_v55  ;;  %v933_v11 = vpop.permute.xlu0 %932 }
 0x1fd   : > { %v1408_v22 = vmax.f32 %v1400_v30, 0.0  ;;  %v1153_v47 = vadd.f32 %v5831_v33, %v4813_v3  ;;  %v1163_v25 = vmul.f32 %v4964_v29, %v5059_v19  ;;  %v5068_v54 = vadd.f32 %v1804_v17, %v1794_v6  ;;  %v5832_v3 = vld [vmem:[#allocation68_spill] sm:$0xff]  ;;  %v943_v17 = vpop.permute.xlu1 %942 }
 0x1fe   : > { %v1365_v40 = vadd.f32 %v1357_v56, %v1347_v18  ;;  %v1396_v28 = vadd.f32 %v1388_v39, %v1378_v0  ;;  %v5071_v4 = vsel %vm407_vm1, %v941_v8, 0.0  ;;  %v1591_v38 = vadd.f32 %v1583_v15, %v1573_v60 }
 0x1ff   : > { %1880 = vrot.lane.b32.xlu1 %v1408_v22, %s2538_s23  ;;  %v5076_v55 = vadd.f32 %v1163_v25, %v1153_v47  ;;  %v1158_v42 = vadd.f32 %v5832_v3, %v4957_v34  ;;  %v1168_v6 = vmul.f32 %v4964_v29, %v5071_v4  ;;  %v1353_v18 = vmul.f32 %v4947_v7, %v4775_v26  ;;  %v5836_v3 = vld [vmem:[#allocation75_spill] sm:$0xff] }
 0x200   : > { %v1579_v60 = vmul.f32 %v4950_v27, %v4775_v26  ;;  %v1805_v0 = vmul.f32 %v4955_v32, %v4775_v26  ;;  %v1404_v9 = vmax.f32 %v1396_v28, 0.0  ;;  %v1340_v25 = vmul.f32 %v4876_v62, %v4800_v13  ;;  %v5834_v26 = vld [vmem:[#allocation74_spill] sm:$0xff] }
 0x201   : > { %v1393_v34 = vmul.f32 %v4999_v51, %v5035_v16  ;;  %v5092_v56 = vadd.f32 %v1168_v6, %v1158_v42  ;;  %v5095_v39 = vsel %vm407_vm1, %v933_v11, 0.0  ;;  %v5097_v8 = vadd.f32 %v1809_v2, %v1799_v20  ;;  %v5835_v20 = vld [vmem:[#allocation80_spill] sm:$0xff] }
 0x202   : > { %v1566_v15 = vmul.f32 %v4879_v23, %v4800_v13  ;;  %1872 = vrot.lane.b32.xlu0 %v1404_v9, %s2538_s23  ;;  %v1154_v30 = vadd.f32 %v5834_v26, %v4978_v63  ;;  %v1164_v37 = vmul.f32 %v4964_v29, %v5095_v39  ;;  %v1792_v22 = vmul.f32 %v4882_v43, %v4800_v13 }
 0x203   : > { %5833 = vst [vmem:[#allocation69_spill] sm:$0xff] %v5092_v56  ;;  %v5109_v33 = vstv %s5052_s21  ;;  %v5112_v47 = vsel %vm407_vm1, %v943_v17, 0.0  ;;  %v1383_v2 = vadd.f32 %v5835_v20, %v1365_v40  ;;  %v1361_v28 = vadd.f32 %v1353_v18, %v1343_v50  ;;  %v935_v56 = vpop.permute.xlu0 %934 }
 0x204   : > { %v5115_v11 = vadd.f32 %v1164_v37, %v1154_v30  ;;  %v1159_v42 = vadd.f32 %v5836_v3, %v1141_v45  ;;  %v1169_v63 = vmul.f32 %v4964_v29, %v5112_v47  ;;  %v1587_v6 = vadd.f32 %v1579_v60, %v1569_v35  ;;  %v5839_v37 = vld [vmem:[#allocation81_spill] sm:$0xff] }
 0x205   : > { %v5120_v9 = vadd.f32 %v1805_v0, %v1795_v12  ;;  %v1348_v13 = vadd.f32 %v1340_v25, %v4780_v44  ;;  %v1401_v26 = vadd.f32 %v1393_v34, %v1383_v2  ;;  %v5124_v17 = vadd.f32 %v1566_v15, %v4783_v14  ;;  %v5837_v0 = vld [vmem:[#allocation83_spill] sm:$0xff] }
 0x206   : > { %v1618_v50 = vmul.f32 %v5109_v33, %v4971_v53  ;;  %v1389_v40 = vmul.f32 %v4999_v51, %v5059_v19  ;;  %v5130_v45 = vadd.f32 %v1169_v63, %v1159_v42  ;;  %v5133_v18 = vadd.f32 %v1792_v22, %v4797_v59  ;;  %v5838_v34 = vld [vmem:[#allocation87_spill] sm:$0xff] }
 0x207   : > { %v1336_v12 = vmul.f32 %v4876_v62, %v4824_v58  ;;  %v5138_v44 = vstv %s5073_s22  ;;  %v1409_v35 = vmax.f32 %v1401_v26, 0.0  ;;  %v1614_v14 = vmul.f32 %v5109_v33, %v4993_v49 }
 0x208   : > { %v5143_v60 = vsel %vm407_vm1, %v935_v56, 0.0  ;;  %v1379_v25 = vadd.f32 %v5837_v0, %v1361_v28  ;;  %v1608_v15 = vadd.f32 %v5838_v34, %v5046_v10  ;;  %v1562_v59 = vmul.f32 %v4879_v23, %v4824_v58  ;;  %v5840_v10 = vld [vmem:[#allocation88_spill] sm:$0xff] }
 0x209   : > { %v1619_v30 = vmul.f32 %v5109_v33, %v5035_v16  ;;  %1882 = vrot.lane.b32.xlu1 %v1409_v35, %s2538_s23  ;;  %v1155_v22 = vadd.f32 %v5839_v37, %v5032_v31  ;;  %v1165_v56 = vmul.f32 %v4964_v29, %v5143_v60  ;;  %v1788_v20 = vmul.f32 %v4882_v43, %v4824_v58  ;;  %v5841_v35 = vld [vmem:[#allocation13_spill] sm:$0xff] }
 0x20a   : > { %v1397_v2 = vadd.f32 %v1389_v40, %v1379_v25  ;;  %v1626_v28 = vadd.f32 %v1618_v50, %v1608_v15  ;;  %v1604_v3 = vadd.f32 %v5840_v10, %v5062_v52  ;;  %v1344_v42 = vadd.f32 %v1336_v12, %v4805_v1  ;;  %v5842_v12 = vld [vmem:[#allocation38_spill] sm:$0xff] }
 0x20b   : > { %v1844_v63 = vmul.f32 %v5138_v44, %v4971_v53  ;;  %v5164_v26 = vadd.f32 %v1165_v56, %v1155_v22  ;;  %v1609_v31 = vadd.f32 %v5841_v35, %v1591_v38  ;;  %v1615_v29 = vmul.f32 %v5109_v33, %v5059_v19  ;;  %v5843_v56 = vld [vmem:[#allocation43_spill] sm:$0xff]  ;;  %v5847_v10 = vld [vmem:[#allocation34_spill] sm:$0xff] }
 0x20c   : > { %v1405_v0 = vmax.f32 %v1397_v2, 0.0  ;;  %v1634_v34 = vmax.f32 %v1626_v28, 0.0  ;;  %v1622_v58 = vadd.f32 %v1614_v14, %v1604_v3  ;;  %v1341_v50 = vmul.f32 %v4876_v62, %v4859_v36  ;;  %v5846_v28 = vld [vmem:[#allocation55_spill] sm:$0xff] }
 0x20d   : > { %v1358_v52 = vmul.f32 %v4947_v7, %v4921_v46  ;;  %v1627_v1 = vadd.f32 %v1619_v30, %v1609_v31  ;;  %v1834_v53 = vadd.f32 %v4830_v61, %v5048_v21  ;;  %v5176_v40 = vadd.f32 %v1562_v59, %v4818_v5 }
 0x20e   : > { %v5179_v38 = vadd.f32 %v1788_v20, %v4821_v24  ;;  %1874 = vrot.lane.b32.xlu0 %v1405_v0, %s2538_s23  ;;  %1912 = vrot.lane.b32.xlu1 %v1634_v34, %s2539_s25  ;;  %v1605_v14 = vadd.f32 %v5842_v12, %v1587_v6  ;;  %v1567_v25 = vmul.f32 %v4879_v23, %v4859_v36  ;;  %v1630_v61 = vmax.f32 %v1622_v58, 0.0  ;;  %v5844_v20 = vld [vmem:[#allocation47_spill] sm:$0xff]  ;;  %v5850_v12 = vld [vmem:[#allocation40_spill] sm:$0xff] }
 0x20f   : > { %v5188_v15 = vmul.f32 %v4882_v43, %v4859_v36  ;;  %v1840_v5 = vmul.f32 %v5138_v44, %v4993_v49  ;;  %v1845_v24 = vmul.f32 %v5138_v44, %v5035_v16  ;;  %v1635_v21 = vmax.f32 %v1627_v1, 0.0  ;;  %v5845_v49 = vld [vmem:[#allocation54_spill] sm:$0xff]  ;;  %v1989_v1 = vld [vmem:[%s5387_s5 + $0x10] sm:$0xff] }
 0x210   : > { %v1623_v59 = vadd.f32 %v1615_v29, %v1605_v14  ;;  %v1852_v30 = vadd.f32 %v1844_v63, %v1834_v53  ;;  %v1349_v37 = vadd.f32 %v1341_v50, %v4850_v57  ;;  %v1337_v6 = vmul.f32 %v4876_v62, %v4918_v41  ;;  %v5849_v50 = vld [vmem:[#allocation26_spill] sm:$0xff]  ;;  %v1990_v53 = vld [vmem:[%s5387_s5 + $0x18] sm:$0xff] }
 0x211   : > { %v1366_v22 = vadd.f32 %v1358_v52, %v1348_v13  ;;  %v1354_v36 = vmul.f32 %v4947_v7, %v5843_v56  ;;  %v1359_v2 = vmul.f32 %v4947_v7, %v5844_v20  ;;  %v1830_v16 = vadd.f32 %v5845_v49, %v5068_v54  ;;  %v1987_v54 = vld [vmem:[%s5387_s5] sm:$0xff] }
 0x212   : > { %1904 = vrot.lane.b32.xlu0 %v1630_v61, %s2539_s25  ;;  %1914 = vrot.lane.b32.xlu1 %v1635_v21, %s2539_s25  ;;  %v1835_v57 = vadd.f32 %v5846_v28, %v5097_v8  ;;  %v1575_v3 = vadd.f32 %v1567_v25, %v5847_v10  ;;  %v1563_v62 = vmul.f32 %v4879_v23, %v4918_v41  ;;  %v1631_v35 = vmax.f32 %v1623_v59, 0.0  ;;  %v1988_v8 = vld [vmem:[%s5387_s5 + $0x8] sm:$0xff]  ;;  %v5853_v10 = vld [vmem:[#allocation27_spill] sm:$0xff] }
 0x213   : > { %v1841_v13 = vmul.f32 %v5138_v44, %v5059_v19  ;;  %v1394_v63 = vmul.f32 %v4999_v51, %v5071_v4  ;;  %v1860_v31 = vmax.f32 %v1852_v30, 0.0  ;;  %v1848_v29 = vadd.f32 %v1840_v5, %v1830_v16  ;;  %v5848_v19 = vld [vmem:[#allocation20_spill] sm:$0xff]  ;;  %v1992_v16 = vld [vmem:[%s5387_s5 + $0x28] sm:$0xff] }
 0x214   : > { %v1853_v0 = vadd.f32 %v1845_v24, %v1835_v57  ;;  %v1584_v23 = vmul.f32 %v4950_v27, %v4921_v46  ;;  %v1362_v34 = vadd.f32 %v1354_v36, %v1344_v42  ;;  %v1355_v58 = vmul.f32 %v4947_v7, %v5848_v19  ;;  %v5851_v7 = vld [vmem:[#allocation31_spill] sm:$0xff] }
 0x215   : > { %v1831_v52 = vadd.f32 %v5849_v50, %v5120_v9  ;;  %v1345_v14 = vadd.f32 %v1337_v6, %v5850_v12  ;;  %v1367_v25 = vadd.f32 %v1359_v2, %v1349_v37  ;;  %v1384_v42 = vadd.f32 %v5851_v7, %v1366_v22  ;;  %v5852_v2 = vld [vmem:[#allocation46_spill] sm:$0xff]  ;;  %v1991_v22 = vld [vmem:[%s5387_s5 + $0x20] sm:$0xff]  ;;  %v5855_v50 = vld [vmem:[#allocation23_spill] sm:$0xff] }
 0x216   : > { %1906 = vrot.lane.b32.xlu0 %v1631_v35, %s2539_s25  ;;  %1944 = vrot.lane.b32.xlu1 %v1860_v31, %s2540_s1  ;;  %v1390_v9 = vmul.f32 %v4999_v51, %v5095_v39  ;;  %v1395_v5 = vmul.f32 %v4999_v51, %v5112_v47  ;;  %v2374_v61 = vpack.c.bf16 %v1988_v8, %v1987_v54  ;;  %v1856_v21 = vmax.f32 %v1848_v29, 0.0  ;;  %v5854_v8 = vld [vmem:[#allocation41_spill] sm:$0xff] }
 0x217   : > { %v1849_v24 = vadd.f32 %v1841_v13, %v1831_v52  ;;  %v1861_v59 = vmax.f32 %v1853_v0, 0.0  ;;  %v1402_v30 = vadd.f32 %v1394_v63, %v1384_v42  ;;  %v2378_v6 = vpack.c.bf16 %v1990_v53, %v1989_v1  ;;  %v1994_v1 = vld [vmem:[%s5387_s5 + $0x38] sm:$0xff] }
 0x218   : > { %v1585_v37 = vmul.f32 %v4950_v27, %v5844_v20  ;;  %v1363_v36 = vadd.f32 %v1355_v58, %v1345_v14  ;;  %v1380_v49 = vadd.f32 %v5852_v2, %v1362_v34  ;;  %2375 = vmatprep.subr.bf16.mxu0 %v2374_v61  ;;  %2390 = vmatprep.subr.bf16.mxu1 %v2374_v61 }
 0x219   : > { %v1592_v28 = vadd.f32 %v1584_v23, %v5124_v17  ;;  %v1580_v57 = vmul.f32 %v4950_v27, %v5843_v56  ;;  %v1385_v13 = vadd.f32 %v5853_v10, %v1367_v25  ;;  %v1620_v63 = vmul.f32 %v5109_v33, %v5071_v4  ;;  %2377 = vmatpush3.bf16.msra.mxu0 %v2374_v61  ;;  %v5861_v10 = vld [vmem:[#allocation29_spill] sm:$0xff] }
 0x21a   : > { %1936 = vrot.lane.b32.xlu0 %v1856_v21, %s2540_s1  ;;  %1946 = vrot.lane.b32.xlu1 %v1861_v59, %s2540_s1  ;;  %v1391_v35 = vmul.f32 %v4999_v51, %v5143_v60  ;;  %v1398_v31 = vadd.f32 %v1390_v9, %v1380_v49  ;;  %v1857_v29 = vmax.f32 %v1849_v24, 0.0  ;;  %v1410_v17 = vmax.f32 %v1402_v30, 0.0  ;;  %v1993_v51 = vld [vmem:[%s5387_s5 + $0x30] sm:$0xff]  ;;  %v5857_v9 = vld [vmem:[#allocation45_spill] sm:$0xff]  ;;  %v5858_v21 = vld [vmem:[#allocation76_spill] sm:$0xff] }
 0x21b   : > { %2394 = vmatpush3.bf16.msra.mxu1 %v2374_v61  ;;  %v1403_v0 = vadd.f32 %v1395_v5, %v1385_v13  ;;  %2379 = vmatprep.subr.bf16.mxu0 %v2378_v6  ;;  %v2382_v54 = vpack.c.bf16 %v1992_v16, %v1991_v22  ;;  %v1571_v23 = vadd.f32 %v1563_v62, %v5854_v8  ;;  %v5863_v13 = vld [vmem:[#allocation32_spill] sm:$0xff] }
 0x21c   : > { %2391 = vmatprep.subr.bf16.mxu1 %v2378_v6  ;;  %v1810_v34 = vmul.f32 %v4955_v32, %v4921_v46  ;;  %v1593_v58 = vadd.f32 %v1585_v37, %v1575_v3  ;;  %v1381_v52 = vadd.f32 %v5855_v50, %v1363_v36  ;;  %v1588_v53 = vadd.f32 %v1580_v57, %v5176_v40  ;;  %v5856_v46 = vld [vmem:[#allocation36_spill] sm:$0xff]  ;;  %v5859_v37 = vld [vmem:[#allocation42_spill] sm:$0xff] }
 0x21d   : > { %v1581_v12 = vmul.f32 %v4950_v27, %v5848_v19  ;;  %v1610_v3 = vadd.f32 %v5856_v46, %v1592_v28  ;;  %v1616_v62 = vmul.f32 %v5109_v33, %v5095_v39  ;;  %v1621_v14 = vmul.f32 %v5109_v33, %v5112_v47  ;;  %2381 = vmatpush3.bf16.msra.mxu0 %v2378_v6  ;;  %v5860_v28 = vld [vmem:[#allocation16_spill] sm:$0xff] }
 0x21e   : > { %1938 = vrot.lane.b32.xlu0 %v1857_v29, %s2540_s1  ;;  %1884 = vrot.lane.b32.xlu1 %v1410_v17, %s2538_s23  ;;  %v1399_v25 = vadd.f32 %v1391_v35, %v1381_v52  ;;  %v1406_v7 = vmax.f32 %v1398_v31, 0.0  ;;  %v1411_v40 = vmax.f32 %v1403_v0, 0.0  ;;  %v2386_v27 = vpack.c.bf16 %v1994_v1, %v1993_v51  ;;  %v5865_v29 = vld [vmem:[#allocation22_spill] sm:$0xff]  ;;  %v5866_v52 = vld [vmem:[#allocation33_spill] sm:$0xff] }
 0x21f   : > { %2395 = vmatpush3.bf16.msra.mxu1 %v2378_v6  ;;  %v1628_v42 = vadd.f32 %v1620_v63, %v1610_v3  ;;  %2383 = vmatprep.subr.bf16.mxu0 %v2382_v54  ;;  %v1801_v5 = vadd.f32 %v5188_v15, %v5857_v9  ;;  %v1818_v24 = vadd.f32 %v1810_v34, %v5133_v18  ;;  %v5867_v9 = vld [vmem:[#allocation48_spill] sm:$0xff] }
 0x220   : > { %2392 = vmatprep.subr.bf16.mxu1 %v2382_v54  ;;  %v1806_v61 = vmul.f32 %v4955_v32, %v5843_v56  ;;  %v1611_v59 = vadd.f32 %v5858_v21, %v1593_v58  ;;  %v1811_v30 = vmul.f32 %v4955_v32, %v5844_v20  ;;  %v1589_v6 = vadd.f32 %v1581_v12, %v1571_v23 }
 0x221   : > { %v1606_v36 = vadd.f32 %v5859_v37, %v1588_v53  ;;  %v1789_v15 = vmul.f32 %v4882_v43, %v4918_v41  ;;  %v1846_v18 = vmul.f32 %v5138_v44, %v5071_v4  ;;  %2385 = vmatpush3.bf16.msra.mxu0 %v2382_v54  ;;  %v1617_v56 = vmul.f32 %v5109_v33, %v5143_v60  ;;  %v5862_v43 = vld [vmem:[#allocation30_spill] sm:$0xff] }
 0x222   : > { %1876 = vrot.lane.b32.xlu0 %v1406_v7, %s2538_s23  ;;  %1886 = vrot.lane.b32.xlu1 %v1411_v40, %s2538_s23  ;;  %v1629_v2 = vadd.f32 %v1621_v14, %v1611_v59  ;;  %v1407_v20 = vmax.f32 %v1399_v25, 0.0  ;;  %v1636_v49 = vmax.f32 %v1628_v42, 0.0  ;;  %v1814_v16 = vadd.f32 %v1806_v61, %v5179_v38  ;;  %v5864_v33 = vld [vmem:[#allocation82_spill] sm:$0xff] }
 0x223   : > { %2396 = vmatpush3.bf16.msra.mxu1 %v2382_v54  ;;  %v1624_v22 = vadd.f32 %v1616_v62, %v1606_v36  ;;  %2387 = vmatprep.subr.bf16.mxu0 %v2386_v27  ;;  %v1836_v57 = vadd.f32 %v5860_v28, %v1818_v24  ;;  %v1824_v41 = vmul.f32 %v5862_v43, %v5861_v10  ;;  %v1183_v37 = vmax.f32 %v5056_v48, 0.0 }
 0x224   : > { %2393 = vmatprep.subr.bf16.mxu1 %v2386_v27  ;;  %v1829_v4 = vmul.f32 %v5862_v43, %v5863_v13  ;;  %v1819_v63 = vadd.f32 %v1811_v30, %v1801_v5  ;;  %v1807_v35 = vmul.f32 %v4955_v32, %v5848_v19  ;;  %v1607_v31 = vadd.f32 %v5864_v33, %v1589_v6  ;;  %v5868_v30 = vld [vmem:[#allocation18_spill] sm:$0xff] }
 0x225   : > { %v1797_v38 = vadd.f32 %v1789_v15, %v5865_v29  ;;  %v1854_v17 = vadd.f32 %v1846_v18, %v1836_v57  ;;  %v1842_v0 = vmul.f32 %v5138_v44, %v5095_v39  ;;  %2389 = vmatpush3.bf16.msra.mxu0 %v2386_v27  ;;  %v1637_v54 = vmax.f32 %v1629_v2, 0.0 }
 0x226   : > { %1878 = vrot.lane.b32.xlu0 %v1407_v20, %s2538_s23  ;;  %1916 = vrot.lane.b32.xlu1 %v1636_v49, %s2539_s25  ;;  %v1847_v8 = vmul.f32 %v5138_v44, %v5112_v47  ;;  %v1625_v23 = vadd.f32 %v1617_v56, %v1607_v31  ;;  %v1632_v32 = vmax.f32 %v1624_v22, 0.0  ;;  %v1832_v34 = vadd.f32 %v1824_v41, %v1814_v16  ;;  %v5869_v31 = vld [vmem:[#allocation69_spill] sm:$0xff] }
 0x227   : > { %2397 = vmatpush3.bf16.msra.mxu1 %v2386_v27  ;;  %v1815_v19 = vadd.f32 %v1807_v35, %v1797_v38  ;;  %v1837_v58 = vadd.f32 %v1829_v4, %v1819_v63  ;;  %v1862_v50 = vmax.f32 %v1854_v17, 0.0  ;;  %v1825_v51 = vmul.f32 %v5862_v43, %v5866_v52 }
 0x228   : > { %v1850_v39 = vadd.f32 %v1842_v0, %v1832_v34  ;;  %v1633_v53 = vmax.f32 %v1625_v23, 0.0  ;;  %v1843_v12 = vmul.f32 %v5138_v44, %v5143_v60  ;;  %v1182_v5 = vmax.f32 %v5867_v9, 0.0 }
 0x229   : > { %v1855_v1 = vadd.f32 %v1847_v8, %v1837_v58  ;;  %v1833_v47 = vadd.f32 %v1825_v51, %v1815_v19  ;;  %v1178_v6 = vmax.f32 %v5868_v30, 0.0  ;;  %v1179_v22 = vmax.f32 %v5076_v55, 0.0 }
 0x22a   : > { %1908 = vrot.lane.b32.xlu0 %v1632_v32, %s2539_s25  ;;  %1918 = vrot.lane.b32.xlu1 %v1637_v54, %s2539_s25  ;;  %v1858_v46 = vmax.f32 %v1850_v39, 0.0  ;;  %v1184_v29 = vmax.f32 %v5869_v31, 0.0  ;;  %v1180_v8 = vmax.f32 %v5115_v11, 0.0  ;;  %v1185_v23 = vmax.f32 %v5130_v45, 0.0 }
 0x22b   : > { %v1863_v3 = vmax.f32 %v1855_v1, 0.0  ;;  %v1851_v62 = vadd.f32 %v1843_v12, %v1833_v47  ;;  %v1181_v39 = vmax.f32 %v5164_v26, 0.0  ;;  %v2319_v26 = vld [vmem:[%s5870_s15] ss:$0 sm:$0xff] }
 0x22d   : > { %v1859_v14 = vmax.f32 %v1851_v62, 0.0 }
 0x22e   : > { %1910 = vrot.lane.b32.xlu0 %v1633_v53, %s2539_s25  ;;  %1948 = vrot.lane.b32.xlu1 %v1862_v50, %s2540_s1 }
 0x232   : > { %1940 = vrot.lane.b32.xlu0 %v1858_v46, %s2540_s1  ;;  %1950 = vrot.lane.b32.xlu1 %v1863_v3, %s2540_s1 }
 0x236   : > { %1942 = vrot.lane.b32.xlu0 %v1859_v14, %s2540_s1 }
 0x271   : > { %v1881_v25 = vpop.permute.xlu1 %1880 }
 0x272   : > { %v1965_v24 = vsel %vm1960_vm2, %v1182_v5, %v1881_v25 }
 0x274   : > { %v1873_v40 = vpop.permute.xlu0 %1872 }
 0x275   : > { %v1961_v15 = vsel %vm1960_vm2, %v1178_v6, %v1873_v40 }
 0x27b   : > { %v1883_v7 = vpop.permute.xlu1 %1882 }
 0x27c   : > { %v1966_v18 = vsel %vm1960_vm2, %v1183_v37, %v1883_v7 }
 0x280   : > { %v1875_v42 = vpop.permute.xlu0 %1874  ;;  %v1913_v44 = vpop.permute.xlu1 %1912 }
 0x281   : > { %v1974_v61 = vsel %vm1969_vm3, %v1965_v24, %v1913_v44  ;;  %v1962_v28 = vsel %vm1960_vm2, %v1179_v22, %v1875_v42 }
 0x284   : > { %v1905_v60 = vpop.permute.xlu0 %1904  ;;  %v1915_v27 = vpop.permute.xlu1 %1914 }
 0x285   : > { %v1970_v2 = vsel %vm1969_vm3, %v1961_v15, %v1905_v60  ;;  %v1975_v56 = vsel %vm1969_vm3, %v1966_v18, %v1915_v27 }
 0x288   : > { %v1907_v21 = vpop.permute.xlu0 %1906  ;;  %v1945_v59 = vpop.permute.xlu1 %1944 }
 0x289   : > { %v1983_v36 = vsel %vm1978_vm4, %v1974_v61, %v1945_v59  ;;  %v1971_v57 = vsel %vm1969_vm3, %v1962_v28, %v1907_v21 }
 0x28a   : > { %2368 = vmatprep.mubr.msk.f32.mxu1 %vm2002_vm5, %v1983_v36 }
 0x28c   : > { %v1937_v20 = vpop.permute.xlu0 %1936  ;;  %v1947_v49 = vpop.permute.xlu1 %1946 }
 0x28d   : > { %v1979_v16 = vsel %vm1978_vm4, %v1970_v2, %v1937_v20  ;;  %v1984_v48 = vsel %vm1978_vm4, %v1975_v56, %v1947_v49 }
 0x28e   : > { %2362 = vmatprep.mubr.msk.f32.mxu0 %vm2002_vm5, %v1979_v16  ;;  %2369 = vmatmul.mubr.msk.f32.vlgmr.msra.gmra.mrb[0].mxu1 %vm2002_vm5, %v1984_v48 }
 0x290   : > { %v1939_v10 = vpop.permute.xlu0 %1938  ;;  %v1885_v43 = vpop.permute.xlu1 %1884 }
 0x291   : > { %v1980_v41 = vsel %vm1978_vm4, %v1971_v57, %v1939_v10  ;;  %v1967_v38 = vsel %vm1960_vm2, %v1184_v29, %v1885_v43 }
 0x292   : > { %2363 = vmatmul.mubr.msk.f32.vlgmr.msra.gmra.mrb[0].mxu0 %vm2002_vm5, %v1980_v41 }
 0x294   : > { %v1877_v13 = vpop.permute.xlu0 %1876  ;;  %v1887_v55 = vpop.permute.xlu1 %1886 }
 0x295   : > { %v1963_v19 = vsel %vm1960_vm2, %v1180_v8, %v1877_v13  ;;  %v1968_v34 = vsel %vm1960_vm2, %v1185_v23, %v1887_v55 }
 0x298   : > { %v1879_v4 = vpop.permute.xlu0 %1878  ;;  %v1917_v63 = vpop.permute.xlu1 %1916 }
 0x299   : > { %v1976_v17 = vsel %vm1969_vm3, %v1967_v38, %v1917_v63  ;;  %v1964_v1 = vsel %vm1960_vm2, %v1181_v39, %v1879_v4 }
 0x29c   : > { %v1909_v35 = vpop.permute.xlu0 %1908  ;;  %v1919_v33 = vpop.permute.xlu1 %1918 }
 0x29d   : > { %v1972_v58 = vsel %vm1969_vm3, %v1963_v19, %v1909_v35  ;;  %v1977_v50 = vsel %vm1969_vm3, %v1968_v34, %v1919_v33 }
 0x2a0   : > { %v1911_v0 = vpop.permute.xlu0 %1910  ;;  %v1949_v54 = vpop.permute.xlu1 %1948 }
 0x2a1   : > { %v1985_v32 = vsel %vm1978_vm4, %v1976_v17, %v1949_v54  ;;  %v1973_v53 = vsel %vm1969_vm3, %v1964_v1, %v1911_v0 }
 0x2a2   : > { %2371 = vmatprep.mubr.msk.f32.mxu1 %vm2002_vm5, %v1985_v32 }
 0x2a4   : > { %v1941_v52 = vpop.permute.xlu0 %1940  ;;  %v1951_v51 = vpop.permute.xlu1 %1950 }
 0x2a5   : > { %v1981_v11 = vsel %vm1978_vm4, %v1972_v58, %v1941_v52  ;;  %v1986_v45 = vsel %vm1978_vm4, %v1977_v50, %v1951_v51 }
 0x2a6   : > { %2365 = vmatprep.mubr.msk.f32.mxu0 %vm2002_vm5, %v1981_v11  ;;  %2372 = vmatmul.mubr.msk.f32.gmra.mrb[2].mxu1 %vm2002_vm5, %v1986_v45 }
 0x2a8   : > { %v1943_v12 = vpop.permute.xlu0 %1942 }
 0x2a9   : > { %v1982_v47 = vsel %vm1978_vm4, %v1973_v53, %v1943_v12 }
 0x2aa   : > { %2366 = vmatmul.mubr.msk.f32.gmra.mrb[2].mxu0 %vm2002_vm5, %v1982_v47 }
 0x361   : > { %v2370_v46 = vpop.f32.mrb[0].mxu1 }
 0x362   : > { %v2119_v3 = vadd.f32 %v2370_v46, %v2319_v26  ;;  %v2113_v62 = vpop.f32.mrb[1].mxu1 }
 0x363   : > { %v2114_v14 = vadd.f32 %v2319_v26, %v2113_v62 }
 0x364   : > { %2138 = vst.msk [vmem:[%s332_s20 + $0x28] sm:$0xff] %vm2132_vm6, %v2119_v3 }
 0x365   : > { %v2364_v25 = vpop.f32.mrb[0].mxu0  ;;  %2137 = vst.msk [vmem:[%s332_s20 + $0x20] sm:$0xff] %vm2132_vm6, %v2114_v14 }
 0x366   : > { %v2099_v7 = vadd.f32 %v2364_v25, %v2319_v26  ;;  %v2093_v40 = vpop.f32.mrb[1].mxu0 }
 0x367   : > { %v2094_v42 = vadd.f32 %v2319_v26, %v2093_v40 }
 0x368   : > { %2134 = vst.msk [vmem:[%s332_s20 + $0x8] sm:$0xff] %vm2132_vm6, %v2099_v7 }
 0x369   : > { %2133 = vst.msk [vmem:[%s332_s20] sm:$0xff] %vm2132_vm6, %v2094_v42 }
 0x379   : > { %v2373_v44 = vpop.f32.mrb[2].mxu1 }
 0x37a   : > { %v2129_v60 = vadd.f32 %v2373_v44, %v2319_v26  ;;  %v2123_v27 = vpop.f32.mrb[3].mxu1 }
 0x37b   : > { %v2124_v9 = vadd.f32 %v2319_v26, %v2123_v27 }
 0x37c   : > { %2140 = vst.msk [vmem:[%s332_s20 + $0x38] sm:$0xff] %vm2132_vm6, %v2129_v60 }
 0x37d   : > { %v2367_v5 = vpop.f32.mrb[2].mxu0  ;;  %2139 = vst.msk [vmem:[%s332_s20 + $0x30] sm:$0xff] %vm2132_vm6, %v2124_v9 }
 0x37e   : > { %v2109_v24 = vadd.f32 %v2367_v5, %v2319_v26  ;;  %v2103_v61 = vpop.f32.mrb[3].mxu0 }
 0x37f   : > { %v2104_v21 = vadd.f32 %v2319_v26, %v2103_v61 }
 0x380   : > { %2136 = vst.msk [vmem:[%s332_s20 + $0x18] sm:$0xff] %vm2132_vm6, %v2109_v24 }
 0x381   : > { %2135 = vst.msk [vmem:[%s332_s20 + $0x10] sm:$0xff] %vm2132_vm6, %v2104_v21 }
 0x382 PF: > { %s5873_s27 = sld [smem:[#allocation12_spill]] }
 0x388   : > { %s20_s24 = sadd.s32 1, %s5873_s27  }
 0x389   : > { %p17_p2 = scmp.ge.s32.totalorder %s20_s24, 4  }
 0x38b   :  { %19 = sbr.rel (!%p17_p2) target bundleno = 11 (0xb), region = 95 }
 0x392   :  { %2163 = vsyncpa [#allocation3], 1 }
 0x393   :  { %2165 = vsyncpa [#allocation3 + $0x1], 1 }
 0x394   :  { %2166 = vsyncpa [#allocation5], 1 }
 0x395   :  { %2167 = vsyncpa [#allocation8], 1 }

</bundles_post_ra>
